<compile_context>
chip_gen: v7x
topology: tpu7x:2x2x1
jax: 0.10.0
libtpu: 0.0.40
codegen_flags: <defaults>
</compile_context>

<pallas_src>
import functools
import math

import jax
import jax.numpy as jnp
from jax.experimental import pallas as pl
from jax.experimental.pallas import tpu as pltpu

LN_EPS = 1e-5  # torch.nn.LayerNorm default

_ARBITRARY = pltpu.CompilerParams(dimension_semantics=("arbitrary",))


# ----------------------------------------------------------------------------
# In-kernel math helpers (operate on values already loaded from refs)
# ----------------------------------------------------------------------------
def _ln(x, g, b, eps):
    mu = jnp.mean(x, axis=-1, keepdims=True)
    var = jnp.mean((x - mu) ** 2, axis=-1, keepdims=True)
    return (x - mu) * jax.lax.rsqrt(var + eps) * g + b


def _mha(q2d, kv2d, batch, wqkv, bqkv, wo, bo, heads):
    """Fused multi-head attention.

    q2d  : (B*Sq, D) f32 (already layer-normed).
    kv2d : (B*Sk, D) f32, or None for self-attention (single fused QKV matmul).
    wqkv : (D, 3D) bf16 (1/sqrt(dk) folded into the Q columns).
    bqkv : (1, 3D) f32.   wo: (D, D) bf16.   bo: (1, D) f32.
    Returns (B*Sq, D) f32.
    """
    rq, d = q2d.shape
    sq = rq // batch
    dk = d // heads
    qb = q2d.astype(jnp.bfloat16)

    if kv2d is None:
        # self-attention: one (B*S, D) x (D, 3D) matmul
        qkv = jnp.dot(qb, wqkv, preferred_element_type=jnp.float32) + bqkv
        q_p, k_p, v_p = qkv[:, :d], qkv[:, d:2 * d], qkv[:, 2 * d:]
        sk = sq
    else:
        sk = kv2d.shape[0] // batch
        kvb = kv2d.astype(jnp.bfloat16)
        q_p = jnp.dot(qb, wqkv[:, :d],
                      preferred_element_type=jnp.float32) + bqkv[:, :d]
        kv_p = jnp.dot(kvb, wqkv[:, d:],
                       preferred_element_type=jnp.float32) + bqkv[:, d:]
        k_p, v_p = kv_p[:, :d], kv_p[:, d:]

    q3 = q_p.reshape(batch, sq, d)
    k3 = k_p.reshape(batch, sk, d)
    v3 = v_p.reshape(batch, sk, d)

    outs = []
    for h in range(heads):  # small static unroll; matmuls batched over B
        sl = slice(h * dk, (h + 1) * dk)
        s = jnp.einsum("bqd,bkd->bqk",
                       q3[:, :, sl].astype(jnp.bfloat16),
                       k3[:, :, sl].astype(jnp.bfloat16),
                       preferred_element_type=jnp.float32)
        m = jnp.max(s, axis=-1, keepdims=True)
        p = jnp.exp(s - m)                       # f32 softmax math
        l = jnp.sum(p, axis=-1, keepdims=True)
        o_h = jnp.einsum("bqk,bkd->bqd",
                         p.astype(jnp.bfloat16),
                         v3[:, :, sl].astype(jnp.bfloat16),
                         preferred_element_type=jnp.float32)
        outs.append(o_h * pl.reciprocal(l, approx=True))

    o = jnp.concatenate(outs, axis=-1).reshape(rq, d)   # fused output proj
    return jnp.dot(o.astype(jnp.bfloat16), wo,
                   preferred_element_type=jnp.float32) + bo


def _ffn(h2d, w1, b1, w2, b2):
    hid = jnp.dot(h2d.astype(jnp.bfloat16), w1,
                  preferred_element_type=jnp.float32) + b1
    hid = jnp.maximum(hid, 0.0)
    return jnp.dot(hid.astype(jnp.bfloat16), w2,
                   preferred_element_type=jnp.float32) + b2


# ----------------------------------------------------------------------------
# Fused stack kernels (grid = (num_layers,), residual carried in VMEM scratch)
# ----------------------------------------------------------------------------
def _encoder_stack_kernel(src_ref, pw_ref, pb_ref, pos_ref,
                          ln1g, ln1b, wqkv, bqkv, wo, bo,
                          ln2g, ln2b, w1, b1, w2, b2,
                          lnfg, lnfb, o_ref, x_ref, *, heads, eps):
    layer = pl.program_id(0)
    b, s, d = o_ref.shape

    @pl.when(layer == 0)
    def _():
        # patch embedding + learned positional embedding
        src = src_ref[...].reshape(b * s, -1)
        y = jnp.dot(src.astype(jnp.bfloat16), pw_ref[...],
                    preferred_element_type=jnp.float32) + pb_ref[...]
        y = y.reshape(b, s, d) + pos_ref[0][None]
        x_ref[...] = y.reshape(b * s, d)

    x = x_ref[...]
    h = _ln(x, ln1g[0], ln1b[0], eps)
    x = x + _mha(h, None, b, wqkv[0], bqkv[0], wo[0], bo[0], heads)
    h = _ln(x, ln2g[0], ln2b[0], eps)
    x = x + _ffn(h, w1[0], b1[0], w2[0], b2[0])
    x_ref[...] = x

    @pl.when(layer == pl.num_programs(0) - 1)
    def _():
        o_ref[...] = _ln(x, lnfg[...], lnfb[...], eps).reshape(b, s, d)


def _decoder_stack_kernel(trg_ref, emb_ref, pe_ref, e_ref,
                          ln1g, ln1b, s_wqkv, s_bqkv, s_wo, s_bo,
                          ln2g, ln2b, c_wqkv, c_bqkv, c_wo, c_bo,
                          ln3g, ln3b, w1, b1, w2, b2,
                          lnfg, lnfb, o_ref, x_ref, *, heads, eps, sqrt_d):
    layer = pl.program_id(0)
    b, s, d = o_ref.shape
    _, s_src, _ = e_ref.shape

    @pl.when(layer == 0)
    def _():
        # token embedding gather (one-hot matmul) * sqrt(D) + sinusoidal PE
        v = emb_ref.shape[0]
        ids = trg_ref[...]                                   # (B*S, 1) int32
        iota = jax.lax.broadcasted_iota(jnp.int32, (b * s, v), 1)
        onehot = jnp.where(iota == ids, 1.0, 0.0).astype(jnp.bfloat16)
        emb = jnp.dot(onehot, emb_ref[...],
                      preferred_element_type=jnp.float32) * sqrt_d
        x0 = emb.reshape(b, s, d) + pe_ref[...][None]
        x_ref[...] = x0.reshape(b * s, d)

    # TODO(synk): reference forward passes no masks -> no causal mask applied.
    e2d = e_ref[...].reshape(b * s_src, d)
    x = x_ref[...]
    h = _ln(x, ln1g[0], ln1b[0], eps)
    x = x + _mha(h, None, b, s_wqkv[0], s_bqkv[0], s_wo[0], s_bo[0], heads)
    h = _ln(x, ln2g[0], ln2b[0], eps)
    x = x + _mha(h, e2d, b, c_wqkv[0], c_bqkv[0], c_wo[0], c_bo[0], heads)
    h = _ln(x, ln3g[0], ln3b[0], eps)
    x = x + _ffn(h, w1[0], b1[0], w2[0], b2[0])
    x_ref[...] = x

    @pl.when(layer == pl.num_programs(0) - 1)
    def _():
        o_ref[...] = _ln(x, lnfg[...], lnfb[...], eps).reshape(b, s, d)


# ----------------------------------------------------------------------------
# pallas_call wrappers
# ----------------------------------------------------------------------------
def _const_spec(shape):
    nd = len(shape)
    return pl.BlockSpec(shape, lambda l, _n=nd: (0,) * _n)


def _layer_spec(shape):
    nd = len(shape)
    return pl.BlockSpec((1,) + shape[1:], lambda l, _n=nd: (l,) + (0,) * (_n - 1))


_ENC_LAYER_KEYS = ("ln1_g", "ln1_b", "wqkv", "bqkv", "wo", "bo",
                   "ln2_g", "ln2_b", "w1", "b1", "w2", "b2")
_DEC_LAYER_KEYS = ("ln1_g", "ln1_b", "s_wqkv", "s_bqkv", "s_wo", "s_bo",
                   "ln2_g", "ln2_b", "c_wqkv", "c_bqkv", "c_wo", "c_bo",
                   "ln3_g", "ln3_b", "w1", "b1", "w2", "b2")


def encoder_forward(params, src, heads):
    B, S, _ = src.shape
    D = params["patch_w"].shape[1]
    L = params["layers"]
    n_layers = L["ln1_g"].shape[0]

    const_pre = [src, params["patch_w"], params["patch_b"], params["pos_emb"]]
    layer_args = [L[k] for k in _ENC_LAYER_KEYS]
    const_post = [params["ln_g"], params["ln_b"]]
    args = const_pre + layer_args + const_post
    in_specs = ([_const_spec(a.shape) for a in const_pre]
                + [_layer_spec(a.shape) for a in layer_args]
                + [_const_spec(a.shape) for a in const_post])

    return pl.pallas_call(
        functools.partial(_encoder_stack_kernel, heads=heads, eps=LN_EPS),
        grid=(n_layers,),
        in_specs=in_specs,
        out_specs=pl.BlockSpec((B, S, D), lambda l: (0, 0, 0)),
        out_shape=jax.ShapeDtypeStruct((B, S, D), jnp.float32),
        scratch_shapes=[pltpu.VMEM((B * S, D), jnp.float32)],
        compiler_params=_ARBITRARY,
    )(*args)


def decoder_forward(params, trg, e_out, heads):
    B, S = trg.shape
    D = params["pe"].shape[1]
    L = params["layers"]
    n_layers = L["ln1_g"].shape[0]

    trg2 = trg.reshape(B * S, 1).astype(jnp.int32)  # kernel-friendly id layout
    const_pre = [trg2, params["embed"], params["pe"], e_out]
    layer_args = [L[k] for k in _DEC_LAYER_KEYS]
    const_post = [params["ln_g"], params["ln_b"]]
    args = const_pre + layer_args + const_post
    in_specs = ([_const_spec(a.shape) for a in const_pre]
                + [_layer_spec(a.shape) for a in layer_args]
                + [_const_spec(a.shape) for a in const_post])

    return pl.pallas_call(
        functools.partial(_decoder_stack_kernel, heads=heads, eps=LN_EPS,
                          sqrt_d=math.sqrt(D)),
        grid=(n_layers,),
        in_specs=in_specs,
        out_specs=pl.BlockSpec((B, S, D), lambda l: (0, 0, 0)),
        out_shape=jax.ShapeDtypeStruct((B, S, D), jnp.float32),
        scratch_shapes=[pltpu.VMEM((B * S, D), jnp.float32)],
        compiler_params=_ARBITRARY,
    )(*args)


def transformer_forward(params, src, trg, heads):
    e_out = encoder_forward(params["encoder"], src, heads)
    # reference forward returns the decoder output (self.out is never applied)
    return decoder_forward(params["decoder"], trg, e_out, heads)


# ----------------------------------------------------------------------------
# Deterministic parameter initialization (kernel-ready, layer-stacked layout)
# ----------------------------------------------------------------------------
def _init_ln(d_model):
    return (jnp.ones((1, d_model), jnp.float32),
            jnp.zeros((1, d_model), jnp.float32))


def _init_attn(key, d_model, heads, prefix=""):
    dk = d_model // heads
    scale = 1.0 / math.sqrt(dk)
    ks = jax.random.split(key, 4)

    def lin(k):
        return (jax.random.normal(k, (d_model, d_model), jnp.float32) * 0.02,
                jnp.zeros((d_model,), jnp.float32))

    wq, bq = lin(ks[0]); wk, bk = lin(ks[1]); wv, bv = lin(ks[2]); wo, bo = lin(ks[3])
    # fused QKV layout, 1/sqrt(dk) folded into the Q columns / bias
    wqkv = jnp.concatenate([wq * scale, wk, wv], axis=1).astype(jnp.bfloat16)
    bqkv = jnp.concatenate([bq * scale, bk, bv])[None, :].astype(jnp.float32)
    return {prefix + "wqkv": wqkv, prefix + "bqkv": bqkv,
            prefix + "wo": wo.astype(jnp.bfloat16),
            prefix + "bo": bo[None, :].astype(jnp.float32)}


def _init_ff(key, d_model, d_ff):
    k1, k2 = jax.random.split(key)
    return dict(
        w1=(jax.random.normal(k1, (d_model, d_ff), jnp.float32) * 0.02
            ).astype(jnp.bfloat16),
        b1=jnp.zeros((1, d_ff), jnp.float32),
        w2=(jax.random.normal(k2, (d_ff, d_model), jnp.float32) * 0.02
            ).astype(jnp.bfloat16),
        b2=jnp.zeros((1, d_model), jnp.float32))


def _stack_layers(layer_dicts):
    return {k: jnp.stack([ld[k] for ld in layer_dicts]) for k in layer_dicts[0]}


def _sinusoidal_pe(length, d_model):
    pos = jnp.arange(length, dtype=jnp.float32)[:, None]
    i = jnp.arange(0, d_model, 2, dtype=jnp.float32)
    div = jnp.exp(-jnp.log(10000.0) * i / d_model)
    pe = jnp.zeros((length, d_model), jnp.float32)
    pe = pe.at[:, 0::2].set(jnp.sin(pos * div))
    pe = pe.at[:, 1::2].set(jnp.cos(pos * div))
    return pe


def init_transformer(key, patch_num, patch_dim, d_model, trg_vocab, trg_length,
                     N, heads, d_ff):
    k_enc, k_dec = jax.random.split(key)

    # encoder
    ks = jax.random.split(k_enc, 2 + 2 * N)
    enc_layers = []
    for n in range(N):
        g1, b1 = _init_ln(d_model)
        g2, b2 = _init_ln(d_model)
        layer = dict(ln1_g=g1, ln1_b=b1, ln2_g=g2, ln2_b=b2)
        layer.update(_init_attn(ks[2 + 2 * n], d_model, heads))
        layer.update(_init_ff(ks[3 + 2 * n], d_model, d_ff))
        enc_layers.append(layer)
    gf, bf = _init_ln(d_model)
    encoder = dict(
        patch_w=(jax.random.normal(ks[0], (patch_dim, d_model), jnp.float32) * 0.02
                 ).astype(jnp.bfloat16),
        patch_b=jnp.zeros((1, d_model), jnp.float32),
        pos_emb=jax.random.normal(ks[1], (1, patch_num, d_model), jnp.float32) * 0.02,
        layers=_stack_layers(enc_layers), ln_g=gf, ln_b=bf)

    # decoder
    ks = jax.random.split(k_dec, 1 + 3 * N)
    dec_layers = []
    for n in range(N):
        g1, b1 = _init_ln(d_model)
        g2, b2 = _init_ln(d_model)
        g3, b3 = _init_ln(d_model)
        layer = dict(ln1_g=g1, ln1_b=b1, ln2_g=g2, ln2_b=b2, ln3_g=g3, ln3_b=b3)
        layer.update(_init_attn(ks[1 + 3 * n], d_model, heads, prefix="s_"))
        layer.update(_init_attn(ks[2 + 3 * n], d_model, heads, prefix="c_"))
        layer.update(_init_ff(ks[3 + 3 * n], d_model, d_ff))
        dec_layers.append(layer)
    gf, bf = _init_ln(d_model)
    decoder = dict(
        embed=(jax.random.normal(ks[0], (trg_vocab, d_model), jnp.float32) * 0.02
               ).astype(jnp.bfloat16),
        pe=_sinusoidal_pe(trg_length, d_model),
        layers=_stack_layers(dec_layers), ln_g=gf, ln_b=bf)

    return dict(encoder=encoder, decoder=decoder)


# ----------------------------------------------------------------------------
if __name__ == "__main__":
    B = 2
    patch_num = 8     # encoder sequence length (number of patches)
    patch_dim = 32    # per-patch feature dim
    d_model = 32
    trg_vocab = 16
    trg_length = 8
    N = 2
    heads = 4
    d_ff = 4 * d_model

    key = jax.random.PRNGKey(0)
    k_params, k_src, k_trg = jax.random.split(key, 3)

    params = init_transformer(k_params, patch_num, patch_dim, d_model,
                              trg_vocab, trg_length, N, heads, d_ff)

    src = jax.random.normal(k_src, (B, patch_num, patch_dim), jnp.float32)
    trg = jax.random.randint(k_trg, (B, trg_length), 0, trg_vocab, jnp.int32)

    fwd = jax.jit(functools.partial(transformer_forward, heads=heads))
    out = fwd(params, src, trg)
    out = jax.block_until_ready(out)

    assert out.shape == (B, trg_length, d_model), out.shape
    assert jnp.all(jnp.isfinite(out))
    print("KERNEL_OK")
</pallas_src>

<mosaic_0001>
module attributes {stable_mosaic.version = 11 : i64} {
  func.func @_decoder_stack_kernel(%arg0: i32, %arg1: memref<16x1xi32, #tpu.memory_space<vmem>>, %arg2: memref<16x32xbf16, #tpu.memory_space<vmem>>, %arg3: memref<8x32xf32, #tpu.memory_space<vmem>>, %arg4: memref<2x8x32xf32, #tpu.memory_space<vmem>>, %arg5: memref<1x1x32xf32, #tpu.memory_space<vmem>>, %arg6: memref<1x1x32xf32, #tpu.memory_space<vmem>>, %arg7: memref<1x32x96xbf16, #tpu.memory_space<vmem>>, %arg8: memref<1x1x96xf32, #tpu.memory_space<vmem>>, %arg9: memref<1x32x32xbf16, #tpu.memory_space<vmem>>, %arg10: memref<1x1x32xf32, #tpu.memory_space<vmem>>, %arg11: memref<1x1x32xf32, #tpu.memory_space<vmem>>, %arg12: memref<1x1x32xf32, #tpu.memory_space<vmem>>, %arg13: memref<1x32x96xbf16, #tpu.memory_space<vmem>>, %arg14: memref<1x1x96xf32, #tpu.memory_space<vmem>>, %arg15: memref<1x32x32xbf16, #tpu.memory_space<vmem>>, %arg16: memref<1x1x32xf32, #tpu.memory_space<vmem>>, %arg17: memref<1x1x32xf32, #tpu.memory_space<vmem>>, %arg18: memref<1x1x32xf32, #tpu.memory_space<vmem>>, %arg19: memref<1x32x128xbf16, #tpu.memory_space<vmem>>, %arg20: memref<1x1x128xf32, #tpu.memory_space<vmem>>, %arg21: memref<1x128x32xbf16, #tpu.memory_space<vmem>>, %arg22: memref<1x1x32xf32, #tpu.memory_space<vmem>>, %arg23: memref<1x32xf32, #tpu.memory_space<vmem>>, %arg24: memref<1x32xf32, #tpu.memory_space<vmem>>, %arg25: memref<2x8x32xf32, #tpu.memory_space<vmem>>, %arg26: memref<16x32xf32, #tpu.memory_space<vmem>>) attributes {dimension_semantics = [#tpu.dimension_semantics<arbitrary>], iteration_bounds = array<i64: 2>, scalar_prefetch = 0 : i64, scratch_operands = 1 : i64, tpu.core_type = #tpu.core_type<tc>, window_params = [{pipeline_mode = #tpu.pipeline_mode<synchronous>, transform_indices = @transform_0, window_bounds = array<i64: 16, 1>}, {pipeline_mode = #tpu.pipeline_mode<synchronous>, transform_indices = @transform_1, window_bounds = array<i64: 16, 32>}, {pipeline_mode = #tpu.pipeline_mode<synchronous>, transform_indices = @transform_2, window_bounds = array<i64: 8, 32>}, {pipeline_mode = #tpu.pipeline_mode<synchronous>, transform_indices = @transform_3, window_bounds = array<i64: 2, 8, 32>}, {transform_indices = @transform_4, window_bounds = array<i64: 1, 1, 32>}, {transform_indices = @transform_5, window_bounds = array<i64: 1, 1, 32>}, {transform_indices = @transform_6, window_bounds = array<i64: 1, 32, 96>}, {transform_indices = @transform_7, window_bounds = array<i64: 1, 1, 96>}, {transform_indices = @transform_8, window_bounds = array<i64: 1, 32, 32>}, {transform_indices = @transform_9, window_bounds = array<i64: 1, 1, 32>}, {transform_indices = @transform_10, window_bounds = array<i64: 1, 1, 32>}, {transform_indices = @transform_11, window_bounds = array<i64: 1, 1, 32>}, {transform_indices = @transform_12, window_bounds = array<i64: 1, 32, 96>}, {transform_indices = @transform_13, window_bounds = array<i64: 1, 1, 96>}, {transform_indices = @transform_14, window_bounds = array<i64: 1, 32, 32>}, {transform_indices = @transform_15, window_bounds = array<i64: 1, 1, 32>}, {transform_indices = @transform_16, window_bounds = array<i64: 1, 1, 32>}, {transform_indices = @transform_17, window_bounds = array<i64: 1, 1, 32>}, {transform_indices = @transform_18, window_bounds = array<i64: 1, 32, 128>}, {transform_indices = @transform_19, window_bounds = array<i64: 1, 1, 128>}, {transform_indices = @transform_20, window_bounds = array<i64: 1, 128, 32>}, {transform_indices = @transform_21, window_bounds = array<i64: 1, 1, 32>}, {pipeline_mode = #tpu.pipeline_mode<synchronous>, transform_indices = @transform_22, window_bounds = array<i64: 1, 32>}, {pipeline_mode = #tpu.pipeline_mode<synchronous>, transform_indices = @transform_23, window_bounds = array<i64: 1, 32>}, {pipeline_mode = #tpu.pipeline_mode<synchronous>, transform_indices = @transform_24, window_bounds = array<i64: 2, 8, 32>}]} {
    %c0_i32 = arith.constant 0 : i32
    %0 = arith.cmpi eq, %arg0, %c0_i32 : i32
    %1 = arith.extui %0 : i1 to i32
    %c0_i32_0 = arith.constant 0 : i32
    %2 = arith.cmpi ne, %1, %c0_i32_0 : i32
    scf.if %2 {
      %c0_116 = arith.constant 0 : index
      %c0_117 = arith.constant 0 : index
      %316 = vector.load %arg1[%c0_116, %c0_117] : memref<16x1xi32, #tpu.memory_space<vmem>>, vector<16x1xi32>
      %317 = tpu.iota {dimensions = array<i32: 1>} : vector<16x16xi32>
      %318 = vector.broadcast %316 : vector<16x1xi32> to vector<16x16xi32>
      %319 = arith.cmpi eq, %317, %318 : vector<16x16xi32>
      %cst_118 = arith.constant 1.000000e+00 : f32
      %cst_119 = arith.constant 0.000000e+00 : f32
      %320 = vector.broadcast %cst_118 : f32 to vector<16x16xf32>
      %321 = vector.broadcast %cst_119 : f32 to vector<16x16xf32>
      %322 = arith.select %319, %320, %321 : vector<16x16xi1>, vector<16x16xf32>
      %323 = arith.truncf %322 : vector<16x16xf32> to vector<16x16xbf16>
      %c0_120 = arith.constant 0 : index
      %c0_121 = arith.constant 0 : index
      %324 = vector.load %arg2[%c0_120, %c0_121] : memref<16x32xbf16, #tpu.memory_space<vmem>>, vector<16x32xbf16>
      %cst_122 = arith.constant dense<0.000000e+00> : vector<16x32xf32>
      %325 = tpu.matmul %323, %324, %cst_122 {dimension_numbers = #tpu.dot_dimension_numbers<[1], [0], [0], [1], [0, 0, 1, 1], [], []>} : vector<16x16xbf16>, vector<16x32xbf16>, vector<16x32xf32> -> vector<16x32xf32>
      %cst_123 = arith.constant 5.65685415 : f32
      %326 = vector.broadcast %cst_123 : f32 to vector<16x32xf32>
      %327 = arith.mulf %325, %326 : vector<16x32xf32>
      %328 = vector.shape_cast %327 : vector<16x32xf32> to vector<2x8x32xf32>
      %c0_124 = arith.constant 0 : index
      %c0_125 = arith.constant 0 : index
      %329 = vector.load %arg3[%c0_124, %c0_125] : memref<8x32xf32, #tpu.memory_space<vmem>>, vector<8x32xf32>
      %330 = vector.shape_cast %329 : vector<8x32xf32> to vector<1x8x32xf32>
      %331 = vector.broadcast %330 : vector<1x8x32xf32> to vector<2x8x32xf32>
      %332 = arith.addf %328, %331 : vector<2x8x32xf32>
      %333 = vector.shape_cast %332 : vector<2x8x32xf32> to vector<16x32xf32>
      %c0_126 = arith.constant 0 : index
      %c0_127 = arith.constant 0 : index
      %334 = vector.load %arg26[%c0_126, %c0_127] : memref<16x32xf32, #tpu.memory_space<vmem>>, vector<16x32xf32>
      tpu.vector_store %arg26[%c0_126, %c0_127], %333 {strides = array<i32>} : memref<16x32xf32, #tpu.memory_space<vmem>>, vector<16x32xf32>,
    } else {
    }
    %c0 = arith.constant 0 : index
    %c0_1 = arith.constant 0 : index
    %c0_2 = arith.constant 0 : index
    %3 = vector.load %arg4[%c0, %c0_1, %c0_2] : memref<2x8x32xf32, #tpu.memory_space<vmem>>, vector<2x8x32xf32>
    %4 = vector.shape_cast %3 : vector<2x8x32xf32> to vector<16x32xf32>
    %c0_3 = arith.constant 0 : index
    %c0_4 = arith.constant 0 : index
    %5 = vector.load %arg26[%c0_3, %c0_4] : memref<16x32xf32, #tpu.memory_space<vmem>>, vector<16x32xf32>
    %c0_5 = arith.constant 0 : index
    %c0_6 = arith.constant 0 : index
    %c0_7 = arith.constant 0 : index
    %6 = vector.load %arg5[%c0_5, %c0_6, %c0_7] : memref<1x1x32xf32, #tpu.memory_space<vmem>>, vector<1x1x32xf32>
    %7 = vector.shape_cast %6 : vector<1x1x32xf32> to vector<1x32xf32>
    %c0_8 = arith.constant 0 : index
    %c0_9 = arith.constant 0 : index
    %c0_10 = arith.constant 0 : index
    %8 = vector.load %arg6[%c0_8, %c0_9, %c0_10] : memref<1x1x32xf32, #tpu.memory_space<vmem>>, vector<1x1x32xf32>
    %9 = vector.shape_cast %8 : vector<1x1x32xf32> to vector<1x32xf32>
    %cst = arith.constant dense<0.000000e+00> : vector<16xf32>
    %10 = vector.multi_reduction <add>, %5, %cst [1] : vector<16x32xf32> to vector<16xf32>
    %11 = vector.shape_cast %10 : vector<16xf32> to vector<16x1xf32>
    %cst_11 = arith.constant 3.200000e+01 : f32
    %12 = vector.broadcast %cst_11 : f32 to vector<16x1xf32>
    %13 = arith.divf %11, %12 : vector<16x1xf32>
    %14 = vector.broadcast %13 : vector<16x1xf32> to vector<16x32xf32>
    %15 = arith.subf %5, %14 : vector<16x32xf32>
    %16 = arith.mulf %15, %15 : vector<16x32xf32>
    %cst_12 = arith.constant dense<0.000000e+00> : vector<16xf32>
    %17 = vector.multi_reduction <add>, %16, %cst_12 [1] : vector<16x32xf32> to vector<16xf32>
    %18 = vector.shape_cast %17 : vector<16xf32> to vector<16x1xf32>
    %cst_13 = arith.constant 3.200000e+01 : f32
    %19 = vector.broadcast %cst_13 : f32 to vector<16x1xf32>
    %20 = arith.divf %18, %19 : vector<16x1xf32>
    %21 = vector.broadcast %13 : vector<16x1xf32> to vector<16x32xf32>
    %22 = arith.subf %5, %21 : vector<16x32xf32>
    %cst_14 = arith.constant 9.99999974E-6 : f32
    %23 = vector.broadcast %cst_14 : f32 to vector<16x1xf32>
    %24 = arith.addf %20, %23 : vector<16x1xf32>
    %25 = math.rsqrt %24 : vector<16x1xf32>
    %26 = vector.broadcast %25 : vector<16x1xf32> to vector<16x32xf32>
    %27 = arith.mulf %22, %26 : vector<16x32xf32>
    %28 = vector.broadcast %7 : vector<1x32xf32> to vector<16x32xf32>
    %29 = arith.mulf %27, %28 : vector<16x32xf32>
    %30 = vector.broadcast %9 : vector<1x32xf32> to vector<16x32xf32>
    %31 = arith.addf %29, %30 : vector<16x32xf32>
    %c0_15 = arith.constant 0 : index
    %c0_16 = arith.constant 0 : index
    %c0_17 = arith.constant 0 : index
    %32 = vector.load %arg7[%c0_15, %c0_16, %c0_17] : memref<1x32x96xbf16, #tpu.memory_space<vmem>>, vector<1x32x96xbf16>
    %33 = vector.shape_cast %32 : vector<1x32x96xbf16> to vector<32x96xbf16>
    %c0_18 = arith.constant 0 : index
    %c0_19 = arith.constant 0 : index
    %c0_20 = arith.constant 0 : index
    %34 = vector.load %arg8[%c0_18, %c0_19, %c0_20] : memref<1x1x96xf32, #tpu.memory_space<vmem>>, vector<1x1x96xf32>
    %35 = vector.shape_cast %34 : vector<1x1x96xf32> to vector<1x96xf32>
    %c0_21 = arith.constant 0 : index
    %c0_22 = arith.constant 0 : index
    %c0_23 = arith.constant 0 : index
    %36 = vector.load %arg9[%c0_21, %c0_22, %c0_23] : memref<1x32x32xbf16, #tpu.memory_space<vmem>>, vector<1x32x32xbf16>
    %37 = vector.shape_cast %36 : vector<1x32x32xbf16> to vector<32x32xbf16>
    %c0_24 = arith.constant 0 : index
    %c0_25 = arith.constant 0 : index
    %c0_26 = arith.constant 0 : index
    %38 = vector.load %arg10[%c0_24, %c0_25, %c0_26] : memref<1x1x32xf32, #tpu.memory_space<vmem>>, vector<1x1x32xf32>
    %39 = vector.shape_cast %38 : vector<1x1x32xf32> to vector<1x32xf32>
    %40 = arith.truncf %31 : vector<16x32xf32> to vector<16x32xbf16>
    %cst_27 = arith.constant dense<0.000000e+00> : vector<16x96xf32>
    %41 = tpu.matmul %40, %33, %cst_27 {dimension_numbers = #tpu.dot_dimension_numbers<[1], [0], [0], [1], [0, 0, 1, 1], [], []>} : vector<16x32xbf16>, vector<32x96xbf16>, vector<16x96xf32> -> vector<16x96xf32>
    %42 = vector.broadcast %35 : vector<1x96xf32> to vector<16x96xf32>
    %43 = arith.addf %41, %42 : vector<16x96xf32>
    %44 = vector.extract_strided_slice %43 {offsets = [0, 0], sizes = [16, 32], strides = [1, 1]} : vector<16x96xf32> to vector<16x32xf32>
    %45 = vector.extract_strided_slice %43 {offsets = [0, 32], sizes = [16, 32], strides = [1, 1]} : vector<16x96xf32> to vector<16x32xf32>
    %46 = vector.extract_strided_slice %43 {offsets = [0, 64], sizes = [16, 32], strides = [1, 1]} : vector<16x96xf32> to vector<16x32xf32>
    %47 = vector.shape_cast %44 : vector<16x32xf32> to vector<2x8x32xf32>
    %48 = vector.shape_cast %45 : vector<16x32xf32> to vector<2x8x32xf32>
    %49 = vector.shape_cast %46 : vector<16x32xf32> to vector<2x8x32xf32>
    %50 = vector.extract_strided_slice %47 {offsets = [0, 0, 0], sizes = [2, 8, 8], strides = [1, 1, 1]} : vector<2x8x32xf32> to vector<2x8x8xf32>
    %51 = arith.truncf %50 : vector<2x8x8xf32> to vector<2x8x8xbf16>
    %52 = vector.extract_strided_slice %48 {offsets = [0, 0, 0], sizes = [2, 8, 8], strides = [1, 1, 1]} : vector<2x8x32xf32> to vector<2x8x8xf32>
    %53 = arith.truncf %52 : vector<2x8x8xf32> to vector<2x8x8xbf16>
    "tpu.trace_start"() <{level = 10 : i32, message = "bqd,bkd->bqk"}> : () -> ()
    %cst_28 = arith.constant dense<0.000000e+00> : vector<2x8x8xf32>
    %54 = tpu.matmul %51, %53, %cst_28 {dimension_numbers = #tpu.dot_dimension_numbers<[2], [2], [1], [1], [0, 0, 0, 1, 1, 1], [0], [0]>} : vector<2x8x8xbf16>, vector<2x8x8xbf16>, vector<2x8x8xf32> -> vector<2x8x8xf32>
    "tpu.trace_stop"() : () -> ()
    %cst_29 = arith.constant dense<0xFF800000> : vector<2x8xf32>
    %55 = vector.multi_reduction <maximumf>, %54, %cst_29 [2] : vector<2x8x8xf32> to vector<2x8xf32>
    %56 = vector.shape_cast %55 : vector<2x8xf32> to vector<2x8x1xf32>
    %57 = vector.broadcast %56 : vector<2x8x1xf32> to vector<2x8x8xf32>
    %58 = arith.subf %54, %57 : vector<2x8x8xf32>
    %59 = math.exp %58 : vector<2x8x8xf32>
    %cst_30 = arith.constant dense<0.000000e+00> : vector<2x8xf32>
    %60 = vector.multi_reduction <add>, %59, %cst_30 [2] : vector<2x8x8xf32> to vector<2x8xf32>
    %61 = vector.shape_cast %60 : vector<2x8xf32> to vector<2x8x1xf32>
    %62 = arith.truncf %59 : vector<2x8x8xf32> to vector<2x8x8xbf16>
    %63 = vector.extract_strided_slice %49 {offsets = [0, 0, 0], sizes = [2, 8, 8], strides = [1, 1, 1]} : vector<2x8x32xf32> to vector<2x8x8xf32>
    %64 = arith.truncf %63 : vector<2x8x8xf32> to vector<2x8x8xbf16>
    "tpu.trace_start"() <{level = 10 : i32, message = "bqk,bkd->bqd"}> : () -> ()
    %cst_31 = arith.constant dense<0.000000e+00> : vector<2x8x8xf32>
    %65 = tpu.matmul %62, %64, %cst_31 {dimension_numbers = #tpu.dot_dimension_numbers<[2], [1], [1], [2], [0, 0, 0, 1, 1, 2], [0], [0]>} : vector<2x8x8xbf16>, vector<2x8x8xbf16>, vector<2x8x8xf32> -> vector<2x8x8xf32>
    "tpu.trace_stop"() : () -> ()
    %66 = tpu.reciprocal %61 {approx = true} : vector<2x8x1xf32> -> vector<2x8x1xf32>
    %67 = vector.broadcast %66 : vector<2x8x1xf32> to vector<2x8x8xf32>
    %68 = arith.mulf %65, %67 : vector<2x8x8xf32>
    %69 = vector.extract_strided_slice %47 {offsets = [0, 0, 8], sizes = [2, 8, 8], strides = [1, 1, 1]} : vector<2x8x32xf32> to vector<2x8x8xf32>
    %70 = arith.truncf %69 : vector<2x8x8xf32> to vector<2x8x8xbf16>
    %71 = vector.extract_strided_slice %48 {offsets = [0, 0, 8], sizes = [2, 8, 8], strides = [1, 1, 1]} : vector<2x8x32xf32> to vector<2x8x8xf32>
    %72 = arith.truncf %71 : vector<2x8x8xf32> to vector<2x8x8xbf16>
    "tpu.trace_start"() <{level = 10 : i32, message = "bqd,bkd->bqk"}> : () -> ()
    %cst_32 = arith.constant dense<0.000000e+00> : vector<2x8x8xf32>
    %73 = tpu.matmul %70, %72, %cst_32 {dimension_numbers = #tpu.dot_dimension_numbers<[2], [2], [1], [1], [0, 0, 0, 1, 1, 1], [0], [0]>} : vector<2x8x8xbf16>, vector<2x8x8xbf16>, vector<2x8x8xf32> -> vector<2x8x8xf32>
    "tpu.trace_stop"() : () -> ()
    %cst_33 = arith.constant dense<0xFF800000> : vector<2x8xf32>
    %74 = vector.multi_reduction <maximumf>, %73, %cst_33 [2] : vector<2x8x8xf32> to vector<2x8xf32>
    %75 = vector.shape_cast %74 : vector<2x8xf32> to vector<2x8x1xf32>
    %76 = vector.broadcast %75 : vector<2x8x1xf32> to vector<2x8x8xf32>
    %77 = arith.subf %73, %76 : vector<2x8x8xf32>
    %78 = math.exp %77 : vector<2x8x8xf32>
    %cst_34 = arith.constant dense<0.000000e+00> : vector<2x8xf32>
    %79 = vector.multi_reduction <add>, %78, %cst_34 [2] : vector<2x8x8xf32> to vector<2x8xf32>
    %80 = vector.shape_cast %79 : vector<2x8xf32> to vector<2x8x1xf32>
    %81 = arith.truncf %78 : vector<2x8x8xf32> to vector<2x8x8xbf16>
    %82 = vector.extract_strided_slice %49 {offsets = [0, 0, 8], sizes = [2, 8, 8], strides = [1, 1, 1]} : vector<2x8x32xf32> to vector<2x8x8xf32>
    %83 = arith.truncf %82 : vector<2x8x8xf32> to vector<2x8x8xbf16>
    "tpu.trace_start"() <{level = 10 : i32, message = "bqk,bkd->bqd"}> : () -> ()
    %cst_35 = arith.constant dense<0.000000e+00> : vector<2x8x8xf32>
    %84 = tpu.matmul %81, %83, %cst_35 {dimension_numbers = #tpu.dot_dimension_numbers<[2], [1], [1], [2], [0, 0, 0, 1, 1, 2], [0], [0]>} : vector<2x8x8xbf16>, vector<2x8x8xbf16>, vector<2x8x8xf32> -> vector<2x8x8xf32>
    "tpu.trace_stop"() : () -> ()
    %85 = tpu.reciprocal %80 {approx = true} : vector<2x8x1xf32> -> vector<2x8x1xf32>
    %86 = vector.broadcast %85 : vector<2x8x1xf32> to vector<2x8x8xf32>
    %87 = arith.mulf %84, %86 : vector<2x8x8xf32>
    %88 = vector.extract_strided_slice %47 {offsets = [0, 0, 16], sizes = [2, 8, 8], strides = [1, 1, 1]} : vector<2x8x32xf32> to vector<2x8x8xf32>
    %89 = arith.truncf %88 : vector<2x8x8xf32> to vector<2x8x8xbf16>
    %90 = vector.extract_strided_slice %48 {offsets = [0, 0, 16], sizes = [2, 8, 8], strides = [1, 1, 1]} : vector<2x8x32xf32> to vector<2x8x8xf32>
    %91 = arith.truncf %90 : vector<2x8x8xf32> to vector<2x8x8xbf16>
    "tpu.trace_start"() <{level = 10 : i32, message = "bqd,bkd->bqk"}> : () -> ()
    %cst_36 = arith.constant dense<0.000000e+00> : vector<2x8x8xf32>
    %92 = tpu.matmul %89, %91, %cst_36 {dimension_numbers = #tpu.dot_dimension_numbers<[2], [2], [1], [1], [0, 0, 0, 1, 1, 1], [0], [0]>} : vector<2x8x8xbf16>, vector<2x8x8xbf16>, vector<2x8x8xf32> -> vector<2x8x8xf32>
    "tpu.trace_stop"() : () -> ()
    %cst_37 = arith.constant dense<0xFF800000> : vector<2x8xf32>
    %93 = vector.multi_reduction <maximumf>, %92, %cst_37 [2] : vector<2x8x8xf32> to vector<2x8xf32>
    %94 = vector.shape_cast %93 : vector<2x8xf32> to vector<2x8x1xf32>
    %95 = vector.broadcast %94 : vector<2x8x1xf32> to vector<2x8x8xf32>
    %96 = arith.subf %92, %95 : vector<2x8x8xf32>
    %97 = math.exp %96 : vector<2x8x8xf32>
    %cst_38 = arith.constant dense<0.000000e+00> : vector<2x8xf32>
    %98 = vector.multi_reduction <add>, %97, %cst_38 [2] : vector<2x8x8xf32> to vector<2x8xf32>
    %99 = vector.shape_cast %98 : vector<2x8xf32> to vector<2x8x1xf32>
    %100 = arith.truncf %97 : vector<2x8x8xf32> to vector<2x8x8xbf16>
    %101 = vector.extract_strided_slice %49 {offsets = [0, 0, 16], sizes = [2, 8, 8], strides = [1, 1, 1]} : vector<2x8x32xf32> to vector<2x8x8xf32>
    %102 = arith.truncf %101 : vector<2x8x8xf32> to vector<2x8x8xbf16>
    "tpu.trace_start"() <{level = 10 : i32, message = "bqk,bkd->bqd"}> : () -> ()
    %cst_39 = arith.constant dense<0.000000e+00> : vector<2x8x8xf32>
    %103 = tpu.matmul %100, %102, %cst_39 {dimension_numbers = #tpu.dot_dimension_numbers<[2], [1], [1], [2], [0, 0, 0, 1, 1, 2], [0], [0]>} : vector<2x8x8xbf16>, vector<2x8x8xbf16>, vector<2x8x8xf32> -> vector<2x8x8xf32>
    "tpu.trace_stop"() : () -> ()
    %104 = tpu.reciprocal %99 {approx = true} : vector<2x8x1xf32> -> vector<2x8x1xf32>
    %105 = vector.broadcast %104 : vector<2x8x1xf32> to vector<2x8x8xf32>
    %106 = arith.mulf %103, %105 : vector<2x8x8xf32>
    %107 = vector.extract_strided_slice %47 {offsets = [0, 0, 24], sizes = [2, 8, 8], strides = [1, 1, 1]} : vector<2x8x32xf32> to vector<2x8x8xf32>
    %108 = arith.truncf %107 : vector<2x8x8xf32> to vector<2x8x8xbf16>
    %109 = vector.extract_strided_slice %48 {offsets = [0, 0, 24], sizes = [2, 8, 8], strides = [1, 1, 1]} : vector<2x8x32xf32> to vector<2x8x8xf32>
    %110 = arith.truncf %109 : vector<2x8x8xf32> to vector<2x8x8xbf16>
    "tpu.trace_start"() <{level = 10 : i32, message = "bqd,bkd->bqk"}> : () -> ()
    %cst_40 = arith.constant dense<0.000000e+00> : vector<2x8x8xf32>
    %111 = tpu.matmul %108, %110, %cst_40 {dimension_numbers = #tpu.dot_dimension_numbers<[2], [2], [1], [1], [0, 0, 0, 1, 1, 1], [0], [0]>} : vector<2x8x8xbf16>, vector<2x8x8xbf16>, vector<2x8x8xf32> -> vector<2x8x8xf32>
    "tpu.trace_stop"() : () -> ()
    %cst_41 = arith.constant dense<0xFF800000> : vector<2x8xf32>
    %112 = vector.multi_reduction <maximumf>, %111, %cst_41 [2] : vector<2x8x8xf32> to vector<2x8xf32>
    %113 = vector.shape_cast %112 : vector<2x8xf32> to vector<2x8x1xf32>
    %114 = vector.broadcast %113 : vector<2x8x1xf32> to vector<2x8x8xf32>
    %115 = arith.subf %111, %114 : vector<2x8x8xf32>
    %116 = math.exp %115 : vector<2x8x8xf32>
    %cst_42 = arith.constant dense<0.000000e+00> : vector<2x8xf32>
    %117 = vector.multi_reduction <add>, %116, %cst_42 [2] : vector<2x8x8xf32> to vector<2x8xf32>
    %118 = vector.shape_cast %117 : vector<2x8xf32> to vector<2x8x1xf32>
    %119 = arith.truncf %116 : vector<2x8x8xf32> to vector<2x8x8xbf16>
    %120 = vector.extract_strided_slice %49 {offsets = [0, 0, 24], sizes = [2, 8, 8], strides = [1, 1, 1]} : vector<2x8x32xf32> to vector<2x8x8xf32>
    %121 = arith.truncf %120 : vector<2x8x8xf32> to vector<2x8x8xbf16>
    "tpu.trace_start"() <{level = 10 : i32, message = "bqk,bkd->bqd"}> : () -> ()
    %cst_43 = arith.constant dense<0.000000e+00> : vector<2x8x8xf32>
    %122 = tpu.matmul %119, %121, %cst_43 {dimension_numbers = #tpu.dot_dimension_numbers<[2], [1], [1], [2], [0, 0, 0, 1, 1, 2], [0], [0]>} : vector<2x8x8xbf16>, vector<2x8x8xbf16>, vector<2x8x8xf32> -> vector<2x8x8xf32>
    "tpu.trace_stop"() : () -> ()
    %123 = tpu.reciprocal %118 {approx = true} : vector<2x8x1xf32> -> vector<2x8x1xf32>
    %124 = vector.broadcast %123 : vector<2x8x1xf32> to vector<2x8x8xf32>
    %125 = arith.mulf %122, %124 : vector<2x8x8xf32>
    %126 = tpu.concatenate %68, %87, %106, %125 in 2 : vector<2x8x8xf32>, vector<2x8x8xf32>, vector<2x8x8xf32>, vector<2x8x8xf32> -> vector<2x8x32xf32>
    %127 = vector.shape_cast %126 : vector<2x8x32xf32> to vector<16x32xf32>
    %128 = arith.truncf %127 : vector<16x32xf32> to vector<16x32xbf16>
    %cst_44 = arith.constant dense<0.000000e+00> : vector<16x32xf32>
    %129 = tpu.matmul %128, %37, %cst_44 {dimension_numbers = #tpu.dot_dimension_numbers<[1], [0], [0], [1], [0, 0, 1, 1], [], []>} : vector<16x32xbf16>, vector<32x32xbf16>, vector<16x32xf32> -> vector<16x32xf32>
    %130 = vector.broadcast %39 : vector<1x32xf32> to vector<16x32xf32>
    %131 = arith.addf %129, %130 : vector<16x32xf32>
    %132 = arith.addf %5, %131 : vector<16x32xf32>
    %c0_45 = arith.constant 0 : index
    %c0_46 = arith.constant 0 : index
    %c0_47 = arith.constant 0 : index
    %133 = vector.load %arg11[%c0_45, %c0_46, %c0_47] : memref<1x1x32xf32, #tpu.memory_space<vmem>>, vector<1x1x32xf32>
    %134 = vector.shape_cast %133 : vector<1x1x32xf32> to vector<1x32xf32>
    %c0_48 = arith.constant 0 : index
    %c0_49 = arith.constant 0 : index
    %c0_50 = arith.constant 0 : index
    %135 = vector.load %arg12[%c0_48, %c0_49, %c0_50] : memref<1x1x32xf32, #tpu.memory_space<vmem>>, vector<1x1x32xf32>
    %136 = vector.shape_cast %135 : vector<1x1x32xf32> to vector<1x32xf32>
    %cst_51 = arith.constant dense<0.000000e+00> : vector<16xf32>
    %137 = vector.multi_reduction <add>, %132, %cst_51 [1] : vector<16x32xf32> to vector<16xf32>
    %138 = vector.shape_cast %137 : vector<16xf32> to vector<16x1xf32>
    %cst_52 = arith.constant 3.200000e+01 : f32
    %139 = vector.broadcast %cst_52 : f32 to vector<16x1xf32>
    %140 = arith.divf %138, %139 : vector<16x1xf32>
    %141 = vector.broadcast %140 : vector<16x1xf32> to vector<16x32xf32>
    %142 = arith.subf %132, %141 : vector<16x32xf32>
    %143 = arith.mulf %142, %142 : vector<16x32xf32>
    %cst_53 = arith.constant dense<0.000000e+00> : vector<16xf32>
    %144 = vector.multi_reduction <add>, %143, %cst_53 [1] : vector<16x32xf32> to vector<16xf32>
    %145 = vector.shape_cast %144 : vector<16xf32> to vector<16x1xf32>
    %cst_54 = arith.constant 3.200000e+01 : f32
    %146 = vector.broadcast %cst_54 : f32 to vector<16x1xf32>
    %147 = arith.divf %145, %146 : vector<16x1xf32>
    %148 = vector.broadcast %140 : vector<16x1xf32> to vector<16x32xf32>
    %149 = arith.subf %132, %148 : vector<16x32xf32>
    %cst_55 = arith.constant 9.99999974E-6 : f32
    %150 = vector.broadcast %cst_55 : f32 to vector<16x1xf32>
    %151 = arith.addf %147, %150 : vector<16x1xf32>
    %152 = math.rsqrt %151 : vector<16x1xf32>
    %153 = vector.broadcast %152 : vector<16x1xf32> to vector<16x32xf32>
    %154 = arith.mulf %149, %153 : vector<16x32xf32>
    %155 = vector.broadcast %134 : vector<1x32xf32> to vector<16x32xf32>
    %156 = arith.mulf %154, %155 : vector<16x32xf32>
    %157 = vector.broadcast %136 : vector<1x32xf32> to vector<16x32xf32>
    %158 = arith.addf %156, %157 : vector<16x32xf32>
    %c0_56 = arith.constant 0 : index
    %c0_57 = arith.constant 0 : index
    %c0_58 = arith.constant 0 : index
    %159 = vector.load %arg13[%c0_56, %c0_57, %c0_58] : memref<1x32x96xbf16, #tpu.memory_space<vmem>>, vector<1x32x96xbf16>
    %160 = vector.shape_cast %159 : vector<1x32x96xbf16> to vector<32x96xbf16>
    %c0_59 = arith.constant 0 : index
    %c0_60 = arith.constant 0 : index
    %c0_61 = arith.constant 0 : index
    %161 = vector.load %arg14[%c0_59, %c0_60, %c0_61] : memref<1x1x96xf32, #tpu.memory_space<vmem>>, vector<1x1x96xf32>
    %162 = vector.shape_cast %161 : vector<1x1x96xf32> to vector<1x96xf32>
    %c0_62 = arith.constant 0 : index
    %c0_63 = arith.constant 0 : index
    %c0_64 = arith.constant 0 : index
    %163 = vector.load %arg15[%c0_62, %c0_63, %c0_64] : memref<1x32x32xbf16, #tpu.memory_space<vmem>>, vector<1x32x32xbf16>
    %164 = vector.shape_cast %163 : vector<1x32x32xbf16> to vector<32x32xbf16>
    %c0_65 = arith.constant 0 : index
    %c0_66 = arith.constant 0 : index
    %c0_67 = arith.constant 0 : index
    %165 = vector.load %arg16[%c0_65, %c0_66, %c0_67] : memref<1x1x32xf32, #tpu.memory_space<vmem>>, vector<1x1x32xf32>
    %166 = vector.shape_cast %165 : vector<1x1x32xf32> to vector<1x32xf32>
    %167 = arith.truncf %158 : vector<16x32xf32> to vector<16x32xbf16>
    %168 = arith.truncf %4 : vector<16x32xf32> to vector<16x32xbf16>
    %169 = vector.extract_strided_slice %160 {offsets = [0, 0], sizes = [32, 32], strides = [1, 1]} : vector<32x96xbf16> to vector<32x32xbf16>
    %cst_68 = arith.constant dense<0.000000e+00> : vector<16x32xf32>
    %170 = tpu.matmul %167, %169, %cst_68 {dimension_numbers = #tpu.dot_dimension_numbers<[1], [0], [0], [1], [0, 0, 1, 1], [], []>} : vector<16x32xbf16>, vector<32x32xbf16>, vector<16x32xf32> -> vector<16x32xf32>
    %171 = vector.extract_strided_slice %162 {offsets = [0, 0], sizes = [1, 32], strides = [1, 1]} : vector<1x96xf32> to vector<1x32xf32>
    %172 = vector.broadcast %171 : vector<1x32xf32> to vector<16x32xf32>
    %173 = arith.addf %170, %172 : vector<16x32xf32>
    %174 = vector.extract_strided_slice %160 {offsets = [0, 32], sizes = [32, 64], strides = [1, 1]} : vector<32x96xbf16> to vector<32x64xbf16>
    %cst_69 = arith.constant dense<0.000000e+00> : vector<16x64xf32>
    %175 = tpu.matmul %168, %174, %cst_69 {dimension_numbers = #tpu.dot_dimension_numbers<[1], [0], [0], [1], [0, 0, 1, 1], [], []>} : vector<16x32xbf16>, vector<32x64xbf16>, vector<16x64xf32> -> vector<16x64xf32>
    %176 = vector.extract_strided_slice %162 {offsets = [0, 32], sizes = [1, 64], strides = [1, 1]} : vector<1x96xf32> to vector<1x64xf32>
    %177 = vector.broadcast %176 : vector<1x64xf32> to vector<16x64xf32>
    %178 = arith.addf %175, %177 : vector<16x64xf32>
    %179 = vector.extract_strided_slice %178 {offsets = [0, 0], sizes = [16, 32], strides = [1, 1]} : vector<16x64xf32> to vector<16x32xf32>
    %180 = vector.extract_strided_slice %178 {offsets = [0, 32], sizes = [16, 32], strides = [1, 1]} : vector<16x64xf32> to vector<16x32xf32>
    %181 = vector.shape_cast %173 : vector<16x32xf32> to vector<2x8x32xf32>
    %182 = vector.shape_cast %179 : vector<16x32xf32> to vector<2x8x32xf32>
    %183 = vector.shape_cast %180 : vector<16x32xf32> to vector<2x8x32xf32>
    %184 = vector.extract_strided_slice %181 {offsets = [0, 0, 0], sizes = [2, 8, 8], strides = [1, 1, 1]} : vector<2x8x32xf32> to vector<2x8x8xf32>
    %185 = arith.truncf %184 : vector<2x8x8xf32> to vector<2x8x8xbf16>
    %186 = vector.extract_strided_slice %182 {offsets = [0, 0, 0], sizes = [2, 8, 8], strides = [1, 1, 1]} : vector<2x8x32xf32> to vector<2x8x8xf32>
    %187 = arith.truncf %186 : vector<2x8x8xf32> to vector<2x8x8xbf16>
    "tpu.trace_start"() <{level = 10 : i32, message = "bqd,bkd->bqk"}> : () -> ()
    %cst_70 = arith.constant dense<0.000000e+00> : vector<2x8x8xf32>
    %188 = tpu.matmul %185, %187, %cst_70 {dimension_numbers = #tpu.dot_dimension_numbers<[2], [2], [1], [1], [0, 0, 0, 1, 1, 1], [0], [0]>} : vector<2x8x8xbf16>, vector<2x8x8xbf16>, vector<2x8x8xf32> -> vector<2x8x8xf32>
    "tpu.trace_stop"() : () -> ()
    %cst_71 = arith.constant dense<0xFF800000> : vector<2x8xf32>
    %189 = vector.multi_reduction <maximumf>, %188, %cst_71 [2] : vector<2x8x8xf32> to vector<2x8xf32>
    %190 = vector.shape_cast %189 : vector<2x8xf32> to vector<2x8x1xf32>
    %191 = vector.broadcast %190 : vector<2x8x1xf32> to vector<2x8x8xf32>
    %192 = arith.subf %188, %191 : vector<2x8x8xf32>
    %193 = math.exp %192 : vector<2x8x8xf32>
    %cst_72 = arith.constant dense<0.000000e+00> : vector<2x8xf32>
    %194 = vector.multi_reduction <add>, %193, %cst_72 [2] : vector<2x8x8xf32> to vector<2x8xf32>
    %195 = vector.shape_cast %194 : vector<2x8xf32> to vector<2x8x1xf32>
    %196 = arith.truncf %193 : vector<2x8x8xf32> to vector<2x8x8xbf16>
    %197 = vector.extract_strided_slice %183 {offsets = [0, 0, 0], sizes = [2, 8, 8], strides = [1, 1, 1]} : vector<2x8x32xf32> to vector<2x8x8xf32>
    %198 = arith.truncf %197 : vector<2x8x8xf32> to vector<2x8x8xbf16>
    "tpu.trace_start"() <{level = 10 : i32, message = "bqk,bkd->bqd"}> : () -> ()
    %cst_73 = arith.constant dense<0.000000e+00> : vector<2x8x8xf32>
    %199 = tpu.matmul %196, %198, %cst_73 {dimension_numbers = #tpu.dot_dimension_numbers<[2], [1], [1], [2], [0, 0, 0, 1, 1, 2], [0], [0]>} : vector<2x8x8xbf16>, vector<2x8x8xbf16>, vector<2x8x8xf32> -> vector<2x8x8xf32>
    "tpu.trace_stop"() : () -> ()
    %200 = tpu.reciprocal %195 {approx = true} : vector<2x8x1xf32> -> vector<2x8x1xf32>
    %201 = vector.broadcast %200 : vector<2x8x1xf32> to vector<2x8x8xf32>
    %202 = arith.mulf %199, %201 : vector<2x8x8xf32>
    %203 = vector.extract_strided_slice %181 {offsets = [0, 0, 8], sizes = [2, 8, 8], strides = [1, 1, 1]} : vector<2x8x32xf32> to vector<2x8x8xf32>
    %204 = arith.truncf %203 : vector<2x8x8xf32> to vector<2x8x8xbf16>
    %205 = vector.extract_strided_slice %182 {offsets = [0, 0, 8], sizes = [2, 8, 8], strides = [1, 1, 1]} : vector<2x8x32xf32> to vector<2x8x8xf32>
    %206 = arith.truncf %205 : vector<2x8x8xf32> to vector<2x8x8xbf16>
    "tpu.trace_start"() <{level = 10 : i32, message = "bqd,bkd->bqk"}> : () -> ()
    %cst_74 = arith.constant dense<0.000000e+00> : vector<2x8x8xf32>
    %207 = tpu.matmul %204, %206, %cst_74 {dimension_numbers = #tpu.dot_dimension_numbers<[2], [2], [1], [1], [0, 0, 0, 1, 1, 1], [0], [0]>} : vector<2x8x8xbf16>, vector<2x8x8xbf16>, vector<2x8x8xf32> -> vector<2x8x8xf32>
    "tpu.trace_stop"() : () -> ()
    %cst_75 = arith.constant dense<0xFF800000> : vector<2x8xf32>
    %208 = vector.multi_reduction <maximumf>, %207, %cst_75 [2] : vector<2x8x8xf32> to vector<2x8xf32>
    %209 = vector.shape_cast %208 : vector<2x8xf32> to vector<2x8x1xf32>
    %210 = vector.broadcast %209 : vector<2x8x1xf32> to vector<2x8x8xf32>
    %211 = arith.subf %207, %210 : vector<2x8x8xf32>
    %212 = math.exp %211 : vector<2x8x8xf32>
    %cst_76 = arith.constant dense<0.000000e+00> : vector<2x8xf32>
    %213 = vector.multi_reduction <add>, %212, %cst_76 [2] : vector<2x8x8xf32> to vector<2x8xf32>
    %214 = vector.shape_cast %213 : vector<2x8xf32> to vector<2x8x1xf32>
    %215 = arith.truncf %212 : vector<2x8x8xf32> to vector<2x8x8xbf16>
    %216 = vector.extract_strided_slice %183 {offsets = [0, 0, 8], sizes = [2, 8, 8], strides = [1, 1, 1]} : vector<2x8x32xf32> to vector<2x8x8xf32>
    %217 = arith.truncf %216 : vector<2x8x8xf32> to vector<2x8x8xbf16>
    "tpu.trace_start"() <{level = 10 : i32, message = "bqk,bkd->bqd"}> : () -> ()
    %cst_77 = arith.constant dense<0.000000e+00> : vector<2x8x8xf32>
    %218 = tpu.matmul %215, %217, %cst_77 {dimension_numbers = #tpu.dot_dimension_numbers<[2], [1], [1], [2], [0, 0, 0, 1, 1, 2], [0], [0]>} : vector<2x8x8xbf16>, vector<2x8x8xbf16>, vector<2x8x8xf32> -> vector<2x8x8xf32>
    "tpu.trace_stop"() : () -> ()
    %219 = tpu.reciprocal %214 {approx = true} : vector<2x8x1xf32> -> vector<2x8x1xf32>
    %220 = vector.broadcast %219 : vector<2x8x1xf32> to vector<2x8x8xf32>
    %221 = arith.mulf %218, %220 : vector<2x8x8xf32>
    %222 = vector.extract_strided_slice %181 {offsets = [0, 0, 16], sizes = [2, 8, 8], strides = [1, 1, 1]} : vector<2x8x32xf32> to vector<2x8x8xf32>
    %223 = arith.truncf %222 : vector<2x8x8xf32> to vector<2x8x8xbf16>
    %224 = vector.extract_strided_slice %182 {offsets = [0, 0, 16], sizes = [2, 8, 8], strides = [1, 1, 1]} : vector<2x8x32xf32> to vector<2x8x8xf32>
    %225 = arith.truncf %224 : vector<2x8x8xf32> to vector<2x8x8xbf16>
    "tpu.trace_start"() <{level = 10 : i32, message = "bqd,bkd->bqk"}> : () -> ()
    %cst_78 = arith.constant dense<0.000000e+00> : vector<2x8x8xf32>
    %226 = tpu.matmul %223, %225, %cst_78 {dimension_numbers = #tpu.dot_dimension_numbers<[2], [2], [1], [1], [0, 0, 0, 1, 1, 1], [0], [0]>} : vector<2x8x8xbf16>, vector<2x8x8xbf16>, vector<2x8x8xf32> -> vector<2x8x8xf32>
    "tpu.trace_stop"() : () -> ()
    %cst_79 = arith.constant dense<0xFF800000> : vector<2x8xf32>
    %227 = vector.multi_reduction <maximumf>, %226, %cst_79 [2] : vector<2x8x8xf32> to vector<2x8xf32>
    %228 = vector.shape_cast %227 : vector<2x8xf32> to vector<2x8x1xf32>
    %229 = vector.broadcast %228 : vector<2x8x1xf32> to vector<2x8x8xf32>
    %230 = arith.subf %226, %229 : vector<2x8x8xf32>
    %231 = math.exp %230 : vector<2x8x8xf32>
    %cst_80 = arith.constant dense<0.000000e+00> : vector<2x8xf32>
    %232 = vector.multi_reduction <add>, %231, %cst_80 [2] : vector<2x8x8xf32> to vector<2x8xf32>
    %233 = vector.shape_cast %232 : vector<2x8xf32> to vector<2x8x1xf32>
    %234 = arith.truncf %231 : vector<2x8x8xf32> to vector<2x8x8xbf16>
    %235 = vector.extract_strided_slice %183 {offsets = [0, 0, 16], sizes = [2, 8, 8], strides = [1, 1, 1]} : vector<2x8x32xf32> to vector<2x8x8xf32>
    %236 = arith.truncf %235 : vector<2x8x8xf32> to vector<2x8x8xbf16>
    "tpu.trace_start"() <{level = 10 : i32, message = "bqk,bkd->bqd"}> : () -> ()
    %cst_81 = arith.constant dense<0.000000e+00> : vector<2x8x8xf32>
    %237 = tpu.matmul %234, %236, %cst_81 {dimension_numbers = #tpu.dot_dimension_numbers<[2], [1], [1], [2], [0, 0, 0, 1, 1, 2], [0], [0]>} : vector<2x8x8xbf16>, vector<2x8x8xbf16>, vector<2x8x8xf32> -> vector<2x8x8xf32>
    "tpu.trace_stop"() : () -> ()
    %238 = tpu.reciprocal %233 {approx = true} : vector<2x8x1xf32> -> vector<2x8x1xf32>
    %239 = vector.broadcast %238 : vector<2x8x1xf32> to vector<2x8x8xf32>
    %240 = arith.mulf %237, %239 : vector<2x8x8xf32>
    %241 = vector.extract_strided_slice %181 {offsets = [0, 0, 24], sizes = [2, 8, 8], strides = [1, 1, 1]} : vector<2x8x32xf32> to vector<2x8x8xf32>
    %242 = arith.truncf %241 : vector<2x8x8xf32> to vector<2x8x8xbf16>
    %243 = vector.extract_strided_slice %182 {offsets = [0, 0, 24], sizes = [2, 8, 8], strides = [1, 1, 1]} : vector<2x8x32xf32> to vector<2x8x8xf32>
    %244 = arith.truncf %243 : vector<2x8x8xf32> to vector<2x8x8xbf16>
    "tpu.trace_start"() <{level = 10 : i32, message = "bqd,bkd->bqk"}> : () -> ()
    %cst_82 = arith.constant dense<0.000000e+00> : vector<2x8x8xf32>
    %245 = tpu.matmul %242, %244, %cst_82 {dimension_numbers = #tpu.dot_dimension_numbers<[2], [2], [1], [1], [0, 0, 0, 1, 1, 1], [0], [0]>} : vector<2x8x8xbf16>, vector<2x8x8xbf16>, vector<2x8x8xf32> -> vector<2x8x8xf32>
    "tpu.trace_stop"() : () -> ()
    %cst_83 = arith.constant dense<0xFF800000> : vector<2x8xf32>
    %246 = vector.multi_reduction <maximumf>, %245, %cst_83 [2] : vector<2x8x8xf32> to vector<2x8xf32>
    %247 = vector.shape_cast %246 : vector<2x8xf32> to vector<2x8x1xf32>
    %248 = vector.broadcast %247 : vector<2x8x1xf32> to vector<2x8x8xf32>
    %249 = arith.subf %245, %248 : vector<2x8x8xf32>
    %250 = math.exp %249 : vector<2x8x8xf32>
    %cst_84 = arith.constant dense<0.000000e+00> : vector<2x8xf32>
    %251 = vector.multi_reduction <add>, %250, %cst_84 [2] : vector<2x8x8xf32> to vector<2x8xf32>
    %252 = vector.shape_cast %251 : vector<2x8xf32> to vector<2x8x1xf32>
    %253 = arith.truncf %250 : vector<2x8x8xf32> to vector<2x8x8xbf16>
    %254 = vector.extract_strided_slice %183 {offsets = [0, 0, 24], sizes = [2, 8, 8], strides = [1, 1, 1]} : vector<2x8x32xf32> to vector<2x8x8xf32>
    %255 = arith.truncf %254 : vector<2x8x8xf32> to vector<2x8x8xbf16>
    "tpu.trace_start"() <{level = 10 : i32, message = "bqk,bkd->bqd"}> : () -> ()
    %cst_85 = arith.constant dense<0.000000e+00> : vector<2x8x8xf32>
    %256 = tpu.matmul %253, %255, %cst_85 {dimension_numbers = #tpu.dot_dimension_numbers<[2], [1], [1], [2], [0, 0, 0, 1, 1, 2], [0], [0]>} : vector<2x8x8xbf16>, vector<2x8x8xbf16>, vector<2x8x8xf32> -> vector<2x8x8xf32>
    "tpu.trace_stop"() : () -> ()
    %257 = tpu.reciprocal %252 {approx = true} : vector<2x8x1xf32> -> vector<2x8x1xf32>
    %258 = vector.broadcast %257 : vector<2x8x1xf32> to vector<2x8x8xf32>
    %259 = arith.mulf %256, %258 : vector<2x8x8xf32>
    %260 = tpu.concatenate %202, %221, %240, %259 in 2 : vector<2x8x8xf32>, vector<2x8x8xf32>, vector<2x8x8xf32>, vector<2x8x8xf32> -> vector<2x8x32xf32>
    %261 = vector.shape_cast %260 : vector<2x8x32xf32> to vector<16x32xf32>
    %262 = arith.truncf %261 : vector<16x32xf32> to vector<16x32xbf16>
    %cst_86 = arith.constant dense<0.000000e+00> : vector<16x32xf32>
    %263 = tpu.matmul %262, %164, %cst_86 {dimension_numbers = #tpu.dot_dimension_numbers<[1], [0], [0], [1], [0, 0, 1, 1], [], []>} : vector<16x32xbf16>, vector<32x32xbf16>, vector<16x32xf32> -> vector<16x32xf32>
    %264 = vector.broadcast %166 : vector<1x32xf32> to vector<16x32xf32>
    %265 = arith.addf %263, %264 : vector<16x32xf32>
    %266 = arith.addf %132, %265 : vector<16x32xf32>
    %c0_87 = arith.constant 0 : index
    %c0_88 = arith.constant 0 : index
    %c0_89 = arith.constant 0 : index
    %267 = vector.load %arg17[%c0_87, %c0_88, %c0_89] : memref<1x1x32xf32, #tpu.memory_space<vmem>>, vector<1x1x32xf32>
    %268 = vector.shape_cast %267 : vector<1x1x32xf32> to vector<1x32xf32>
    %c0_90 = arith.constant 0 : index
    %c0_91 = arith.constant 0 : index
    %c0_92 = arith.constant 0 : index
    %269 = vector.load %arg18[%c0_90, %c0_91, %c0_92] : memref<1x1x32xf32, #tpu.memory_space<vmem>>, vector<1x1x32xf32>
    %270 = vector.shape_cast %269 : vector<1x1x32xf32> to vector<1x32xf32>
    %cst_93 = arith.constant dense<0.000000e+00> : vector<16xf32>
    %271 = vector.multi_reduction <add>, %266, %cst_93 [1] : vector<16x32xf32> to vector<16xf32>
    %272 = vector.shape_cast %271 : vector<16xf32> to vector<16x1xf32>
    %cst_94 = arith.constant 3.200000e+01 : f32
    %273 = vector.broadcast %cst_94 : f32 to vector<16x1xf32>
    %274 = arith.divf %272, %273 : vector<16x1xf32>
    %275 = vector.broadcast %274 : vector<16x1xf32> to vector<16x32xf32>
    %276 = arith.subf %266, %275 : vector<16x32xf32>
    %277 = arith.mulf %276, %276 : vector<16x32xf32>
    %cst_95 = arith.constant dense<0.000000e+00> : vector<16xf32>
    %278 = vector.multi_reduction <add>, %277, %cst_95 [1] : vector<16x32xf32> to vector<16xf32>
    %279 = vector.shape_cast %278 : vector<16xf32> to vector<16x1xf32>
    %cst_96 = arith.constant 3.200000e+01 : f32
    %280 = vector.broadcast %cst_96 : f32 to vector<16x1xf32>
    %281 = arith.divf %279, %280 : vector<16x1xf32>
    %282 = vector.broadcast %274 : vector<16x1xf32> to vector<16x32xf32>
    %283 = arith.subf %266, %282 : vector<16x32xf32>
    %cst_97 = arith.constant 9.99999974E-6 : f32
    %284 = vector.broadcast %cst_97 : f32 to vector<16x1xf32>
    %285 = arith.addf %281, %284 : vector<16x1xf32>
    %286 = math.rsqrt %285 : vector<16x1xf32>
    %287 = vector.broadcast %286 : vector<16x1xf32> to vector<16x32xf32>
    %288 = arith.mulf %283, %287 : vector<16x32xf32>
    %289 = vector.broadcast %268 : vector<1x32xf32> to vector<16x32xf32>
    %290 = arith.mulf %288, %289 : vector<16x32xf32>
    %291 = vector.broadcast %270 : vector<1x32xf32> to vector<16x32xf32>
    %292 = arith.addf %290, %291 : vector<16x32xf32>
    %c0_98 = arith.constant 0 : index
    %c0_99 = arith.constant 0 : index
    %c0_100 = arith.constant 0 : index
    %293 = vector.load %arg19[%c0_98, %c0_99, %c0_100] : memref<1x32x128xbf16, #tpu.memory_space<vmem>>, vector<1x32x128xbf16>
    %294 = vector.shape_cast %293 : vector<1x32x128xbf16> to vector<32x128xbf16>
    %c0_101 = arith.constant 0 : index
    %c0_102 = arith.constant 0 : index
    %c0_103 = arith.constant 0 : index
    %295 = vector.load %arg20[%c0_101, %c0_102, %c0_103] : memref<1x1x128xf32, #tpu.memory_space<vmem>>, vector<1x1x128xf32>
    %296 = vector.shape_cast %295 : vector<1x1x128xf32> to vector<1x128xf32>
    %c0_104 = arith.constant 0 : index
    %c0_105 = arith.constant 0 : index
    %c0_106 = arith.constant 0 : index
    %297 = vector.load %arg21[%c0_104, %c0_105, %c0_106] : memref<1x128x32xbf16, #tpu.memory_space<vmem>>, vector<1x128x32xbf16>
    %298 = vector.shape_cast %297 : vector<1x128x32xbf16> to vector<128x32xbf16>
    %c0_107 = arith.constant 0 : index
    %c0_108 = arith.constant 0 : index
    %c0_109 = arith.constant 0 : index
    %299 = vector.load %arg22[%c0_107, %c0_108, %c0_109] : memref<1x1x32xf32, #tpu.memory_space<vmem>>, vector<1x1x32xf32>
    %300 = vector.shape_cast %299 : vector<1x1x32xf32> to vector<1x32xf32>
    %301 = arith.truncf %292 : vector<16x32xf32> to vector<16x32xbf16>
    %cst_110 = arith.constant dense<0.000000e+00> : vector<16x128xf32>
    %302 = tpu.matmul %301, %294, %cst_110 {dimension_numbers = #tpu.dot_dimension_numbers<[1], [0], [0], [1], [0, 0, 1, 1], [], []>} : vector<16x32xbf16>, vector<32x128xbf16>, vector<16x128xf32> -> vector<16x128xf32>
    %303 = vector.broadcast %296 : vector<1x128xf32> to vector<16x128xf32>
    %304 = arith.addf %302, %303 : vector<16x128xf32>
    %cst_111 = arith.constant 0.000000e+00 : f32
    %305 = vector.broadcast %cst_111 : f32 to vector<16x128xf32>
    %306 = arith.maximumf %304, %305 : vector<16x128xf32>
    %307 = arith.truncf %306 : vector<16x128xf32> to vector<16x128xbf16>
    %cst_112 = arith.constant dense<0.000000e+00> : vector<16x32xf32>
    %308 = tpu.matmul %307, %298, %cst_112 {dimension_numbers = #tpu.dot_dimension_numbers<[1], [0], [0], [1], [0, 0, 1, 1], [], []>} : vector<16x128xbf16>, vector<128x32xbf16>, vector<16x32xf32> -> vector<16x32xf32>
    %309 = vector.broadcast %300 : vector<1x32xf32> to vector<16x32xf32>
    %310 = arith.addf %308, %309 : vector<16x32xf32>
    %311 = arith.addf %266, %310 : vector<16x32xf32>
    %c0_113 = arith.constant 0 : index
    %c0_114 = arith.constant 0 : index
    %312 = vector.load %arg26[%c0_113, %c0_114] : memref<16x32xf32, #tpu.memory_space<vmem>>, vector<16x32xf32>
    tpu.vector_store %arg26[%c0_113, %c0_114], %311 {strides = array<i32>} : memref<16x32xf32, #tpu.memory_space<vmem>>, vector<16x32xf32>,
    %c1_i32 = arith.constant 1 : i32
    %313 = arith.cmpi eq, %arg0, %c1_i32 : i32
    %314 = arith.extui %313 : i1 to i32
    %c0_i32_115 = arith.constant 0 : i32
    %315 = arith.cmpi ne, %314, %c0_i32_115 : i32
    scf.if %315 {
      %c0_116 = arith.constant 0 : index
      %c0_117 = arith.constant 0 : index
      %316 = vector.load %arg23[%c0_116, %c0_117] : memref<1x32xf32, #tpu.memory_space<vmem>>, vector<1x32xf32>
      %c0_118 = arith.constant 0 : index
      %c0_119 = arith.constant 0 : index
      %317 = vector.load %arg24[%c0_118, %c0_119] : memref<1x32xf32, #tpu.memory_space<vmem>>, vector<1x32xf32>
      %cst_120 = arith.constant dense<0.000000e+00> : vector<16xf32>
      %318 = vector.multi_reduction <add>, %311, %cst_120 [1] : vector<16x32xf32> to vector<16xf32>
      %319 = vector.shape_cast %318 : vector<16xf32> to vector<16x1xf32>
      %cst_121 = arith.constant 3.200000e+01 : f32
      %320 = vector.broadcast %cst_121 : f32 to vector<16x1xf32>
      %321 = arith.divf %319, %320 : vector<16x1xf32>
      %322 = vector.broadcast %321 : vector<16x1xf32> to vector<16x32xf32>
      %323 = arith.subf %311, %322 : vector<16x32xf32>
      %324 = arith.mulf %323, %323 : vector<16x32xf32>
      %cst_122 = arith.constant dense<0.000000e+00> : vector<16xf32>
      %325 = vector.multi_reduction <add>, %324, %cst_122 [1] : vector<16x32xf32> to vector<16xf32>
      %326 = vector.shape_cast %325 : vector<16xf32> to vector<16x1xf32>
      %cst_123 = arith.constant 3.200000e+01 : f32
      %327 = vector.broadcast %cst_123 : f32 to vector<16x1xf32>
      %328 = arith.divf %326, %327 : vector<16x1xf32>
      %329 = vector.broadcast %321 : vector<16x1xf32> to vector<16x32xf32>
      %330 = arith.subf %311, %329 : vector<16x32xf32>
      %cst_124 = arith.constant 9.99999974E-6 : f32
      %331 = vector.broadcast %cst_124 : f32 to vector<16x1xf32>
      %332 = arith.addf %328, %331 : vector<16x1xf32>
      %333 = math.rsqrt %332 : vector<16x1xf32>
      %334 = vector.broadcast %333 : vector<16x1xf32> to vector<16x32xf32>
      %335 = arith.mulf %330, %334 : vector<16x32xf32>
      %336 = vector.broadcast %316 : vector<1x32xf32> to vector<16x32xf32>
      %337 = arith.mulf %335, %336 : vector<16x32xf32>
      %338 = vector.broadcast %317 : vector<1x32xf32> to vector<16x32xf32>
      %339 = arith.addf %337, %338 : vector<16x32xf32>
      %340 = vector.shape_cast %339 : vector<16x32xf32> to vector<2x8x32xf32>
      %c0_125 = arith.constant 0 : index
      %c0_126 = arith.constant 0 : index
      %c0_127 = arith.constant 0 : index
      %341 = vector.load %arg25[%c0_125, %c0_126, %c0_127] : memref<2x8x32xf32, #tpu.memory_space<vmem>>, vector<2x8x32xf32>
      tpu.vector_store %arg25[%c0_125, %c0_126, %c0_127], %340 {strides = array<i32>} : memref<2x8x32xf32, #tpu.memory_space<vmem>>, vector<2x8x32xf32>,
    } else {
    }
    return
  }
  func.func @transform_0(%arg0: i32) -> (i32, i32) {
    %c0_i32 = arith.constant 0 : i32
    %c0_i32_0 = arith.constant 0 : i32
    %c0_i32_1 = arith.constant 0 : i32
    return %c0_i32, %c0_i32_0 : i32, i32
  }
  func.func @transform_1(%arg0: i32) -> (i32, i32) {
    %c0_i32 = arith.constant 0 : i32
    %c0_i32_0 = arith.constant 0 : i32
    %c0_i32_1 = arith.constant 0 : i32
    return %c0_i32, %c0_i32_0 : i32, i32
  }
  func.func @transform_2(%arg0: i32) -> (i32, i32) {
    %c0_i32 = arith.constant 0 : i32
    %c0_i32_0 = arith.constant 0 : i32
    %c0_i32_1 = arith.constant 0 : i32
    return %c0_i32, %c0_i32_0 : i32, i32
  }
  func.func @transform_3(%arg0: i32) -> (i32, i32, i32) {
    %c0_i32 = arith.constant 0 : i32
    %c0_i32_0 = arith.constant 0 : i32
    %c0_i32_1 = arith.constant 0 : i32
    %c0_i32_2 = arith.constant 0 : i32
    return %c0_i32, %c0_i32_0, %c0_i32_1 : i32, i32, i32
  }
  func.func @transform_4(%arg0: i32) -> (i32, i32, i32) {
    %c0_i32 = arith.constant 0 : i32
    %c0_i32_0 = arith.constant 0 : i32
    %c0_i32_1 = arith.constant 0 : i32
    return %arg0, %c0_i32, %c0_i32_0 : i32, i32, i32
  }
  func.func @transform_5(%arg0: i32) -> (i32, i32, i32) {
    %c0_i32 = arith.constant 0 : i32
    %c0_i32_0 = arith.constant 0 : i32
    %c0_i32_1 = arith.constant 0 : i32
    return %arg0, %c0_i32, %c0_i32_0 : i32, i32, i32
  }
  func.func @transform_6(%arg0: i32) -> (i32, i32, i32) {
    %c0_i32 = arith.constant 0 : i32
    %c0_i32_0 = arith.constant 0 : i32
    %c0_i32_1 = arith.constant 0 : i32
    return %arg0, %c0_i32, %c0_i32_0 : i32, i32, i32
  }
  func.func @transform_7(%arg0: i32) -> (i32, i32, i32) {
    %c0_i32 = arith.constant 0 : i32
    %c0_i32_0 = arith.constant 0 : i32
    %c0_i32_1 = arith.constant 0 : i32
    return %arg0, %c0_i32, %c0_i32_0 : i32, i32, i32
  }
  func.func @transform_8(%arg0: i32) -> (i32, i32, i32) {
    %c0_i32 = arith.constant 0 : i32
    %c0_i32_0 = arith.constant 0 : i32
    %c0_i32_1 = arith.constant 0 : i32
    return %arg0, %c0_i32, %c0_i32_0 : i32, i32, i32
  }
  func.func @transform_9(%arg0: i32) -> (i32, i32, i32) {
    %c0_i32 = arith.constant 0 : i32
    %c0_i32_0 = arith.constant 0 : i32
    %c0_i32_1 = arith.constant 0 : i32
    return %arg0, %c0_i32, %c0_i32_0 : i32, i32, i32
  }
  func.func @transform_10(%arg0: i32) -> (i32, i32, i32) {
    %c0_i32 = arith.constant 0 : i32
    %c0_i32_0 = arith.constant 0 : i32
    %c0_i32_1 = arith.constant 0 : i32
    return %arg0, %c0_i32, %c0_i32_0 : i32, i32, i32
  }
  func.func @transform_11(%arg0: i32) -> (i32, i32, i32) {
    %c0_i32 = arith.constant 0 : i32
    %c0_i32_0 = arith.constant 0 : i32
    %c0_i32_1 = arith.constant 0 : i32
    return %arg0, %c0_i32, %c0_i32_0 : i32, i32, i32
  }
  func.func @transform_12(%arg0: i32) -> (i32, i32, i32) {
    %c0_i32 = arith.constant 0 : i32
    %c0_i32_0 = arith.constant 0 : i32
    %c0_i32_1 = arith.constant 0 : i32
    return %arg0, %c0_i32, %c0_i32_0 : i32, i32, i32
  }
  func.func @transform_13(%arg0: i32) -> (i32, i32, i32) {
    %c0_i32 = arith.constant 0 : i32
    %c0_i32_0 = arith.constant 0 : i32
    %c0_i32_1 = arith.constant 0 : i32
    return %arg0, %c0_i32, %c0_i32_0 : i32, i32, i32
  }
  func.func @transform_14(%arg0: i32) -> (i32, i32, i32) {
    %c0_i32 = arith.constant 0 : i32
    %c0_i32_0 = arith.constant 0 : i32
    %c0_i32_1 = arith.constant 0 : i32
    return %arg0, %c0_i32, %c0_i32_0 : i32, i32, i32
  }
  func.func @transform_15(%arg0: i32) -> (i32, i32, i32) {
    %c0_i32 = arith.constant 0 : i32
    %c0_i32_0 = arith.constant 0 : i32
    %c0_i32_1 = arith.constant 0 : i32
    return %arg0, %c0_i32, %c0_i32_0 : i32, i32, i32
  }
  func.func @transform_16(%arg0: i32) -> (i32, i32, i32) {
    %c0_i32 = arith.constant 0 : i32
    %c0_i32_0 = arith.constant 0 : i32
    %c0_i32_1 = arith.constant 0 : i32
    return %arg0, %c0_i32, %c0_i32_0 : i32, i32, i32
  }
  func.func @transform_17(%arg0: i32) -> (i32, i32, i32) {
    %c0_i32 = arith.constant 0 : i32
    %c0_i32_0 = arith.constant 0 : i32
    %c0_i32_1 = arith.constant 0 : i32
    return %arg0, %c0_i32, %c0_i32_0 : i32, i32, i32
  }
  func.func @transform_18(%arg0: i32) -> (i32, i32, i32) {
    %c0_i32 = arith.constant 0 : i32
    %c0_i32_0 = arith.constant 0 : i32
    %c0_i32_1 = arith.constant 0 : i32
    return %arg0, %c0_i32, %c0_i32_0 : i32, i32, i32
  }
  func.func @transform_19(%arg0: i32) -> (i32, i32, i32) {
    %c0_i32 = arith.constant 0 : i32
    %c0_i32_0 = arith.constant 0 : i32
    %c0_i32_1 = arith.constant 0 : i32
    return %arg0, %c0_i32, %c0_i32_0 : i32, i32, i32
  }
  func.func @transform_20(%arg0: i32) -> (i32, i32, i32) {
    %c0_i32 = arith.constant 0 : i32
    %c0_i32_0 = arith.constant 0 : i32
    %c0_i32_1 = arith.constant 0 : i32
    return %arg0, %c0_i32, %c0_i32_0 : i32, i32, i32
  }
  func.func @transform_21(%arg0: i32) -> (i32, i32, i32) {
    %c0_i32 = arith.constant 0 : i32
    %c0_i32_0 = arith.constant 0 : i32
    %c0_i32_1 = arith.constant 0 : i32
    return %arg0, %c0_i32, %c0_i32_0 : i32, i32, i32
  }
  func.func @transform_22(%arg0: i32) -> (i32, i32) {
    %c0_i32 = arith.constant 0 : i32
    %c0_i32_0 = arith.constant 0 : i32
    %c0_i32_1 = arith.constant 0 : i32
    return %c0_i32, %c0_i32_0 : i32, i32
  }
  func.func @transform_23(%arg0: i32) -> (i32, i32) {
    %c0_i32 = arith.constant 0 : i32
    %c0_i32_0 = arith.constant 0 : i32
    %c0_i32_1 = arith.constant 0 : i32
    return %c0_i32, %c0_i32_0 : i32, i32
  }
  func.func @transform_24(%arg0: i32) -> (i32, i32, i32) {
    %c0_i32 = arith.constant 0 : i32
    %c0_i32_0 = arith.constant 0 : i32
    %c0_i32_1 = arith.constant 0 : i32
    %c0_i32_2 = arith.constant 0 : i32
    return %c0_i32, %c0_i32_0, %c0_i32_1 : i32, i32, i32
  }
}

module attributes {stable_mosaic.version = 11 : i64} {
  func.func @_encoder_stack_kernel(%arg0: i32, %arg1: memref<2x8x32xf32, #tpu.memory_space<vmem>>, %arg2: memref<32x32xbf16, #tpu.memory_space<vmem>>, %arg3: memref<1x32xf32, #tpu.memory_space<vmem>>, %arg4: memref<1x8x32xf32, #tpu.memory_space<vmem>>, %arg5: memref<1x1x32xf32, #tpu.memory_space<vmem>>, %arg6: memref<1x1x32xf32, #tpu.memory_space<vmem>>, %arg7: memref<1x32x96xbf16, #tpu.memory_space<vmem>>, %arg8: memref<1x1x96xf32, #tpu.memory_space<vmem>>, %arg9: memref<1x32x32xbf16, #tpu.memory_space<vmem>>, %arg10: memref<1x1x32xf32, #tpu.memory_space<vmem>>, %arg11: memref<1x1x32xf32, #tpu.memory_space<vmem>>, %arg12: memref<1x1x32xf32, #tpu.memory_space<vmem>>, %arg13: memref<1x32x128xbf16, #tpu.memory_space<vmem>>, %arg14: memref<1x1x128xf32, #tpu.memory_space<vmem>>, %arg15: memref<1x128x32xbf16, #tpu.memory_space<vmem>>, %arg16: memref<1x1x32xf32, #tpu.memory_space<vmem>>, %arg17: memref<1x32xf32, #tpu.memory_space<vmem>>, %arg18: memref<1x32xf32, #tpu.memory_space<vmem>>, %arg19: memref<2x8x32xf32, #tpu.memory_space<vmem>>, %arg20: memref<16x32xf32, #tpu.memory_space<vmem>>) attributes {dimension_semantics = [#tpu.dimension_semantics<arbitrary>], iteration_bounds = array<i64: 2>, scalar_prefetch = 0 : i64, scratch_operands = 1 : i64, tpu.core_type = #tpu.core_type<tc>, window_params = [{pipeline_mode = #tpu.pipeline_mode<synchronous>, transform_indices = @transform_0, window_bounds = array<i64: 2, 8, 32>}, {pipeline_mode = #tpu.pipeline_mode<synchronous>, transform_indices = @transform_1, window_bounds = array<i64: 32, 32>}, {pipeline_mode = #tpu.pipeline_mode<synchronous>, transform_indices = @transform_2, window_bounds = array<i64: 1, 32>}, {pipeline_mode = #tpu.pipeline_mode<synchronous>, transform_indices = @transform_3, window_bounds = array<i64: 1, 8, 32>}, {transform_indices = @transform_4, window_bounds = array<i64: 1, 1, 32>}, {transform_indices = @transform_5, window_bounds = array<i64: 1, 1, 32>}, {transform_indices = @transform_6, window_bounds = array<i64: 1, 32, 96>}, {transform_indices = @transform_7, window_bounds = array<i64: 1, 1, 96>}, {transform_indices = @transform_8, window_bounds = array<i64: 1, 32, 32>}, {transform_indices = @transform_9, window_bounds = array<i64: 1, 1, 32>}, {transform_indices = @transform_10, window_bounds = array<i64: 1, 1, 32>}, {transform_indices = @transform_11, window_bounds = array<i64: 1, 1, 32>}, {transform_indices = @transform_12, window_bounds = array<i64: 1, 32, 128>}, {transform_indices = @transform_13, window_bounds = array<i64: 1, 1, 128>}, {transform_indices = @transform_14, window_bounds = array<i64: 1, 128, 32>}, {transform_indices = @transform_15, window_bounds = array<i64: 1, 1, 32>}, {pipeline_mode = #tpu.pipeline_mode<synchronous>, transform_indices = @transform_16, window_bounds = array<i64: 1, 32>}, {pipeline_mode = #tpu.pipeline_mode<synchronous>, transform_indices = @transform_17, window_bounds = array<i64: 1, 32>}, {pipeline_mode = #tpu.pipeline_mode<synchronous>, transform_indices = @transform_18, window_bounds = array<i64: 2, 8, 32>}]} {
    %c0_i32 = arith.constant 0 : i32
    %0 = arith.cmpi eq, %arg0, %c0_i32 : i32
    %1 = arith.extui %0 : i1 to i32
    %c0_i32_0 = arith.constant 0 : i32
    %2 = arith.cmpi ne, %1, %c0_i32_0 : i32
    scf.if %2 {
      %c0_71 = arith.constant 0 : index
      %c0_72 = arith.constant 0 : index
      %c0_73 = arith.constant 0 : index
      %180 = vector.load %arg1[%c0_71, %c0_72, %c0_73] : memref<2x8x32xf32, #tpu.memory_space<vmem>>, vector<2x8x32xf32>
      %181 = vector.shape_cast %180 : vector<2x8x32xf32> to vector<16x32xf32>
      %182 = arith.truncf %181 : vector<16x32xf32> to vector<16x32xbf16>
      %c0_74 = arith.constant 0 : index
      %c0_75 = arith.constant 0 : index
      %183 = vector.load %arg2[%c0_74, %c0_75] : memref<32x32xbf16, #tpu.memory_space<vmem>>, vector<32x32xbf16>
      %cst_76 = arith.constant dense<0.000000e+00> : vector<16x32xf32>
      %184 = tpu.matmul %182, %183, %cst_76 {dimension_numbers = #tpu.dot_dimension_numbers<[1], [0], [0], [1], [0, 0, 1, 1], [], []>} : vector<16x32xbf16>, vector<32x32xbf16>, vector<16x32xf32> -> vector<16x32xf32>
      %c0_77 = arith.constant 0 : index
      %c0_78 = arith.constant 0 : index
      %185 = vector.load %arg3[%c0_77, %c0_78] : memref<1x32xf32, #tpu.memory_space<vmem>>, vector<1x32xf32>
      %186 = vector.broadcast %185 : vector<1x32xf32> to vector<16x32xf32>
      %187 = arith.addf %184, %186 : vector<16x32xf32>
      %188 = vector.shape_cast %187 : vector<16x32xf32> to vector<2x8x32xf32>
      %c0_79 = arith.constant 0 : index
      %c0_80 = arith.constant 0 : index
      %c0_81 = arith.constant 0 : index
      %189 = vector.load %arg4[%c0_79, %c0_80, %c0_81] : memref<1x8x32xf32, #tpu.memory_space<vmem>>, vector<1x8x32xf32>
      %190 = vector.shape_cast %189 : vector<1x8x32xf32> to vector<8x32xf32>
      %191 = vector.shape_cast %190 : vector<8x32xf32> to vector<1x8x32xf32>
      %192 = vector.broadcast %191 : vector<1x8x32xf32> to vector<2x8x32xf32>
      %193 = arith.addf %188, %192 : vector<2x8x32xf32>
      %194 = vector.shape_cast %193 : vector<2x8x32xf32> to vector<16x32xf32>
      %c0_82 = arith.constant 0 : index
      %c0_83 = arith.constant 0 : index
      %195 = vector.load %arg20[%c0_82, %c0_83] : memref<16x32xf32, #tpu.memory_space<vmem>>, vector<16x32xf32>
      tpu.vector_store %arg20[%c0_82, %c0_83], %194 {strides = array<i32>} : memref<16x32xf32, #tpu.memory_space<vmem>>, vector<16x32xf32>,
    } else {
    }
    %c0 = arith.constant 0 : index
    %c0_1 = arith.constant 0 : index
    %3 = vector.load %arg20[%c0, %c0_1] : memref<16x32xf32, #tpu.memory_space<vmem>>, vector<16x32xf32>
    %c0_2 = arith.constant 0 : index
    %c0_3 = arith.constant 0 : index
    %c0_4 = arith.constant 0 : index
    %4 = vector.load %arg5[%c0_2, %c0_3, %c0_4] : memref<1x1x32xf32, #tpu.memory_space<vmem>>, vector<1x1x32xf32>
    %5 = vector.shape_cast %4 : vector<1x1x32xf32> to vector<1x32xf32>
    %c0_5 = arith.constant 0 : index
    %c0_6 = arith.constant 0 : index
    %c0_7 = arith.constant 0 : index
    %6 = vector.load %arg6[%c0_5, %c0_6, %c0_7] : memref<1x1x32xf32, #tpu.memory_space<vmem>>, vector<1x1x32xf32>
    %7 = vector.shape_cast %6 : vector<1x1x32xf32> to vector<1x32xf32>
    %cst = arith.constant dense<0.000000e+00> : vector<16xf32>
    %8 = vector.multi_reduction <add>, %3, %cst [1] : vector<16x32xf32> to vector<16xf32>
    %9 = vector.shape_cast %8 : vector<16xf32> to vector<16x1xf32>
    %cst_8 = arith.constant 3.200000e+01 : f32
    %10 = vector.broadcast %cst_8 : f32 to vector<16x1xf32>
    %11 = arith.divf %9, %10 : vector<16x1xf32>
    %12 = vector.broadcast %11 : vector<16x1xf32> to vector<16x32xf32>
    %13 = arith.subf %3, %12 : vector<16x32xf32>
    %14 = arith.mulf %13, %13 : vector<16x32xf32>
    %cst_9 = arith.constant dense<0.000000e+00> : vector<16xf32>
    %15 = vector.multi_reduction <add>, %14, %cst_9 [1] : vector<16x32xf32> to vector<16xf32>
    %16 = vector.shape_cast %15 : vector<16xf32> to vector<16x1xf32>
    %cst_10 = arith.constant 3.200000e+01 : f32
    %17 = vector.broadcast %cst_10 : f32 to vector<16x1xf32>
    %18 = arith.divf %16, %17 : vector<16x1xf32>
    %19 = vector.broadcast %11 : vector<16x1xf32> to vector<16x32xf32>
    %20 = arith.subf %3, %19 : vector<16x32xf32>
    %cst_11 = arith.constant 9.99999974E-6 : f32
    %21 = vector.broadcast %cst_11 : f32 to vector<16x1xf32>
    %22 = arith.addf %18, %21 : vector<16x1xf32>
    %23 = math.rsqrt %22 : vector<16x1xf32>
    %24 = vector.broadcast %23 : vector<16x1xf32> to vector<16x32xf32>
    %25 = arith.mulf %20, %24 : vector<16x32xf32>
    %26 = vector.broadcast %5 : vector<1x32xf32> to vector<16x32xf32>
    %27 = arith.mulf %25, %26 : vector<16x32xf32>
    %28 = vector.broadcast %7 : vector<1x32xf32> to vector<16x32xf32>
    %29 = arith.addf %27, %28 : vector<16x32xf32>
    %c0_12 = arith.constant 0 : index
    %c0_13 = arith.constant 0 : index
    %c0_14 = arith.constant 0 : index
    %30 = vector.load %arg7[%c0_12, %c0_13, %c0_14] : memref<1x32x96xbf16, #tpu.memory_space<vmem>>, vector<1x32x96xbf16>
    %31 = vector.shape_cast %30 : vector<1x32x96xbf16> to vector<32x96xbf16>
    %c0_15 = arith.constant 0 : index
    %c0_16 = arith.constant 0 : index
    %c0_17 = arith.constant 0 : index
    %32 = vector.load %arg8[%c0_15, %c0_16, %c0_17] : memref<1x1x96xf32, #tpu.memory_space<vmem>>, vector<1x1x96xf32>
    %33 = vector.shape_cast %32 : vector<1x1x96xf32> to vector<1x96xf32>
    %c0_18 = arith.constant 0 : index
    %c0_19 = arith.constant 0 : index
    %c0_20 = arith.constant 0 : index
    %34 = vector.load %arg9[%c0_18, %c0_19, %c0_20] : memref<1x32x32xbf16, #tpu.memory_space<vmem>>, vector<1x32x32xbf16>
    %35 = vector.shape_cast %34 : vector<1x32x32xbf16> to vector<32x32xbf16>
    %c0_21 = arith.constant 0 : index
    %c0_22 = arith.constant 0 : index
    %c0_23 = arith.constant 0 : index
    %36 = vector.load %arg10[%c0_21, %c0_22, %c0_23] : memref<1x1x32xf32, #tpu.memory_space<vmem>>, vector<1x1x32xf32>
    %37 = vector.shape_cast %36 : vector<1x1x32xf32> to vector<1x32xf32>
    %38 = arith.truncf %29 : vector<16x32xf32> to vector<16x32xbf16>
    %cst_24 = arith.constant dense<0.000000e+00> : vector<16x96xf32>
    %39 = tpu.matmul %38, %31, %cst_24 {dimension_numbers = #tpu.dot_dimension_numbers<[1], [0], [0], [1], [0, 0, 1, 1], [], []>} : vector<16x32xbf16>, vector<32x96xbf16>, vector<16x96xf32> -> vector<16x96xf32>
    %40 = vector.broadcast %33 : vector<1x96xf32> to vector<16x96xf32>
    %41 = arith.addf %39, %40 : vector<16x96xf32>
    %42 = vector.extract_strided_slice %41 {offsets = [0, 0], sizes = [16, 32], strides = [1, 1]} : vector<16x96xf32> to vector<16x32xf32>
    %43 = vector.extract_strided_slice %41 {offsets = [0, 32], sizes = [16, 32], strides = [1, 1]} : vector<16x96xf32> to vector<16x32xf32>
    %44 = vector.extract_strided_slice %41 {offsets = [0, 64], sizes = [16, 32], strides = [1, 1]} : vector<16x96xf32> to vector<16x32xf32>
    %45 = vector.shape_cast %42 : vector<16x32xf32> to vector<2x8x32xf32>
    %46 = vector.shape_cast %43 : vector<16x32xf32> to vector<2x8x32xf32>
    %47 = vector.shape_cast %44 : vector<16x32xf32> to vector<2x8x32xf32>
    %48 = vector.extract_strided_slice %45 {offsets = [0, 0, 0], sizes = [2, 8, 8], strides = [1, 1, 1]} : vector<2x8x32xf32> to vector<2x8x8xf32>
    %49 = arith.truncf %48 : vector<2x8x8xf32> to vector<2x8x8xbf16>
    %50 = vector.extract_strided_slice %46 {offsets = [0, 0, 0], sizes = [2, 8, 8], strides = [1, 1, 1]} : vector<2x8x32xf32> to vector<2x8x8xf32>
    %51 = arith.truncf %50 : vector<2x8x8xf32> to vector<2x8x8xbf16>
    "tpu.trace_start"() <{level = 10 : i32, message = "bqd,bkd->bqk"}> : () -> ()
    %cst_25 = arith.constant dense<0.000000e+00> : vector<2x8x8xf32>
    %52 = tpu.matmul %49, %51, %cst_25 {dimension_numbers = #tpu.dot_dimension_numbers<[2], [2], [1], [1], [0, 0, 0, 1, 1, 1], [0], [0]>} : vector<2x8x8xbf16>, vector<2x8x8xbf16>, vector<2x8x8xf32> -> vector<2x8x8xf32>
    "tpu.trace_stop"() : () -> ()
    %cst_26 = arith.constant dense<0xFF800000> : vector<2x8xf32>
    %53 = vector.multi_reduction <maximumf>, %52, %cst_26 [2] : vector<2x8x8xf32> to vector<2x8xf32>
    %54 = vector.shape_cast %53 : vector<2x8xf32> to vector<2x8x1xf32>
    %55 = vector.broadcast %54 : vector<2x8x1xf32> to vector<2x8x8xf32>
    %56 = arith.subf %52, %55 : vector<2x8x8xf32>
    %57 = math.exp %56 : vector<2x8x8xf32>
    %cst_27 = arith.constant dense<0.000000e+00> : vector<2x8xf32>
    %58 = vector.multi_reduction <add>, %57, %cst_27 [2] : vector<2x8x8xf32> to vector<2x8xf32>
    %59 = vector.shape_cast %58 : vector<2x8xf32> to vector<2x8x1xf32>
    %60 = arith.truncf %57 : vector<2x8x8xf32> to vector<2x8x8xbf16>
    %61 = vector.extract_strided_slice %47 {offsets = [0, 0, 0], sizes = [2, 8, 8], strides = [1, 1, 1]} : vector<2x8x32xf32> to vector<2x8x8xf32>
    %62 = arith.truncf %61 : vector<2x8x8xf32> to vector<2x8x8xbf16>
    "tpu.trace_start"() <{level = 10 : i32, message = "bqk,bkd->bqd"}> : () -> ()
    %cst_28 = arith.constant dense<0.000000e+00> : vector<2x8x8xf32>
    %63 = tpu.matmul %60, %62, %cst_28 {dimension_numbers = #tpu.dot_dimension_numbers<[2], [1], [1], [2], [0, 0, 0, 1, 1, 2], [0], [0]>} : vector<2x8x8xbf16>, vector<2x8x8xbf16>, vector<2x8x8xf32> -> vector<2x8x8xf32>
    "tpu.trace_stop"() : () -> ()
    %64 = tpu.reciprocal %59 {approx = true} : vector<2x8x1xf32> -> vector<2x8x1xf32>
    %65 = vector.broadcast %64 : vector<2x8x1xf32> to vector<2x8x8xf32>
    %66 = arith.mulf %63, %65 : vector<2x8x8xf32>
    %67 = vector.extract_strided_slice %45 {offsets = [0, 0, 8], sizes = [2, 8, 8], strides = [1, 1, 1]} : vector<2x8x32xf32> to vector<2x8x8xf32>
    %68 = arith.truncf %67 : vector<2x8x8xf32> to vector<2x8x8xbf16>
    %69 = vector.extract_strided_slice %46 {offsets = [0, 0, 8], sizes = [2, 8, 8], strides = [1, 1, 1]} : vector<2x8x32xf32> to vector<2x8x8xf32>
    %70 = arith.truncf %69 : vector<2x8x8xf32> to vector<2x8x8xbf16>
    "tpu.trace_start"() <{level = 10 : i32, message = "bqd,bkd->bqk"}> : () -> ()
    %cst_29 = arith.constant dense<0.000000e+00> : vector<2x8x8xf32>
    %71 = tpu.matmul %68, %70, %cst_29 {dimension_numbers = #tpu.dot_dimension_numbers<[2], [2], [1], [1], [0, 0, 0, 1, 1, 1], [0], [0]>} : vector<2x8x8xbf16>, vector<2x8x8xbf16>, vector<2x8x8xf32> -> vector<2x8x8xf32>
    "tpu.trace_stop"() : () -> ()
    %cst_30 = arith.constant dense<0xFF800000> : vector<2x8xf32>
    %72 = vector.multi_reduction <maximumf>, %71, %cst_30 [2] : vector<2x8x8xf32> to vector<2x8xf32>
    %73 = vector.shape_cast %72 : vector<2x8xf32> to vector<2x8x1xf32>
    %74 = vector.broadcast %73 : vector<2x8x1xf32> to vector<2x8x8xf32>
    %75 = arith.subf %71, %74 : vector<2x8x8xf32>
    %76 = math.exp %75 : vector<2x8x8xf32>
    %cst_31 = arith.constant dense<0.000000e+00> : vector<2x8xf32>
    %77 = vector.multi_reduction <add>, %76, %cst_31 [2] : vector<2x8x8xf32> to vector<2x8xf32>
    %78 = vector.shape_cast %77 : vector<2x8xf32> to vector<2x8x1xf32>
    %79 = arith.truncf %76 : vector<2x8x8xf32> to vector<2x8x8xbf16>
    %80 = vector.extract_strided_slice %47 {offsets = [0, 0, 8], sizes = [2, 8, 8], strides = [1, 1, 1]} : vector<2x8x32xf32> to vector<2x8x8xf32>
    %81 = arith.truncf %80 : vector<2x8x8xf32> to vector<2x8x8xbf16>
    "tpu.trace_start"() <{level = 10 : i32, message = "bqk,bkd->bqd"}> : () -> ()
    %cst_32 = arith.constant dense<0.000000e+00> : vector<2x8x8xf32>
    %82 = tpu.matmul %79, %81, %cst_32 {dimension_numbers = #tpu.dot_dimension_numbers<[2], [1], [1], [2], [0, 0, 0, 1, 1, 2], [0], [0]>} : vector<2x8x8xbf16>, vector<2x8x8xbf16>, vector<2x8x8xf32> -> vector<2x8x8xf32>
    "tpu.trace_stop"() : () -> ()
    %83 = tpu.reciprocal %78 {approx = true} : vector<2x8x1xf32> -> vector<2x8x1xf32>
    %84 = vector.broadcast %83 : vector<2x8x1xf32> to vector<2x8x8xf32>
    %85 = arith.mulf %82, %84 : vector<2x8x8xf32>
    %86 = vector.extract_strided_slice %45 {offsets = [0, 0, 16], sizes = [2, 8, 8], strides = [1, 1, 1]} : vector<2x8x32xf32> to vector<2x8x8xf32>
    %87 = arith.truncf %86 : vector<2x8x8xf32> to vector<2x8x8xbf16>
    %88 = vector.extract_strided_slice %46 {offsets = [0, 0, 16], sizes = [2, 8, 8], strides = [1, 1, 1]} : vector<2x8x32xf32> to vector<2x8x8xf32>
    %89 = arith.truncf %88 : vector<2x8x8xf32> to vector<2x8x8xbf16>
    "tpu.trace_start"() <{level = 10 : i32, message = "bqd,bkd->bqk"}> : () -> ()
    %cst_33 = arith.constant dense<0.000000e+00> : vector<2x8x8xf32>
    %90 = tpu.matmul %87, %89, %cst_33 {dimension_numbers = #tpu.dot_dimension_numbers<[2], [2], [1], [1], [0, 0, 0, 1, 1, 1], [0], [0]>} : vector<2x8x8xbf16>, vector<2x8x8xbf16>, vector<2x8x8xf32> -> vector<2x8x8xf32>
    "tpu.trace_stop"() : () -> ()
    %cst_34 = arith.constant dense<0xFF800000> : vector<2x8xf32>
    %91 = vector.multi_reduction <maximumf>, %90, %cst_34 [2] : vector<2x8x8xf32> to vector<2x8xf32>
    %92 = vector.shape_cast %91 : vector<2x8xf32> to vector<2x8x1xf32>
    %93 = vector.broadcast %92 : vector<2x8x1xf32> to vector<2x8x8xf32>
    %94 = arith.subf %90, %93 : vector<2x8x8xf32>
    %95 = math.exp %94 : vector<2x8x8xf32>
    %cst_35 = arith.constant dense<0.000000e+00> : vector<2x8xf32>
    %96 = vector.multi_reduction <add>, %95, %cst_35 [2] : vector<2x8x8xf32> to vector<2x8xf32>
    %97 = vector.shape_cast %96 : vector<2x8xf32> to vector<2x8x1xf32>
    %98 = arith.truncf %95 : vector<2x8x8xf32> to vector<2x8x8xbf16>
    %99 = vector.extract_strided_slice %47 {offsets = [0, 0, 16], sizes = [2, 8, 8], strides = [1, 1, 1]} : vector<2x8x32xf32> to vector<2x8x8xf32>
    %100 = arith.truncf %99 : vector<2x8x8xf32> to vector<2x8x8xbf16>
    "tpu.trace_start"() <{level = 10 : i32, message = "bqk,bkd->bqd"}> : () -> ()
    %cst_36 = arith.constant dense<0.000000e+00> : vector<2x8x8xf32>
    %101 = tpu.matmul %98, %100, %cst_36 {dimension_numbers = #tpu.dot_dimension_numbers<[2], [1], [1], [2], [0, 0, 0, 1, 1, 2], [0], [0]>} : vector<2x8x8xbf16>, vector<2x8x8xbf16>, vector<2x8x8xf32> -> vector<2x8x8xf32>
    "tpu.trace_stop"() : () -> ()
    %102 = tpu.reciprocal %97 {approx = true} : vector<2x8x1xf32> -> vector<2x8x1xf32>
    %103 = vector.broadcast %102 : vector<2x8x1xf32> to vector<2x8x8xf32>
    %104 = arith.mulf %101, %103 : vector<2x8x8xf32>
    %105 = vector.extract_strided_slice %45 {offsets = [0, 0, 24], sizes = [2, 8, 8], strides = [1, 1, 1]} : vector<2x8x32xf32> to vector<2x8x8xf32>
    %106 = arith.truncf %105 : vector<2x8x8xf32> to vector<2x8x8xbf16>
    %107 = vector.extract_strided_slice %46 {offsets = [0, 0, 24], sizes = [2, 8, 8], strides = [1, 1, 1]} : vector<2x8x32xf32> to vector<2x8x8xf32>
    %108 = arith.truncf %107 : vector<2x8x8xf32> to vector<2x8x8xbf16>
    "tpu.trace_start"() <{level = 10 : i32, message = "bqd,bkd->bqk"}> : () -> ()
    %cst_37 = arith.constant dense<0.000000e+00> : vector<2x8x8xf32>
    %109 = tpu.matmul %106, %108, %cst_37 {dimension_numbers = #tpu.dot_dimension_numbers<[2], [2], [1], [1], [0, 0, 0, 1, 1, 1], [0], [0]>} : vector<2x8x8xbf16>, vector<2x8x8xbf16>, vector<2x8x8xf32> -> vector<2x8x8xf32>
    "tpu.trace_stop"() : () -> ()
    %cst_38 = arith.constant dense<0xFF800000> : vector<2x8xf32>
    %110 = vector.multi_reduction <maximumf>, %109, %cst_38 [2] : vector<2x8x8xf32> to vector<2x8xf32>
    %111 = vector.shape_cast %110 : vector<2x8xf32> to vector<2x8x1xf32>
    %112 = vector.broadcast %111 : vector<2x8x1xf32> to vector<2x8x8xf32>
    %113 = arith.subf %109, %112 : vector<2x8x8xf32>
    %114 = math.exp %113 : vector<2x8x8xf32>
    %cst_39 = arith.constant dense<0.000000e+00> : vector<2x8xf32>
    %115 = vector.multi_reduction <add>, %114, %cst_39 [2] : vector<2x8x8xf32> to vector<2x8xf32>
    %116 = vector.shape_cast %115 : vector<2x8xf32> to vector<2x8x1xf32>
    %117 = arith.truncf %114 : vector<2x8x8xf32> to vector<2x8x8xbf16>
    %118 = vector.extract_strided_slice %47 {offsets = [0, 0, 24], sizes = [2, 8, 8], strides = [1, 1, 1]} : vector<2x8x32xf32> to vector<2x8x8xf32>
    %119 = arith.truncf %118 : vector<2x8x8xf32> to vector<2x8x8xbf16>
    "tpu.trace_start"() <{level = 10 : i32, message = "bqk,bkd->bqd"}> : () -> ()
    %cst_40 = arith.constant dense<0.000000e+00> : vector<2x8x8xf32>
    %120 = tpu.matmul %117, %119, %cst_40 {dimension_numbers = #tpu.dot_dimension_numbers<[2], [1], [1], [2], [0, 0, 0, 1, 1, 2], [0], [0]>} : vector<2x8x8xbf16>, vector<2x8x8xbf16>, vector<2x8x8xf32> -> vector<2x8x8xf32>
    "tpu.trace_stop"() : () -> ()
    %121 = tpu.reciprocal %116 {approx = true} : vector<2x8x1xf32> -> vector<2x8x1xf32>
    %122 = vector.broadcast %121 : vector<2x8x1xf32> to vector<2x8x8xf32>
    %123 = arith.mulf %120, %122 : vector<2x8x8xf32>
    %124 = tpu.concatenate %66, %85, %104, %123 in 2 : vector<2x8x8xf32>, vector<2x8x8xf32>, vector<2x8x8xf32>, vector<2x8x8xf32> -> vector<2x8x32xf32>
    %125 = vector.shape_cast %124 : vector<2x8x32xf32> to vector<16x32xf32>
    %126 = arith.truncf %125 : vector<16x32xf32> to vector<16x32xbf16>
    %cst_41 = arith.constant dense<0.000000e+00> : vector<16x32xf32>
    %127 = tpu.matmul %126, %35, %cst_41 {dimension_numbers = #tpu.dot_dimension_numbers<[1], [0], [0], [1], [0, 0, 1, 1], [], []>} : vector<16x32xbf16>, vector<32x32xbf16>, vector<16x32xf32> -> vector<16x32xf32>
    %128 = vector.broadcast %37 : vector<1x32xf32> to vector<16x32xf32>
    %129 = arith.addf %127, %128 : vector<16x32xf32>
    %130 = arith.addf %3, %129 : vector<16x32xf32>
    %c0_42 = arith.constant 0 : index
    %c0_43 = arith.constant 0 : index
    %c0_44 = arith.constant 0 : index
    %131 = vector.load %arg11[%c0_42, %c0_43, %c0_44] : memref<1x1x32xf32, #tpu.memory_space<vmem>>, vector<1x1x32xf32>
    %132 = vector.shape_cast %131 : vector<1x1x32xf32> to vector<1x32xf32>
    %c0_45 = arith.constant 0 : index
    %c0_46 = arith.constant 0 : index
    %c0_47 = arith.constant 0 : index
    %133 = vector.load %arg12[%c0_45, %c0_46, %c0_47] : memref<1x1x32xf32, #tpu.memory_space<vmem>>, vector<1x1x32xf32>
    %134 = vector.shape_cast %133 : vector<1x1x32xf32> to vector<1x32xf32>
    %cst_48 = arith.constant dense<0.000000e+00> : vector<16xf32>
    %135 = vector.multi_reduction <add>, %130, %cst_48 [1] : vector<16x32xf32> to vector<16xf32>
    %136 = vector.shape_cast %135 : vector<16xf32> to vector<16x1xf32>
    %cst_49 = arith.constant 3.200000e+01 : f32
    %137 = vector.broadcast %cst_49 : f32 to vector<16x1xf32>
    %138 = arith.divf %136, %137 : vector<16x1xf32>
    %139 = vector.broadcast %138 : vector<16x1xf32> to vector<16x32xf32>
    %140 = arith.subf %130, %139 : vector<16x32xf32>
    %141 = arith.mulf %140, %140 : vector<16x32xf32>
    %cst_50 = arith.constant dense<0.000000e+00> : vector<16xf32>
    %142 = vector.multi_reduction <add>, %141, %cst_50 [1] : vector<16x32xf32> to vector<16xf32>
    %143 = vector.shape_cast %142 : vector<16xf32> to vector<16x1xf32>
    %cst_51 = arith.constant 3.200000e+01 : f32
    %144 = vector.broadcast %cst_51 : f32 to vector<16x1xf32>
    %145 = arith.divf %143, %144 : vector<16x1xf32>
    %146 = vector.broadcast %138 : vector<16x1xf32> to vector<16x32xf32>
    %147 = arith.subf %130, %146 : vector<16x32xf32>
    %cst_52 = arith.constant 9.99999974E-6 : f32
    %148 = vector.broadcast %cst_52 : f32 to vector<16x1xf32>
    %149 = arith.addf %145, %148 : vector<16x1xf32>
    %150 = math.rsqrt %149 : vector<16x1xf32>
    %151 = vector.broadcast %150 : vector<16x1xf32> to vector<16x32xf32>
    %152 = arith.mulf %147, %151 : vector<16x32xf32>
    %153 = vector.broadcast %132 : vector<1x32xf32> to vector<16x32xf32>
    %154 = arith.mulf %152, %153 : vector<16x32xf32>
    %155 = vector.broadcast %134 : vector<1x32xf32> to vector<16x32xf32>
    %156 = arith.addf %154, %155 : vector<16x32xf32>
    %c0_53 = arith.constant 0 : index
    %c0_54 = arith.constant 0 : index
    %c0_55 = arith.constant 0 : index
    %157 = vector.load %arg13[%c0_53, %c0_54, %c0_55] : memref<1x32x128xbf16, #tpu.memory_space<vmem>>, vector<1x32x128xbf16>
    %158 = vector.shape_cast %157 : vector<1x32x128xbf16> to vector<32x128xbf16>
    %c0_56 = arith.constant 0 : index
    %c0_57 = arith.constant 0 : index
    %c0_58 = arith.constant 0 : index
    %159 = vector.load %arg14[%c0_56, %c0_57, %c0_58] : memref<1x1x128xf32, #tpu.memory_space<vmem>>, vector<1x1x128xf32>
    %160 = vector.shape_cast %159 : vector<1x1x128xf32> to vector<1x128xf32>
    %c0_59 = arith.constant 0 : index
    %c0_60 = arith.constant 0 : index
    %c0_61 = arith.constant 0 : index
    %161 = vector.load %arg15[%c0_59, %c0_60, %c0_61] : memref<1x128x32xbf16, #tpu.memory_space<vmem>>, vector<1x128x32xbf16>
    %162 = vector.shape_cast %161 : vector<1x128x32xbf16> to vector<128x32xbf16>
    %c0_62 = arith.constant 0 : index
    %c0_63 = arith.constant 0 : index
    %c0_64 = arith.constant 0 : index
    %163 = vector.load %arg16[%c0_62, %c0_63, %c0_64] : memref<1x1x32xf32, #tpu.memory_space<vmem>>, vector<1x1x32xf32>
    %164 = vector.shape_cast %163 : vector<1x1x32xf32> to vector<1x32xf32>
    %165 = arith.truncf %156 : vector<16x32xf32> to vector<16x32xbf16>
    %cst_65 = arith.constant dense<0.000000e+00> : vector<16x128xf32>
    %166 = tpu.matmul %165, %158, %cst_65 {dimension_numbers = #tpu.dot_dimension_numbers<[1], [0], [0], [1], [0, 0, 1, 1], [], []>} : vector<16x32xbf16>, vector<32x128xbf16>, vector<16x128xf32> -> vector<16x128xf32>
    %167 = vector.broadcast %160 : vector<1x128xf32> to vector<16x128xf32>
    %168 = arith.addf %166, %167 : vector<16x128xf32>
    %cst_66 = arith.constant 0.000000e+00 : f32
    %169 = vector.broadcast %cst_66 : f32 to vector<16x128xf32>
    %170 = arith.maximumf %168, %169 : vector<16x128xf32>
    %171 = arith.truncf %170 : vector<16x128xf32> to vector<16x128xbf16>
    %cst_67 = arith.constant dense<0.000000e+00> : vector<16x32xf32>
    %172 = tpu.matmul %171, %162, %cst_67 {dimension_numbers = #tpu.dot_dimension_numbers<[1], [0], [0], [1], [0, 0, 1, 1], [], []>} : vector<16x128xbf16>, vector<128x32xbf16>, vector<16x32xf32> -> vector<16x32xf32>
    %173 = vector.broadcast %164 : vector<1x32xf32> to vector<16x32xf32>
    %174 = arith.addf %172, %173 : vector<16x32xf32>
    %175 = arith.addf %130, %174 : vector<16x32xf32>
    %c0_68 = arith.constant 0 : index
    %c0_69 = arith.constant 0 : index
    %176 = vector.load %arg20[%c0_68, %c0_69] : memref<16x32xf32, #tpu.memory_space<vmem>>, vector<16x32xf32>
    tpu.vector_store %arg20[%c0_68, %c0_69], %175 {strides = array<i32>} : memref<16x32xf32, #tpu.memory_space<vmem>>, vector<16x32xf32>,
    %c1_i32 = arith.constant 1 : i32
    %177 = arith.cmpi eq, %arg0, %c1_i32 : i32
    %178 = arith.extui %177 : i1 to i32
    %c0_i32_70 = arith.constant 0 : i32
    %179 = arith.cmpi ne, %178, %c0_i32_70 : i32
    scf.if %179 {
      %c0_71 = arith.constant 0 : index
      %c0_72 = arith.constant 0 : index
      %180 = vector.load %arg17[%c0_71, %c0_72] : memref<1x32xf32, #tpu.memory_space<vmem>>, vector<1x32xf32>
      %c0_73 = arith.constant 0 : index
      %c0_74 = arith.constant 0 : index
      %181 = vector.load %arg18[%c0_73, %c0_74] : memref<1x32xf32, #tpu.memory_space<vmem>>, vector<1x32xf32>
      %cst_75 = arith.constant dense<0.000000e+00> : vector<16xf32>
      %182 = vector.multi_reduction <add>, %175, %cst_75 [1] : vector<16x32xf32> to vector<16xf32>
      %183 = vector.shape_cast %182 : vector<16xf32> to vector<16x1xf32>
      %cst_76 = arith.constant 3.200000e+01 : f32
      %184 = vector.broadcast %cst_76 : f32 to vector<16x1xf32>
      %185 = arith.divf %183, %184 : vector<16x1xf32>
      %186 = vector.broadcast %185 : vector<16x1xf32> to vector<16x32xf32>
      %187 = arith.subf %175, %186 : vector<16x32xf32>
      %188 = arith.mulf %187, %187 : vector<16x32xf32>
      %cst_77 = arith.constant dense<0.000000e+00> : vector<16xf32>
      %189 = vector.multi_reduction <add>, %188, %cst_77 [1] : vector<16x32xf32> to vector<16xf32>
      %190 = vector.shape_cast %189 : vector<16xf32> to vector<16x1xf32>
      %cst_78 = arith.constant 3.200000e+01 : f32
      %191 = vector.broadcast %cst_78 : f32 to vector<16x1xf32>
      %192 = arith.divf %190, %191 : vector<16x1xf32>
      %193 = vector.broadcast %185 : vector<16x1xf32> to vector<16x32xf32>
      %194 = arith.subf %175, %193 : vector<16x32xf32>
      %cst_79 = arith.constant 9.99999974E-6 : f32
      %195 = vector.broadcast %cst_79 : f32 to vector<16x1xf32>
      %196 = arith.addf %192, %195 : vector<16x1xf32>
      %197 = math.rsqrt %196 : vector<16x1xf32>
      %198 = vector.broadcast %197 : vector<16x1xf32> to vector<16x32xf32>
      %199 = arith.mulf %194, %198 : vector<16x32xf32>
      %200 = vector.broadcast %180 : vector<1x32xf32> to vector<16x32xf32>
      %201 = arith.mulf %199, %200 : vector<16x32xf32>
      %202 = vector.broadcast %181 : vector<1x32xf32> to vector<16x32xf32>
      %203 = arith.addf %201, %202 : vector<16x32xf32>
      %204 = vector.shape_cast %203 : vector<16x32xf32> to vector<2x8x32xf32>
      %c0_80 = arith.constant 0 : index
      %c0_81 = arith.constant 0 : index
      %c0_82 = arith.constant 0 : index
      %205 = vector.load %arg19[%c0_80, %c0_81, %c0_82] : memref<2x8x32xf32, #tpu.memory_space<vmem>>, vector<2x8x32xf32>
      tpu.vector_store %arg19[%c0_80, %c0_81, %c0_82], %204 {strides = array<i32>} : memref<2x8x32xf32, #tpu.memory_space<vmem>>, vector<2x8x32xf32>,
    } else {
    }
    return
  }
  func.func @transform_0(%arg0: i32) -> (i32, i32, i32) {
    %c0_i32 = arith.constant 0 : i32
    %c0_i32_0 = arith.constant 0 : i32
    %c0_i32_1 = arith.constant 0 : i32
    %c0_i32_2 = arith.constant 0 : i32
    return %c0_i32, %c0_i32_0, %c0_i32_1 : i32, i32, i32
  }
  func.func @transform_1(%arg0: i32) -> (i32, i32) {
    %c0_i32 = arith.constant 0 : i32
    %c0_i32_0 = arith.constant 0 : i32
    %c0_i32_1 = arith.constant 0 : i32
    return %c0_i32, %c0_i32_0 : i32, i32
  }
  func.func @transform_2(%arg0: i32) -> (i32, i32) {
    %c0_i32 = arith.constant 0 : i32
    %c0_i32_0 = arith.constant 0 : i32
    %c0_i32_1 = arith.constant 0 : i32
    return %c0_i32, %c0_i32_0 : i32, i32
  }
  func.func @transform_3(%arg0: i32) -> (i32, i32, i32) {
    %c0_i32 = arith.constant 0 : i32
    %c0_i32_0 = arith.constant 0 : i32
    %c0_i32_1 = arith.constant 0 : i32
    %c0_i32_2 = arith.constant 0 : i32
    return %c0_i32, %c0_i32_0, %c0_i32_1 : i32, i32, i32
  }
  func.func @transform_4(%arg0: i32) -> (i32, i32, i32) {
    %c0_i32 = arith.constant 0 : i32
    %c0_i32_0 = arith.constant 0 : i32
    %c0_i32_1 = arith.constant 0 : i32
    return %arg0, %c0_i32, %c0_i32_0 : i32, i32, i32
  }
  func.func @transform_5(%arg0: i32) -> (i32, i32, i32) {
    %c0_i32 = arith.constant 0 : i32
    %c0_i32_0 = arith.constant 0 : i32
    %c0_i32_1 = arith.constant 0 : i32
    return %arg0, %c0_i32, %c0_i32_0 : i32, i32, i32
  }
  func.func @transform_6(%arg0: i32) -> (i32, i32, i32) {
    %c0_i32 = arith.constant 0 : i32
    %c0_i32_0 = arith.constant 0 : i32
    %c0_i32_1 = arith.constant 0 : i32
    return %arg0, %c0_i32, %c0_i32_0 : i32, i32, i32
  }
  func.func @transform_7(%arg0: i32) -> (i32, i32, i32) {
    %c0_i32 = arith.constant 0 : i32
    %c0_i32_0 = arith.constant 0 : i32
    %c0_i32_1 = arith.constant 0 : i32
    return %arg0, %c0_i32, %c0_i32_0 : i32, i32, i32
  }
  func.func @transform_8(%arg0: i32) -> (i32, i32, i32) {
    %c0_i32 = arith.constant 0 : i32
    %c0_i32_0 = arith.constant 0 : i32
    %c0_i32_1 = arith.constant 0 : i32
    return %arg0, %c0_i32, %c0_i32_0 : i32, i32, i32
  }
  func.func @transform_9(%arg0: i32) -> (i32, i32, i32) {
    %c0_i32 = arith.constant 0 : i32
    %c0_i32_0 = arith.constant 0 : i32
    %c0_i32_1 = arith.constant 0 : i32
    return %arg0, %c0_i32, %c0_i32_0 : i32, i32, i32
  }
  func.func @transform_10(%arg0: i32) -> (i32, i32, i32) {
    %c0_i32 = arith.constant 0 : i32
    %c0_i32_0 = arith.constant 0 : i32
    %c0_i32_1 = arith.constant 0 : i32
    return %arg0, %c0_i32, %c0_i32_0 : i32, i32, i32
  }
  func.func @transform_11(%arg0: i32) -> (i32, i32, i32) {
    %c0_i32 = arith.constant 0 : i32
    %c0_i32_0 = arith.constant 0 : i32
    %c0_i32_1 = arith.constant 0 : i32
    return %arg0, %c0_i32, %c0_i32_0 : i32, i32, i32
  }
  func.func @transform_12(%arg0: i32) -> (i32, i32, i32) {
    %c0_i32 = arith.constant 0 : i32
    %c0_i32_0 = arith.constant 0 : i32
    %c0_i32_1 = arith.constant 0 : i32
    return %arg0, %c0_i32, %c0_i32_0 : i32, i32, i32
  }
  func.func @transform_13(%arg0: i32) -> (i32, i32, i32) {
    %c0_i32 = arith.constant 0 : i32
    %c0_i32_0 = arith.constant 0 : i32
    %c0_i32_1 = arith.constant 0 : i32
    return %arg0, %c0_i32, %c0_i32_0 : i32, i32, i32
  }
  func.func @transform_14(%arg0: i32) -> (i32, i32, i32) {
    %c0_i32 = arith.constant 0 : i32
    %c0_i32_0 = arith.constant 0 : i32
    %c0_i32_1 = arith.constant 0 : i32
    return %arg0, %c0_i32, %c0_i32_0 : i32, i32, i32
  }
  func.func @transform_15(%arg0: i32) -> (i32, i32, i32) {
    %c0_i32 = arith.constant 0 : i32
    %c0_i32_0 = arith.constant 0 : i32
    %c0_i32_1 = arith.constant 0 : i32
    return %arg0, %c0_i32, %c0_i32_0 : i32, i32, i32
  }
  func.func @transform_16(%arg0: i32) -> (i32, i32) {
    %c0_i32 = arith.constant 0 : i32
    %c0_i32_0 = arith.constant 0 : i32
    %c0_i32_1 = arith.constant 0 : i32
    return %c0_i32, %c0_i32_0 : i32, i32
  }
  func.func @transform_17(%arg0: i32) -> (i32, i32) {
    %c0_i32 = arith.constant 0 : i32
    %c0_i32_0 = arith.constant 0 : i32
    %c0_i32_1 = arith.constant 0 : i32
    return %c0_i32, %c0_i32_0 : i32, i32
  }
  func.func @transform_18(%arg0: i32) -> (i32, i32, i32) {
    %c0_i32 = arith.constant 0 : i32
    %c0_i32_0 = arith.constant 0 : i32
    %c0_i32_1 = arith.constant 0 : i32
    %c0_i32_2 = arith.constant 0 : i32
    return %c0_i32, %c0_i32_0, %c0_i32_1 : i32, i32, i32
  }
}

</mosaic_0001>

<bundles_post_ra>
// kernel: transformer_forward.2
= control target key start
LH: loop header
LB: loop body
LE: loop exit
PB: predicated region body
PF: predicated region fallthrough
CT: control target
= control target key end

     0   :  { %s2821_s27 = smov 0   ;;  %s3203_s0 = inlined_call_operand.vmem [shape: f32[2,8,32], index: 0, kind: input, shape index: {}]   ;;  %s3204_s1 = inlined_call_operand.vmem [shape: bf16[32,32], index: 1, kind: input, shape index: {}]   ;;  %s3205_s2 = inlined_call_operand.vmem [shape: f32[1,32], index: 2, kind: input, shape index: {}]   ;;  %s3206_s3 = inlined_call_operand.vmem [shape: f32[1,8,32], index: 3, kind: input, shape index: {}]   ;;  %s3207_s4 = inlined_call_operand.vmem [shape: f32[2,1,32], index: 4, kind: input, shape index: {}]   ;;  %s3208_s5 = inlined_call_operand.vmem [shape: f32[2,1,32], index: 5, kind: input, shape index: {}]   ;;  %s3209_s6 = inlined_call_operand.vmem [shape: bf16[2,32,96], index: 6, kind: input, shape index: {}]   ;;  %s3210_s7 = inlined_call_operand.vmem [shape: f32[2,1,96], index: 7, kind: input, shape index: {}]   ;;  %s3211_s8 = inlined_call_operand.vmem [shape: bf16[2,32,32], index: 8, kind: input, shape index: {}]   ;;  %s3212_s9 = inlined_call_operand.vmem [shape: f32[2,1,32], index: 9, kind: input, shape index: {}]   ;;  %s3213_s10 = inlined_call_operand.vmem [shape: f32[2,1,32], index: 10, kind: input, shape index: {}]   ;;  %s3214_s11 = inlined_call_operand.vmem [shape: f32[2,1,32], index: 11, kind: input, shape index: {}]   ;;  %s3215_s12 = inlined_call_operand.vmem [shape: bf16[2,32,128], index: 12, kind: input, shape index: {}]   ;;  %s3216_s13 = inlined_call_operand.vmem [shape: f32[2,1,128], index: 13, kind: input, shape index: {}]   ;;  %s3217_s14 = inlined_call_operand.vmem [shape: bf16[2,128,32], index: 14, kind: input, shape index: {}]   ;;  %s3218_s15 = inlined_call_operand.vmem [shape: f32[2,1,32], index: 15, kind: input, shape index: {}]   ;;  %s3219_s16 = inlined_call_operand.vmem [shape: f32[1,32], index: 16, kind: input, shape index: {}]   ;;  %s3220_s17 = inlined_call_operand.vmem [shape: f32[1,32], index: 17, kind: input, shape index: {}]   ;;  %s3221_s18 = inlined_call_operand.vmem [shape: f32[2,8,32], index: 18, kind: output, shape index: {}]  }
   0x1   :  { %3227 = sst [smem:[#allocation5_spill]] %s3203_s0 }
   0x2   :  { %3228 = sst [smem:[#allocation6_spill]] %s3204_s1 }
   0x3   :  { %3229 = sst [smem:[#allocation7_spill]] %s3205_s2 }
   0x4   :  { %3230 = sst [smem:[#allocation8_spill]] %s3209_s6 }
   0x5   :  { %3231 = sst [smem:[#allocation9_spill]] %s3211_s8 }
   0x6   :  { %3232 = sst [smem:[#allocation10_spill]] %s3219_s16 }
   0x7   :  { %3233 = sst [smem:[#allocation11_spill]] %s3220_s17 }
   0x8   :  { %3234 = sst [smem:[#allocation12_spill]] %s3221_s18 }
   0x9 LB: > { %3235 = sst [smem:[#allocation3_spill]] %s2706_s27  ;;  %s2827_s28 = sadd.s32 4294967295, %s2706_s27   ;;  %s2706_s27 = sphi %s2821_s27, %s28_s27  }
   0xa   : > { %p2334_p0 = scmp.ge.s32.totalorder %s2706_s27, 1  ;;  %p601_p1 = scmp.lt.s32.totalorder %s2706_s27, 3 }
   0xc   : > { %p602_p2 = pnand %p2334_p0, %p601_p1 }
   0xe   : > { %605 = sbr.rel (%p602_p2) target bundleno = 4066 (0xfe2), region = 92 }
  0x15   : > { %p689_p3 = scmp.lt.s32.totalorder %s2827_s28, 1  ;;  %s3236_s6 = sld [smem:[#allocation8_spill]] }
  0x16   : > { %s3237_s8 = sld [smem:[#allocation9_spill]]  ;;  %p2343_p4 = scmp.ne.s32.totalorder %s2827_s28, 0 }
  0x17   : > { %s2833_s29 = scalar_select %p689_p3, %s2827_s28, 1 }
  0x18   : > { %737 = sbr.rel (%p2343_p4) target bundleno = 258 (0x102), region = 96  ;;  %s3239_s25 = sld [smem:[#allocation6_spill]] (!%p2343_p4)  ;;  %v2708_v1 = vmov (!%p2343_p4), 0.0   ;;  %vm2709_vm0 = vmmov (!%p2343_p4), 0   ;;  %vm764_vm1 = vcmask (!%p2343_p4), 261120   ;;  %v809_v8 = vld [vmem:[%s3206_s3] sm:$0xff] (!%p2343_p4) }
  0x19   : > { %s2394_s22 = sshll.u32 %s2833_s29, 4  ;;  %s713_s16 = scalar_lea.vmem %s3213_s10, %s2833_s29  ;;  %2451 = vmatprep.subr.bf16.mxu0 (!%p2343_p4), %v2708_v1  ;;  %2455 = vmatprep.mubr.msk.bf16.mxu0 (!%p2343_p4), %vm2709_vm0, %v2708_v1 }
  0x1a   : > { %s716_s24 = scalar_lea.vmem %s3214_s11, %s2833_s29  ;;  %s732_s2 = scalar_lea.vmem %s3218_s15, %s2833_s29 }
  0x1b   : > { %s2851_s30 = scalar_lea.vmem %s3236_s6, %s2394_s22  ;;  %s2873_s6 = scalar_lea.vmem %s3215_s12, %s2394_s22 }
  0x1c   : > { %s2856_s18 = scalar_lea.vmem %s3237_s8, %s2394_s22  ;;  %s724_s8 = scalar_lea.vmem %s3216_s13, %s2833_s29 }
  0x1d   : > { %3238 = sst [smem:[#allocation4_spill]] %s2856_s18  ;;  %s2397_s18 = sshll.u32 %s2833_s29, 6 }
  0x1e   : > { %s2883_s1 = scalar_lea.vmem %s3217_s14, %s2397_s18  ;;  %v2625_v0 = vld [vmem:[%s3239_s25] sm:$0xff] (!%p2343_p4)   ;;  %v2626_v2 = vld [vmem:[%s3239_s25 + $0x8] sm:$0xff] (!%p2343_p4)   ;;  %s3240_s17 = sld [smem:[#allocation5_spill]] (!%p2343_p4) }
  0x1f   : > { %2452 = vmatpush3.bf16.msra.mxu0 %v2625_v0  ;;  %s3241_s22 = sld [smem:[#allocation7_spill]] }
  0x20   : > { %2453 = vmatprep.subr.bf16.mxu0 %v2708_v1 }
  0x23   : > { %2454 = vmatpush3.bf16.msra.mxu0 %v2626_v2 }
  0x24   : > { %v738_v3 = vld [vmem:[%s3240_s17] sm:$0xff]  ;;  %v739_v4 = vld [vmem:[%s3240_s17 + $0x8] sm:$0xff] }
  0x25   : > { %v740_v5 = vpack.c.bf16 %v739_v4, %v738_v3  ;;  %v2344_v6 = vld [vmem:[%s3241_s22] ss:$0 sm:$0xff] }
  0x27   : > { %2456 = vmatmul.mubr.msk.bf16.vlgmr.msra.gmra.mrb[0].mxu0 %vm764_vm1, %v740_v5 }
  0xfa   : > { %v802_v7 = vpop.f32.mrb[0].mxu0 }
  0xfb   : > { %v803_v9 = vadd.f32 %v2344_v6, %v802_v7  ;;  %v2457_v10 = vpop.f32.mrb[1].mxu0 }
  0xfc   : > { %v805_v11 = vpop.f32.mrb[2].mxu0 }
  0xfd   : > { %v810_v12 = vadd.f32 %v809_v8, %v803_v9  ;;  %v806_v13 = vadd.f32 %v2344_v6, %v805_v11  ;;  %v2458_v14 = vpop.f32.mrb[3].mxu0 }
  0xff   : > { %812 = vst.msk [vmem:[#allocation2] sm:$0xff] %vm764_vm1, %v810_v12  ;;  %v811_v15 = vadd.f32 %v809_v8, %v806_v13 }
 0x101   : > { %813 = vst.msk [vmem:[#allocation2 + $0x8] sm:$0xff] %vm764_vm1, %v811_v15 }
 0x102 PF: > { %vm818_vm2 = vcmask 261120   ;;  %v2642_v30 = vld [vmem:[%s2851_s30] sm:$0xff]   ;;  %v2710_v31 = vmov 0.0   ;;  %v2643_v32 = vld [vmem:[%s2851_s30 + $0x8] sm:$0xff]   ;;  %vm2711_vm3 = vmmov 0   ;;  %s3242_s0 = scalar_lea.vmem %s3207_s4, %s2833_s29  ;;  %s3243_s20 = scalar_lea.vmem %s3208_s5, %s2833_s29  ;;  %vm940_vm4 = vcmask 64512  }
 0x103   : > { %2459 = vmatprep.subr.bf16.mxu0 %v2710_v31  ;;  %2479 = vmatprep.subr.bf16.mxu1 %v2710_v31  ;;  %v2348_v41 = vld [vmem:[%s3242_s0] ss:$0 sm:$0xff]  ;;  %s3244_s26 = scalar_lea.vmem %s3210_s7, %s2833_s29  ;;  %s2712_s27 = smov 96   ;;  %vm1061_vm5 = vcmask 1043456   ;;  %vm1843_vm6 = vcmask 130048   ;;  %vm1846_vm7 = vcmask 195584  }
 0x104   : > { %2460 = vmatpush3.bf16.msra.mxu0 %v2642_v30  ;;  %2463 = vmatprep.mubr.msk.bf16.mxu0 %vm2711_vm3, %v2710_v31  ;;  %v2349_v45 = vld [vmem:[%s3243_s20] ss:$0 sm:$0xff]  ;;  %s2713_s30 = smov 64   ;;  %s2714_s18 = smov 88  }
 0x105   : > { %2461 = vmatprep.subr.bf16.mxu0 %v2710_v31  ;;  %2481 = vmatprep.mubr.msk.bf16.mxu1 %vm2711_vm3, %v2710_v31  ;;  %v2350_v50 = vld [vmem:[%s3244_s26] ss:$0 sm:$0xff]  ;;  %s2715_s0 = smov 120   ;;  %s2716_s19 = smov 56  }
 0x106   : > { %v2908_v16 = vld [vmem:[#allocation2] sm:$0xff]  ;;  %s2717_s21 = smov 80   ;;  %s2718_s20 = smov 112  }
 0x107   : > { %v819_v18 = vsel %vm818_vm2, %v2908_v16, 0.0  ;;  %s2719_s23 = smov 48   ;;  %s2720_s22 = smov 72  }
 0x108   : > { %v2910_v17 = vld [vmem:[#allocation2 + $0x8] sm:$0xff]  ;;  %820 = vadd.xlane.f32.xlu0 %v819_v18  ;;  %2462 = vmatpush3.bf16.msra.mxu0 %v2643_v32  ;;  %s2721_s26 = smov 104   ;;  %p2389_p5 = scmp.ne.s32.totalorder %s2827_s28, 1 }
 0x109   : > { %v822_v19 = vsel %vm818_vm2, %v2910_v17, 0.0  ;;  %2467 = vmatprep.subr.bf16.mxu0 %v2710_v31 }
 0x10c   : > { %823 = vadd.xlane.f32.xlu0 %v822_v19 }
 0x195   : > { %v821_v20 = vpop.xlane.xlu0 %820 }
 0x196   : > { %v826_v21 = vmul.f32 0.03125, %v821_v20 }
 0x198   : > { %v828_v22 = vsub.f32 %v2908_v16, %v826_v21 }
 0x199   : > { %v824_v23 = vpop.xlane.xlu0 %823 }
 0x19a   : > { %v827_v24 = vmul.f32 0.03125, %v824_v23  ;;  %v830_v25 = vmul.f32 %v828_v22, %v828_v22 }
 0x19c   : > { %v829_v26 = vsub.f32 %v2910_v17, %v827_v24  ;;  %v832_v27 = vsel %vm818_vm2, %v830_v25, 0.0 }
 0x19d   : > { %833 = vadd.xlane.f32.xlu1 %v832_v27 }
 0x19e   : > { %v831_v28 = vmul.f32 %v829_v26, %v829_v26 }
 0x1a0   : > { %v835_v29 = vsel %vm818_vm2, %v831_v28, 0.0 }
 0x1a1   : > { %836 = vadd.xlane.f32.xlu1 %v835_v29 }
 0x22a   : > { %v834_v33 = vpop.xlane.xlu1 %833 }
 0x22b   : > { %v838_v34 = vmul.f32 0.03125, %v834_v33 }
 0x22d   : > { %v840_v35 = vadd.f32 1e-05, %v838_v34 }
 0x22e   : > { %v837_v36 = vpop.xlane.xlu1 %836 }
 0x22f   : > { %2656 = vrsqrt.f32 %v840_v35  ;;  %v839_v37 = vmul.f32 0.03125, %v837_v36 }
 0x231   : > { %v841_v38 = vadd.f32 1e-05, %v839_v37 }
 0x233   : > { %2658 = vrsqrt.f32 %v841_v38 }
 0x239   : > { %v2657_v39 = vpop.eup %2656 }
 0x23a   : > { %v844_v40 = vmul.f32 %v2657_v39, %v828_v22 }
 0x23c   : > { %v852_v44 = vmul.f32 %v2348_v41, %v844_v40 }
 0x23d   : > { %v2659_v42 = vpop.eup %2658 }
 0x23e   : > { %v845_v43 = vmul.f32 %v2659_v42, %v829_v26  ;;  %v860_v47 = vadd.f32 %v2349_v45, %v852_v44 }
 0x240   : > { %v853_v46 = vmul.f32 %v2348_v41, %v845_v43 }
 0x242   : > { %v861_v48 = vadd.f32 %v2349_v45, %v853_v46 }
 0x244   : > { %v872_v49 = vpack.c.bf16 %v861_v48, %v860_v47 }
 0x246   : > { %2464 = vmatmul.mubr.msk.bf16.vlgmr.msra.gmra.mrb[0].mxu0 %vm818_vm2, %v872_v49 }
 0x247   : > { %2469 = vmatprep.mubr.msk.bf16.mxu0 %vm2711_vm3, %v2710_v31 }
 0x319   : > { %v928_v51 = vpop.f32.mrb[0].mxu0 }
 0x31a   : > { %v929_v52 = vadd.f32 %v2350_v50, %v928_v51  ;;  %v2465_v53 = vpop.f32.mrb[1].mxu0 }
 0x31b   : > { %v931_v54 = vpop.f32.mrb[2].mxu0 }
 0x31c   : > { %v2948_v55 = vpack.c.bf16 %v929_v52, %v929_v52  ;;  %v932_v56 = vadd.f32 %v2350_v50, %v931_v54  ;;  %v2466_v57 = vpop.f32.mrb[3].mxu0 }
 0x31e   : > { %v2950_v58 = vpack.c.bf16 %v932_v56, %v932_v56  ;;  %938 = vrot.lane.b32.xlu0 %v2948_v55, %s2712_s27 }
 0x320   : > { %988 = vrot.lane.b32.xlu1 %v2950_v58, %s2712_s27  ;;  %s2722_s27 = smov 40  }
 0x390   : > { %v939_v59 = vpop.permute.xlu0 %938 }
 0x391   : > { %v945_v60 = vsel %vm940_vm4, %v939_v59, 0 }
 0x392   : > { %2468 = vmatpush3.bf16.xpose.msra.mxu0 %v945_v60  ;;  %v989_v61 = vpop.permute.xlu1 %988 }
 0x393   : > { %2473 = vmatprep.subr.bf16.mxu0 %v2710_v31  ;;  %v994_v62 = vsel %vm940_vm4, %v989_v61, 0 }
 0x399   : > { %2470 = vmatmul.mubr.msk.bf16.vlgmr.msra.gmra.mrb[4].mxu0 %vm940_vm4, %v2948_v55 }
 0x39a   : > { %2474 = vmatpush3.bf16.xpose.msra.mxu0 %v994_v62  ;;  %2475 = vmatprep.mubr.msk.bf16.mxu0 %vm2711_vm3, %v2710_v31 }
 0x39b   : > { %2485 = vmatprep.subr.bf16.mxu0 %v2710_v31 }
 0x3a1   : > { %2476 = vmatmul.mubr.msk.bf16.vlgmr.msra.gmra.mrb[8].mxu0 %vm940_vm4, %v2950_v58 }
 0x3a2   : > { %2487 = vmatprep.mubr.msk.bf16.mxu0 %vm2711_vm3, %v2710_v31 }
 0x46c   : > { %v981_v63 = vpop.f32.mrb[4].mxu0 }
 0x46d   : > { %v2471_v0 = vpop.f32.mrb[5].mxu0  ;;  %v1036_v1 = vsel %vm940_vm4, %v981_v63, -inf }
 0x46e   : > { %1037 = vmax.xlane.f32.xlu1 %v1036_v1  ;;  %v984_v2 = vpop.f32.mrb[6].mxu0 }
 0x46f   : > { %v2472_v3 = vpop.f32.mrb[7].mxu0 }
 0x474   : > { %v1030_v4 = vpop.f32.mrb[8].mxu0 }
 0x475   : > { %v2477_v5 = vpop.f32.mrb[9].mxu0  ;;  %v1039_v6 = vsel %vm940_vm4, %v1030_v4, -inf }
 0x476   : > { %1040 = vmax.xlane.f32.xlu0 %v1039_v6  ;;  %v1033_v7 = vpop.f32.mrb[10].mxu0 }
 0x477   : > { %v2478_v8 = vpop.f32.mrb[11].mxu0 }
 0x47f   : > { %1105 = vrot.lane.b32.xlu1 %v2950_v58, %s2713_s30 }
 0x483   : > { %1159 = vrot.lane.b32.xlu1 %v2948_v55, %s2714_s18 }
 0x487   : > { %1209 = vrot.lane.b32.xlu1 %v2950_v58, %s2714_s18  ;;  %s2723_s18 = smov 8  }
 0x48b   : > { %1207 = vrot.lane.b32.xlu1 %v2950_v58, %s2715_s0 }
 0x48c   : > { %1056 = vrot.lane.b32.xlu0 %v2948_v55, %s2713_s30  ;;  %s3245_s30 = sld [smem:[#allocation4_spill]] }
 0x48f   : > { %1325 = vrot.lane.b32.xlu1 %v2950_v58, %s2716_s19 }
 0x490   : > { %1157 = vrot.lane.b32.xlu0 %v2948_v55, %s2715_s0  ;;  %s2724_s0 = smov 16  }
 0x494   : > { %1277 = vrot.lane.b32.xlu0 %v2948_v55, %s2716_s19  ;;  %s2725_s19 = smov 24  }
 0x4fb   : > { %v1038_v9 = vpop.xlane.xlu1 %1037 }
 0x4fc   : > { %v1042_v10 = vsub.f32 %v981_v63, %v1038_v9 }
 0x4fe   : > { %v1044_v11 = vmul.f32 1.442695, %v1042_v10 }
 0x4ff   : > { %v1106_v12 = vpop.permute.xlu1 %1105 }
 0x500   : > { %2660 = vpow2.f32 %v1044_v11  ;;  %v1111_v13 = vsel %vm1061_vm5, %v1106_v12, 0 }
 0x501   : > { %2486 = vmatpush3.bf16.msra.mxu0 %v1111_v13 }
 0x502   : > { %2497 = vmatprep.subr.bf16.mxu0 %v2710_v31 }
 0x503   : > { %v1041_v14 = vpop.xlane.xlu0 %1040  ;;  %v1160_v20 = vpop.permute.xlu1 %1159 }
 0x504   : > { %v1043_v15 = vsub.f32 %v1030_v4, %v1041_v14  ;;  %v1165_v26 = vsel %vm940_vm4, %v1160_v20, 0 }
 0x506   : > { %v1046_v18 = vmul.f32 1.442695, %v1043_v15 }
 0x507   : > { %v1057_v19 = vpop.permute.xlu0 %1056  ;;  %v1210_v24 = vpop.permute.xlu1 %1209 }
 0x508   : > { %2662 = vpow2.f32 %v1046_v18  ;;  %v1063_v21 = vsel %vm1061_vm5, %v1057_v19, 0  ;;  %v1215_v30 = vsel %vm940_vm4, %v1210_v24, 0 }
 0x509   : > { %2480 = vmatpush3.bf16.msra.mxu1 %v1063_v21 }
 0x50a   : > { %v2979_v22 = vpop.eup %2660  ;;  %2491 = vmatprep.subr.bf16.mxu1 %v2710_v31 }
 0x50b   : > { %v1054_v23 = vpack.c.bf16 %v2979_v22, %v2979_v22  ;;  %v1158_v25 = vpop.permute.xlu0 %1157  ;;  %v1208_v29 = vpop.permute.xlu1 %1207 }
 0x50d   : > { %2482 = vmatmul.mubr.msk.bf16.vlgmr.msra.gmra.mrb[0].mxu1 %vm940_vm4, %v1054_v23 }
 0x50e   : > { %2493 = vmatprep.mubr.msk.bf16.mxu1 %vm2711_vm3, %v2710_v31 }
 0x50f   : > { %v1278_v32 = vpop.permute.xlu0 %1277  ;;  %v1326_v34 = vpop.permute.xlu1 %1325 }
 0x510   : > { %v1283_v33 = vsel %vm1061_vm5, %v1278_v32, 0  ;;  %v1331_v35 = vsel %vm1061_vm5, %v1326_v34, 0 }
 0x512   : > { %v2988_v27 = vpop.eup %2662  ;;  %2492 = vmatpush3.bf16.xpose.msra.mxu1 %v1165_v26 }
 0x513   : > { %v1055_v28 = vpack.c.bf16 %v2988_v27, %v2988_v27  ;;  %2503 = vmatprep.subr.bf16.mxu1 %v2710_v31 }
 0x515   : > { %2488 = vmatmul.mubr.msk.bf16.vlgmr.msra.gmra.mrb[12].mxu0 %vm940_vm4, %v1055_v28 }
 0x516   : > { %2498 = vmatpush3.bf16.xpose.msra.mxu0 %v1215_v30  ;;  %2499 = vmatprep.mubr.msk.bf16.mxu0 %vm2711_vm3, %v2710_v31 }
 0x517   : > { %2509 = vmatprep.subr.bf16.mxu0 %v2710_v31 }
 0x519   : > { %2494 = vmatmul.mubr.msk.bf16.vlgmr.msra.gmra.mrb[4].mxu1 %vm940_vm4, %v1158_v25 }
 0x51a   : > { %2504 = vmatpush3.bf16.msra.mxu1 %v1283_v33  ;;  %2505 = vmatprep.mubr.msk.bf16.mxu1 %vm2711_vm3, %v2710_v31 }
 0x51b   : > { %2515 = vmatprep.subr.bf16.mxu1 %v2710_v31 }
 0x51d   : > { %2500 = vmatmul.mubr.msk.bf16.vlgmr.msra.gmra.mrb[16].mxu0 %vm940_vm4, %v1208_v29 }
 0x51e   : > { %2510 = vmatpush3.bf16.msra.mxu0 %v1331_v35  ;;  %2511 = vmatprep.mubr.msk.bf16.mxu0 %vm2711_vm3, %v2710_v31 }
 0x51f   : > { %2521 = vmatprep.subr.bf16.mxu0 %v2710_v31 }
 0x5e0   : > { %v3008_v36 = vpop.f32.mrb[0].mxu1 }
 0x5e1   : > { %v2483_v37 = vpop.f32.mrb[1].mxu1 }
 0x5e2   : > { %v1102_v38 = vpop.f32.mrb[2].mxu1 }
 0x5e3   : > { %v2484_v39 = vpop.f32.mrb[3].mxu1 }
 0x5e8   : > { %v3010_v40 = vpop.f32.mrb[12].mxu0 }
 0x5e9   : > { %v2489_v41 = vpop.f32.mrb[13].mxu0 }
 0x5ea   : > { %v1150_v42 = vpop.f32.mrb[14].mxu0 }
 0x5eb   : > { %v2490_v43 = vpop.f32.mrb[15].mxu0 }
 0x5ec   : > { %v1201_v44 = vpop.f32.mrb[4].mxu1 }
 0x5ed   : > { %v2495_v45 = vpop.f32.mrb[5].mxu1  ;;  %v1257_v46 = vsel %vm940_vm4, %v1201_v44, -inf }
 0x5ee   : > { %1258 = vmax.xlane.f32.xlu0 %v1257_v46  ;;  %v1204_v47 = vpop.f32.mrb[6].mxu1 }
 0x5ef   : > { %v2496_v48 = vpop.f32.mrb[7].mxu1 }
 0x5f0   : > { %v1251_v49 = vpop.f32.mrb[16].mxu0 }
 0x5f1   : > { %v2501_v50 = vpop.f32.mrb[17].mxu0  ;;  %v1260_v51 = vsel %vm940_vm4, %v1251_v49, -inf }
 0x5f2   : > { %1261 = vmax.xlane.f32.xlu1 %v1260_v51  ;;  %v1254_v52 = vpop.f32.mrb[18].mxu0 }
 0x5f3   : > { %v2502_v53 = vpop.f32.mrb[19].mxu0 }
 0x603   : > { %1429 = vrot.lane.b32.xlu1 %v2950_v58, %s2717_s21 }
 0x604   : > { %1379 = vrot.lane.b32.xlu0 %v2948_v55, %s2717_s21 }
 0x607   : > { %1427 = vrot.lane.b32.xlu1 %v2950_v58, %s2718_s20 }
 0x608   : > { %1377 = vrot.lane.b32.xlu0 %v2948_v55, %s2718_s20  ;;  %s3249_s20 = sld [smem:[#allocation12_spill]] (!%p2389_p5) }
 0x60b   : > { %1545 = vrot.lane.b32.xlu1 %v2950_v58, %s2719_s23 }
 0x60c   : > { %1497 = vrot.lane.b32.xlu0 %v2948_v55, %s2719_s23  ;;  %s3246_s23 = scalar_lea.vmem %s3212_s9, %s2833_s29  ;;  %s3247_s29 = sld [smem:[#allocation10_spill]] (!%p2389_p5) }
 0x67b   : > { %v1259_v54 = vpop.xlane.xlu0 %1258 }
 0x67c   : > { %v1263_v56 = vsub.f32 %v1201_v44, %v1259_v54 }
 0x67e   : > { %v1265_v57 = vmul.f32 1.442695, %v1263_v56 }
 0x67f   : > { %v1262_v59 = vpop.xlane.xlu1 %1261  ;;  %v1380_v62 = vpop.permute.xlu0 %1379 }
 0x680   : > { %2664 = vpow2.f32 %v1265_v57  ;;  %v1264_v60 = vsub.f32 %v1251_v49, %v1262_v59  ;;  %v1385_v3 = vsel %vm940_vm4, %v1380_v62, 0 }
 0x682   : > { %v1267_v61 = vmul.f32 1.442695, %v1264_v60 }
 0x683   : > { %v1430_v0 = vpop.permute.xlu1 %1429  ;;  %v1378_v2 = vpop.permute.xlu0 %1377 }
 0x684   : > { %2666 = vpow2.f32 %v1267_v61  ;;  %v1435_v7 = vsel %vm940_vm4, %v1430_v0, 0 }
 0x687   : > { %v1428_v6 = vpop.permute.xlu1 %1427  ;;  %v1498_v8 = vpop.permute.xlu0 %1497 }
 0x688   : > { %v1503_v9 = vsel %vm1061_vm5, %v1498_v8, 0 }
 0x68a   : > { %v3020_v63 = vpop.eup %2664 }
 0x68b   : > { %v1275_v1 = vpack.c.bf16 %v3020_v63, %v3020_v63  ;;  %v1546_v10 = vpop.permute.xlu1 %1545 }
 0x68c   : > { %v1551_v11 = vsel %vm1061_vm5, %v1546_v10, 0 }
 0x68d   : > { %2506 = vmatmul.mubr.msk.bf16.vlgmr.msra.gmra.mrb[8].mxu1 %vm940_vm4, %v1275_v1 }
 0x68e   : > { %v3026_v4 = vpop.eup %2666  ;;  %2516 = vmatpush3.bf16.xpose.msra.mxu1 %v1385_v3  ;;  %2517 = vmatprep.mubr.msk.bf16.mxu1 %vm2711_vm3, %v2710_v31 }
 0x68f   : > { %v1276_v5 = vpack.c.bf16 %v3026_v4, %v3026_v4  ;;  %2527 = vmatprep.subr.bf16.mxu1 %v2710_v31 }
 0x691   : > { %2512 = vmatmul.mubr.msk.bf16.vlgmr.msra.gmra.mrb[20].mxu0 %vm940_vm4, %v1276_v5 }
 0x692   : > { %2522 = vmatpush3.bf16.xpose.msra.mxu0 %v1435_v7  ;;  %2523 = vmatprep.mubr.msk.bf16.mxu0 %vm2711_vm3, %v2710_v31 }
 0x693   : > { %2533 = vmatprep.subr.bf16.mxu0 %v2710_v31 }
 0x695   : > { %2518 = vmatmul.mubr.msk.bf16.vlgmr.msra.gmra.mrb[12].mxu1 %vm940_vm4, %v1378_v2 }
 0x696   : > { %2528 = vmatpush3.bf16.msra.mxu1 %v1503_v9  ;;  %2529 = vmatprep.mubr.msk.bf16.mxu1 %vm2711_vm3, %v2710_v31 }
 0x697   : > { %2539 = vmatprep.subr.bf16.mxu1 %v2710_v31 }
 0x699   : > { %2524 = vmatmul.mubr.msk.bf16.vlgmr.msra.gmra.mrb[24].mxu0 %vm940_vm4, %v1428_v6 }
 0x69a   : > { %2534 = vmatpush3.bf16.msra.mxu0 %v1551_v11  ;;  %2535 = vmatprep.mubr.msk.bf16.mxu0 %vm2711_vm3, %v2710_v31  ;;  %v1269_v11 = vsel %vm940_vm4, %v3020_v63, 0.0 }
 0x69b   : > { %2545 = vmatprep.subr.bf16.mxu0 %v2710_v31 }
 0x760   : > { %v3048_v12 = vpop.f32.mrb[8].mxu1 }
 0x761   : > { %v2507_v13 = vpop.f32.mrb[9].mxu1 }
 0x762   : > { %v1322_v14 = vpop.f32.mrb[10].mxu1 }
 0x763   : > { %v2508_v15 = vpop.f32.mrb[11].mxu1  ;;  %v1272_v14 = vsel %vm940_vm4, %v3026_v4, 0.0 }
 0x764   : > { %v3050_v18 = vpop.f32.mrb[20].mxu0 }
 0x765   : > { %v2513_v19 = vpop.f32.mrb[21].mxu0 }
 0x766   : > { %v1370_v20 = vpop.f32.mrb[22].mxu0 }
 0x767   : > { %v2514_v21 = vpop.f32.mrb[23].mxu0 }
 0x768   : > { %v1421_v23 = vpop.f32.mrb[12].mxu1 }
 0x769   : > { %v2519_v24 = vpop.f32.mrb[13].mxu1  ;;  %v1477_v25 = vsel %vm940_vm4, %v1421_v23, -inf }
 0x76a   : > { %1478 = vmax.xlane.f32.xlu0 %v1477_v25  ;;  %v1424_v26 = vpop.f32.mrb[14].mxu1 }
 0x76b   : > { %v2520_v28 = vpop.f32.mrb[15].mxu1 }
 0x76c   : > { %v1471_v29 = vpop.f32.mrb[24].mxu0 }
 0x76d   : > { %v2525_v30 = vpop.f32.mrb[25].mxu0  ;;  %v1480_v32 = vsel %vm940_vm4, %v1471_v29, -inf }
 0x76e   : > { %1481 = vmax.xlane.f32.xlu1 %v1480_v32  ;;  %v1474_v33 = vpop.f32.mrb[26].mxu0  ;;  %v1048_v32 = vsel %vm940_vm4, %v2979_v22, 0.0 }
 0x76f   : > { %v2526_v34 = vpop.f32.mrb[27].mxu0 }
 0x77f   : > { %1649 = vrot.lane.b32.xlu1 %v2950_v58, %s2720_s22 }
 0x780   : > { %1599 = vrot.lane.b32.xlu0 %v2948_v55, %s2720_s22 }
 0x783   : > { %1647 = vrot.lane.b32.xlu1 %v2950_v58, %s2721_s26 }
 0x784   : > { %1597 = vrot.lane.b32.xlu0 %v2948_v55, %s2721_s26 }
 0x7f7   : > { %v1479_v35 = vpop.xlane.xlu0 %1478 }
 0x7f8   : > { %v1483_v37 = vsub.f32 %v1421_v23, %v1479_v35  ;;  %v1051_v35 = vsel %vm940_vm4, %v2988_v27, 0.0 }
 0x7fa   : > { %v1485_v38 = vmul.f32 1.442695, %v1483_v37 }
 0x7fb   : > { %v1482_v39 = vpop.xlane.xlu1 %1481  ;;  %v1600_v44 = vpop.permute.xlu0 %1599 }
 0x7fc   : > { %2668 = vpow2.f32 %v1485_v38  ;;  %v1484_v41 = vsub.f32 %v1471_v29, %v1482_v39  ;;  %v1605_v46 = vsel %vm940_vm4, %v1600_v44, 0 }
 0x7fe   : > { %v1487_v42 = vmul.f32 1.442695, %v1484_v41 }
 0x7ff   : > { %v1650_v48 = vpop.permute.xlu1 %1649  ;;  %v1598_v51 = vpop.permute.xlu0 %1597 }
 0x800   : > { %2670 = vpow2.f32 %v1487_v42  ;;  %v1655_v50 = vsel %vm940_vm4, %v1650_v48, 0 }
 0x803   : > { %v1648_v52 = vpop.permute.xlu1 %1647 }
 0x806   : > { %v2669_v43 = vpop.eup %2668 }
 0x807   : > { %v1495_v45 = vpack.c.bf16 %v2669_v43, %v2669_v43  ;;  %v1489_v13 = vsel %vm940_vm4, %v2669_v43, 0.0 }
 0x809   : > { %2530 = vmatmul.mubr.msk.bf16.vlgmr.msra.gmra.mrb[16].mxu1 %vm940_vm4, %v1495_v45 }
 0x80a   : > { %v2671_v47 = vpop.eup %2670  ;;  %2540 = vmatpush3.bf16.xpose.msra.mxu1 %v1605_v46  ;;  %2541 = vmatprep.mubr.msk.bf16.mxu1 %vm2711_vm3, %v2710_v31 }
 0x80b   : > { %v1496_v49 = vpack.c.bf16 %v2671_v47, %v2671_v47  ;;  %2551 = vmatprep.subr.bf16.mxu1 %v2710_v31  ;;  %v1492_v15 = vsel %vm940_vm4, %v2671_v47, 0.0 }
 0x80d   : > { %2536 = vmatmul.mubr.msk.bf16.vlgmr.msra.gmra.mrb[28].mxu0 %vm940_vm4, %v1496_v49 }
 0x80e   : > { %2546 = vmatpush3.bf16.xpose.msra.mxu0 %v1655_v50  ;;  %2547 = vmatprep.mubr.msk.bf16.mxu0 %vm2711_vm3, %v2710_v31  ;;  %v2644_v50 = vld [vmem:[%s3245_s30] sm:$0xff]  }
 0x80f   : > { %2557 = vmatprep.subr.bf16.mxu0 %v2710_v31 }
 0x811   : > { %2542 = vmatmul.mubr.msk.bf16.vlgmr.msra.gmra.mrb[20].mxu1 %vm940_vm4, %v1598_v51 }
 0x812   : > { %2553 = vmatprep.mubr.msk.bf16.mxu1 %vm2711_vm3, %v2710_v31 }
 0x815   : > { %2548 = vmatmul.mubr.msk.bf16.vlgmr.msra.gmra.mrb[32].mxu0 %vm940_vm4, %v1648_v52 }
 0x816   : > { %2559 = vmatprep.mubr.msk.bf16.mxu0 %vm2711_vm3, %v2710_v31 }
 0x8dc   : > { %v3074_v53 = vpop.f32.mrb[16].mxu1 }
 0x8dd   : > { %v2531_v54 = vpop.f32.mrb[17].mxu1 }
 0x8de   : > { %v1542_v56 = vpop.f32.mrb[18].mxu1 }
 0x8df   : > { %v2532_v57 = vpop.f32.mrb[19].mxu1 }
 0x8e0   : > { %v3076_v59 = vpop.f32.mrb[28].mxu0 }
 0x8e1   : > { %v2537_v60 = vpop.f32.mrb[29].mxu0 }
 0x8e2   : > { %v1590_v61 = vpop.f32.mrb[30].mxu0 }
 0x8e3   : > { %v2538_v62 = vpop.f32.mrb[31].mxu0 }
 0x8e4   : > { %v1641_v0 = vpop.f32.mrb[20].mxu1 }
 0x8e5   : > { %v2543_v1 = vpop.f32.mrb[21].mxu1  ;;  %v1697_v2 = vsel %vm940_vm4, %v1641_v0, -inf }
 0x8e6   : > { %1698 = vmax.xlane.f32.xlu0 %v1697_v2  ;;  %v1644_v3 = vpop.f32.mrb[22].mxu1 }
 0x8e7   : > { %v2544_v5 = vpop.f32.mrb[23].mxu1 }
 0x8e8   : > { %v1691_v6 = vpop.f32.mrb[32].mxu0 }
 0x8e9   : > { %v2549_v7 = vpop.f32.mrb[33].mxu0  ;;  %v1700_v8 = vsel %vm940_vm4, %v1691_v6, -inf }
 0x8ea   : > { %1701 = vmax.xlane.f32.xlu1 %v1700_v8  ;;  %v1694_v9 = vpop.f32.mrb[34].mxu0 }
 0x8eb   : > { %v2550_v10 = vpop.f32.mrb[35].mxu0 }
 0x8fb   : > { %1765 = vrot.lane.b32.xlu1 %v2950_v58, %s2722_s27 }
 0x8fc   : > { %1717 = vrot.lane.b32.xlu0 %v2948_v55, %s2722_s27 }
 0x91b   : > { %1270 = vadd.xlane.f32.xlu0 %v1269_v11 }
 0x91f   : > { %1490 = vadd.xlane.f32.xlu0 %v1489_v13  ;;  %1273 = vadd.xlane.f32.xlu1 %v1272_v14 }
 0x923   : > { %1493 = vadd.xlane.f32.xlu0 %v1492_v15 }
 0x973   : > { %v1699_v19 = vpop.xlane.xlu0 %1698 }
 0x974   : > { %v1703_v20 = vsub.f32 %v1641_v0, %v1699_v19 }
 0x976   : > { %v1705_v21 = vmul.f32 1.442695, %v1703_v20 }
 0x977   : > { %v1718_v58 = vpop.permute.xlu0 %1717  ;;  %v1702_v23 = vpop.xlane.xlu1 %1701 }
 0x978   : > { %2672 = vpow2.f32 %v1705_v21  ;;  %v1723_v55 = vsel %vm1061_vm5, %v1718_v58, 0  ;;  %v1704_v63 = vsub.f32 %v1691_v6, %v1702_v23 }
 0x979   : > { %2552 = vmatpush3.bf16.msra.mxu1 %v1723_v55 }
 0x97a   : > { %v1707_v24 = vmul.f32 1.442695, %v1704_v63  ;;  %2563 = vmatprep.subr.bf16.mxu1 %v2710_v31 }
 0x97b   : > { %v1766_v25 = vpop.permute.xlu1 %1765 }
 0x97c   : > { %2674 = vpow2.f32 %v1707_v24  ;;  %v1771_v4 = vsel %vm1061_vm5, %v1766_v25, 0 }
 0x97d   : > { %2558 = vmatpush3.bf16.msra.mxu0 %v1771_v4 }
 0x97e   : > { %2571 = vmatprep.subr.bf16.mxu0 %v2710_v31 }
 0x982   : > { %v2673_v26 = vpop.eup %2672 }
 0x983   : > { %v1709_v28 = vsel %vm940_vm4, %v2673_v26, 0.0  ;;  %v1715_v29 = vpack.c.bf16 %v2673_v26, %v2673_v26 }
 0x984   : > { %1710 = vadd.xlane.f32.xlu0 %v1709_v28 }
 0x985   : > { %2554 = vmatmul.mubr.msk.bf16.vlgmr.msra.gmra.mrb[24].mxu1 %vm940_vm4, %v1715_v29 }
 0x986   : > { %v2675_v30 = vpop.eup %2674  ;;  %2567 = vmatprep.mubr.msk.bf16.mxu1 %vm2711_vm3, %v2710_v31  ;;  %2564 = vmatpush3.bf16.msra.mxu1 %v2644_v50  ;;  %v2649_v50 = vld [vmem:[%s2883_s1 + $0x8] sm:$0xff]  }
 0x987   : > { %v1712_v33 = vsel %vm940_vm4, %v2675_v30, 0.0  ;;  %v1716_v34 = vpack.c.bf16 %v2675_v30, %v2675_v30  ;;  %2565 = vmatprep.subr.bf16.mxu1 %v2710_v31 }
 0x988   : > { %1049 = vadd.xlane.f32.xlu0 %v1048_v32  ;;  %1713 = vadd.xlane.f32.xlu1 %v1712_v33 }
 0x989   : > { %2560 = vmatmul.mubr.msk.bf16.vlgmr.msra.gmra.mrb[36].mxu0 %vm940_vm4, %v1716_v34 }
 0x98a   : > { %2575 = vmatprep.mubr.msk.bf16.mxu0 %vm2711_vm3, %v2710_v31 }
 0x98c   : > { %1052 = vadd.xlane.f32.xlu1 %v1051_v35 }
 0x9a8   : > { %v1271_v37 = vpop.xlane.xlu0 %1270 }
 0x9a9   : > { %2676 = vrcp.f32 %v1271_v37 }
 0x9ac   : > { %v1491_v38 = vpop.xlane.xlu0 %1490  ;;  %v1274_v39 = vpop.xlane.xlu1 %1273 }
 0x9ad   : > { %2678 = vrcp.f32 %v1274_v39 }
 0x9ae   : > { %2680 = vrcp.f32 %v1491_v38 }
 0x9b0   : > { %v1494_v22 = vpop.xlane.xlu0 %1493 }
 0x9b1   : > { %2682 = vrcp.f32 %v1494_v22 }
 0x9b3   : > { %v2677_v41 = vpop.eup %2676 }
 0x9b4   : > { %v1375_v44 = vmul.f32 %v2677_v41, %v3048_v12 }
 0x9b7   : > { %v2679_v42 = vpop.eup %2678 }
 0x9b8   : > { %v2681_v43 = vpop.eup %2680  ;;  %v1376_v45 = vmul.f32 %v2679_v42, %v3050_v18  ;;  %v2645_v18 = vld [vmem:[%s3245_s30 + $0x8] sm:$0xff]  }
 0x9b9   : > { %v1595_v47 = vmul.f32 %v2681_v43, %v3074_v53  ;;  %2566 = vmatpush3.bf16.msra.mxu1 %v2645_v18  ;;  %v2652_v18 = vld [vmem:[%s2883_s1 + $0x20] sm:$0xff]  }
 0x9ba   : > { %v2627_v27 = vpack.i.bf16 %v1376_v45, %v1375_v44  ;;  %2579 = vmatprep.subr.bf16.mxu1 %v2710_v31 }
 0x9bb   : > { %v2683_v46 = vpop.eup %2682 }
 0x9bc   : > { %v1596_v48 = vmul.f32 %v2683_v46, %v3076_v59  ;;  %2628 = vrot.lane.b32.xlu0 %v2627_v27, %s2723_s18 }
 0x9be   : > { %v2632_v49 = vpack.i.bf16 %v1596_v48, %v1595_v47  ;;  %v2646_v47 = vld [vmem:[%s2873_s6] sm:$0xff]   ;;  %v2647_v48 = vld [vmem:[%s2873_s6 + $0x8] sm:$0xff]  }
 0x9bf   : > { %2572 = vmatpush3.bf16.msra.mxu0 %v2646_v47 }
 0x9c0   : > { %2633 = vrot.lane.b32.xlu1 %v2632_v49, %s2724_s0  ;;  %2573 = vmatprep.subr.bf16.mxu0 %v2710_v31  ;;  %v2648_v49 = vld [vmem:[%s2883_s1] sm:$0xff]   ;;  %s3248_s0 = sld [smem:[#allocation11_spill]] (!%p2389_p5) }
 0x9c3   : > { %2574 = vmatpush3.bf16.msra.mxu0 %v2647_v48  ;;  %v2390_v48 = vld [vmem:[%s3247_s29] ss:$0 sm:$0xff] (!%p2389_p5) }
 0xa11   : > { %v1711_v51 = vpop.xlane.xlu0 %1710 }
 0xa12   : > { %2684 = vrcp.f32 %v1711_v51  ;;  %v2650_v51 = vld [vmem:[%s2883_s1 + $0x10] sm:$0xff]  }
 0xa15   : > { %v1714_v12 = vpop.xlane.xlu1 %1713  ;;  %v1050_v5 = vpop.xlane.xlu0 %1049 }
 0xa16   : > { %2686 = vrcp.f32 %v1714_v12  ;;  %v2651_v12 = vld [vmem:[%s2883_s1 + $0x18] sm:$0xff]  }
 0xa17   : > { %2688 = vrcp.f32 %v1050_v5  ;;  %v2375_v5 = vld [vmem:[%s716_s24] ss:$0 sm:$0xff] }
 0xa19   : > { %v1053_v6 = vpop.xlane.xlu1 %1052 }
 0xa1a   : > { %2690 = vrcp.f32 %v1053_v6 }
 0xa1c   : > { %v2685_v56 = vpop.eup %2684 }
 0xa20   : > { %v2687_v59 = vpop.eup %2686 }
 0xa21   : > { %v2689_v8 = vpop.eup %2688 }
 0xa22   : > { %v1155_v19 = vmul.f32 %v2689_v8, %v3008_v36  ;;  %v2370_v36 = vld [vmem:[%s3246_s23] ss:$0 sm:$0xff] }
 0xa24   : > { %v2691_v10 = vpop.eup %2690 }
 0xa25   : > { %v1156_v20 = vmul.f32 %v2691_v10, %v3010_v40  ;;  %v2654_v10 = vld [vmem:[%s2883_s1 + $0x30] sm:$0xff]  }
 0xa2e   : > { %v2629_v7 = vpop.permute.xlu0 %2628 }
 0xa2f   : > { %v2631_v11 = vunpack.i.h.bf16 %v2629_v7  ;;  %v2630_v13 = vunpack.i.l.bf16 %v2629_v7 }
 0xa31   : > { %v1841_v58 = vsel %vm940_vm4, %v1155_v19, %v2630_v13  ;;  %v1842_v23 = vsel %vm940_vm4, %v1156_v20, %v2631_v11  ;;  %v2655_v11 = vld [vmem:[%s2883_s1 + $0x38] sm:$0xff]   ;;  %v2376_v13 = vld [vmem:[%s724_s8] ss:$0 sm:$0xff] }
 0xa32   : > { %v2634_v9 = vpop.permute.xlu1 %2633 }
 0xa33   : > { %v2636_v14 = vunpack.i.h.bf16 %v2634_v9  ;;  %v2635_v15 = vunpack.i.l.bf16 %v2634_v9 }
 0xa35   : > { %v1845_v24 = vsel %vm1843_vm6, %v1842_v23, %v2636_v14  ;;  %v1844_v25 = vsel %vm1843_vm6, %v1841_v58, %v2635_v15 }
 0xa58   : > { %v1759_v52 = vpop.f32.mrb[24].mxu1 }
 0xa59   : > { %v2555_v53 = vpop.f32.mrb[25].mxu1  ;;  %v1815_v61 = vmul.f32 %v2685_v56, %v1759_v52  ;;  %v2653_v52 = vld [vmem:[%s2883_s1 + $0x28] sm:$0xff]  }
 0xa5a   : > { %v1762_v54 = vpop.f32.mrb[26].mxu1 }
 0xa5b   : > { %v2556_v57 = vpop.f32.mrb[27].mxu1 }
 0xa5c   : > { %v1807_v60 = vpop.f32.mrb[36].mxu0 }
 0xa5d   : > { %v1816_v62 = vmul.f32 %v2687_v59, %v1807_v60  ;;  %v2561_v0 = vpop.f32.mrb[37].mxu0 }
 0xa5e   : > { %v1810_v1 = vpop.f32.mrb[38].mxu0  ;;  %v2374_v0 = vld [vmem:[%s713_s16] ss:$0 sm:$0xff] }
 0xa5f   : > { %v2637_v2 = vpack.i.bf16 %v1816_v62, %v1815_v61  ;;  %v2562_v3 = vpop.f32.mrb[39].mxu0 }
 0xa61   : > { %2638 = vrot.lane.b32.xlu1 %v2637_v2, %s2725_s19 }
 0xad3   : > { %v2639_v21 = vpop.permute.xlu1 %2638 }
 0xad4   : > { %v2641_v55 = vunpack.i.h.bf16 %v2639_v21  ;;  %v2640_v63 = vunpack.i.l.bf16 %v2639_v21 }
 0xad6   : > { %v1848_v4 = vsel %vm1846_vm7, %v1845_v24, %v2641_v55  ;;  %v1847_v26 = vsel %vm1846_vm7, %v1844_v25, %v2640_v63 }
 0xad7   : > { %v1849_v28 = vpack.c.bf16 %v1848_v4, %v1847_v26 }
 0xad9   : > { %2568 = vmatmul.mubr.msk.bf16.vlgmr.msra.gmra.mrb[28].mxu1 %vm818_vm2, %v1849_v28 }
 0xada   : > { %2595 = vmatprep.mubr.msk.bf16.mxu1 %vm2711_vm3, %v2710_v31  ;;  %2580 = vmatpush3.bf16.msra.mxu1 %v2648_v49 }
 0xadb   : > { %2581 = vmatprep.subr.bf16.mxu1 %v2710_v31 }
 0xade   : > { %2582 = vmatpush3.bf16.msra.mxu1 %v2649_v50  ;;  %v2391_v50 = vld [vmem:[%s3248_s0] ss:$0 sm:$0xff] (!%p2389_p5) }
 0xadf   : > { %2583 = vmatprep.subr.bf16.mxu1 %v2710_v31 }
 0xae2   : > { %2584 = vmatpush3.bf16.msra.mxu1 %v2650_v51 }
 0xae3   : > { %2585 = vmatprep.subr.bf16.mxu1 %v2710_v31 }
 0xae6   : > { %2586 = vmatpush3.bf16.msra.mxu1 %v2651_v12 }
 0xae7   : > { %2587 = vmatprep.subr.bf16.mxu1 %v2710_v31 }
 0xaea   : > { %2588 = vmatpush3.bf16.msra.mxu1 %v2652_v18 }
 0xaeb   : > { %2589 = vmatprep.subr.bf16.mxu1 %v2710_v31 }
 0xaee   : > { %2590 = vmatpush3.bf16.msra.mxu1 %v2653_v52 }
 0xaef   : > { %2591 = vmatprep.subr.bf16.mxu1 %v2710_v31 }
 0xaf2   : > { %2592 = vmatpush3.bf16.msra.mxu1 %v2654_v10 }
 0xaf3   : > { %2593 = vmatprep.subr.bf16.mxu1 %v2710_v31  ;;  %v2380_v31 = vld [vmem:[%s732_s2] ss:$0 sm:$0xff] }
 0xaf6   : > { %2594 = vmatpush3.bf16.msra.mxu1 %v2655_v11 }
 0xbac   : > { %v1905_v40 = vpop.f32.mrb[28].mxu1 }
 0xbad   : > { %v1906_v29 = vadd.f32 %v2370_v36, %v1905_v40  ;;  %v2569_v30 = vpop.f32.mrb[29].mxu1 }
 0xbae   : > { %v1908_v32 = vpop.f32.mrb[30].mxu1 }
 0xbaf   : > { %v3125_v33 = vadd.f32 %v1906_v29, %v2908_v16  ;;  %v1909_v34 = vadd.f32 %v2370_v36, %v1908_v32  ;;  %v2570_v35 = vpop.f32.mrb[31].mxu1 }
 0xbb1   : > { %v3128_v37 = vadd.f32 %v1909_v34, %v2910_v17  ;;  %v1916_v38 = vsel %vm818_vm2, %v3125_v33, 0.0 }
 0xbb2   : > { %1917 = vadd.xlane.f32.xlu1 %v1916_v38 }
 0xbb3   : > { %v1919_v39 = vsel %vm818_vm2, %v3128_v37, 0.0 }
 0xbb4   : > { %1920 = vadd.xlane.f32.xlu0 %v1919_v39 }
 0xc3f   : > { %v1918_v22 = vpop.xlane.xlu1 %1917 }
 0xc40   : > { %v1922_v41 = vmul.f32 0.03125, %v1918_v22 }
 0xc41   : > { %v1921_v16 = vpop.xlane.xlu0 %1920 }
 0xc42   : > { %v1924_v42 = vsub.f32 %v3125_v33, %v1922_v41  ;;  %v1923_v43 = vmul.f32 0.03125, %v1921_v16 }
 0xc44   : > { %v1925_v17 = vsub.f32 %v3128_v37, %v1923_v43  ;;  %v1926_v44 = vmul.f32 %v1924_v42, %v1924_v42 }
 0xc46   : > { %v1928_v45 = vsel %vm818_vm2, %v1926_v44, 0.0  ;;  %v1927_v46 = vmul.f32 %v1925_v17, %v1925_v17 }
 0xc47   : > { %1929 = vadd.xlane.f32.xlu0 %v1928_v45 }
 0xc48   : > { %v1931_v27 = vsel %vm818_vm2, %v1927_v46, 0.0 }
 0xc4b   : > { %1932 = vadd.xlane.f32.xlu0 %v1931_v27 }
 0xcd4   : > { %v1930_v53 = vpop.xlane.xlu0 %1929 }
 0xcd5   : > { %v1934_v54 = vmul.f32 0.03125, %v1930_v53 }
 0xcd7   : > { %v1936_v56 = vadd.f32 1e-05, %v1934_v54 }
 0xcd8   : > { %v1933_v57 = vpop.xlane.xlu0 %1932 }
 0xcd9   : > { %2692 = vrsqrt.f32 %v1936_v56  ;;  %v1935_v59 = vmul.f32 0.03125, %v1933_v57 }
 0xcdb   : > { %v1937_v60 = vadd.f32 1e-05, %v1935_v59 }
 0xcdd   : > { %2694 = vrsqrt.f32 %v1937_v60 }
 0xce3   : > { %v2693_v61 = vpop.eup %2692 }
 0xce4   : > { %v1940_v62 = vmul.f32 %v2693_v61, %v1924_v42 }
 0xce6   : > { %v1948_v2 = vmul.f32 %v2374_v0, %v1940_v62 }
 0xce7   : > { %v2695_v1 = vpop.eup %2694 }
 0xce8   : > { %v1941_v3 = vmul.f32 %v2695_v1, %v1925_v17  ;;  %v1956_v7 = vadd.f32 %v2375_v5, %v1948_v2 }
 0xcea   : > { %v1949_v6 = vmul.f32 %v2374_v0, %v1941_v3 }
 0xcec   : > { %v1957_v8 = vadd.f32 %v2375_v5, %v1949_v6 }
 0xcee   : > { %v1980_v9 = vpack.c.bf16 %v1957_v8, %v1956_v7 }
 0xcf0   : > { %2576 = vmatmul.mubr.msk.bf16.vlgmr.msra.gmra.mrb[40].mxu0 %vm818_vm2, %v1980_v9 }
 0xdc3   : > { %v2036_v14 = vpop.f32.mrb[40].mxu0 }
 0xdc4   : > { %v2037_v15 = vadd.f32 %v2376_v13, %v2036_v14  ;;  %v2577_v19 = vpop.f32.mrb[41].mxu0 }
 0xdc5   : > { %v2039_v20 = vpop.f32.mrb[42].mxu0 }
 0xdc6   : > { %v2040_v21 = vadd.f32 %v2376_v13, %v2039_v20  ;;  %v2578_v58 = vpop.f32.mrb[43].mxu0  ;;  %v2043_v23 = vmax.f32 %v2037_v15, 0.0 }
 0xdc8   : > { %v2044_v55 = vmax.f32 %v2040_v21, 0.0 }
 0xdca   : > { %v2045_v63 = vpack.c.bf16 %v2044_v55, %v2043_v23 }
 0xdcc   : > { %2596 = vmatmul.mubr.bf16.vlgmr.msra.gmra.mrb[32].mxu1 %v2045_v63 }
 0xe9f   : > { %v2134_v24 = vpop.f32.mrb[32].mxu1 }
 0xea0   : > { %v2135_v25 = vadd.f32 %v2380_v31, %v2134_v24  ;;  %v2597_v4 = vpop.f32.mrb[33].mxu1  ;;  %2148 = sbr.rel (%p2389_p5) target bundleno = 4066 (0xfe2), region = 100 }
 0xea1   : > { %v2137_v26 = vpop.f32.mrb[34].mxu1 }
 0xea2   : > { %v2141_v28 = vadd.f32 %v2135_v25, %v3125_v33  ;;  %v2138_v36 = vadd.f32 %v2380_v31, %v2137_v26  ;;  %v2598_v40 = vpop.f32.mrb[35].mxu1 }
 0xea4   : > { %2143 = vst.msk [vmem:[#allocation2] sm:$0xff] %vm818_vm2, %v2141_v28  ;;  %v2142_v29 = vadd.f32 %v2138_v36, %v3128_v37  ;;  %v2151_v30 = vsel (!%p2389_p5), %vm818_vm2, %v2141_v28, 0.0 }
 0xea5   : > { %2152 = vadd.xlane.f32.xlu0 (!%p2389_p5), %v2151_v30 }
 0xea6   : > { %2144 = vst.msk [vmem:[#allocation2 + $0x8] sm:$0xff] %vm818_vm2, %v2142_v29  ;;  %v2154_v32 = vsel (!%p2389_p5), %vm818_vm2, %v2142_v29, 0.0 }
 0xea9   : > { %2155 = vadd.xlane.f32.xlu0 %v2154_v32 }
 0xf32   : > { %v2153_v34 = vpop.xlane.xlu0 %2152 }
 0xf33   : > { %v2157_v35 = vmul.f32 0.03125, %v2153_v34 }
 0xf35   : > { %v2159_v33 = vsub.f32 %v2141_v28, %v2157_v35 }
 0xf36   : > { %v2156_v38 = vpop.xlane.xlu0 %2155 }
 0xf37   : > { %v2158_v39 = vmul.f32 0.03125, %v2156_v38  ;;  %v2161_v22 = vmul.f32 %v2159_v33, %v2159_v33 }
 0xf39   : > { %v2160_v41 = vsub.f32 %v2142_v29, %v2158_v39  ;;  %v2163_v37 = vsel %vm818_vm2, %v2161_v22, 0.0 }
 0xf3a   : > { %2164 = vadd.xlane.f32.xlu1 %v2163_v37 }
 0xf3b   : > { %v2162_v16 = vmul.f32 %v2160_v41, %v2160_v41 }
 0xf3d   : > { %v2166_v42 = vsel %vm818_vm2, %v2162_v16, 0.0 }
 0xf3e   : > { %2167 = vadd.xlane.f32.xlu1 %v2166_v42 }
 0xfc7   : > { %v2165_v43 = vpop.xlane.xlu1 %2164 }
 0xfc8   : > { %v2169_v17 = vmul.f32 0.03125, %v2165_v43 }
 0xfca   : > { %v2171_v44 = vadd.f32 1e-05, %v2169_v17 }
 0xfcb   : > { %v2168_v45 = vpop.xlane.xlu1 %2167 }
 0xfcc   : > { %2696 = vrsqrt.f32 %v2171_v44  ;;  %v2170_v46 = vmul.f32 0.03125, %v2168_v45 }
 0xfce   : > { %v2172_v27 = vadd.f32 1e-05, %v2170_v46 }
 0xfd0   : > { %2698 = vrsqrt.f32 %v2172_v27 }
 0xfd6   : > { %v2697_v47 = vpop.eup %2696 }
 0xfd7   : > { %v2175_v49 = vmul.f32 %v2697_v47, %v2159_v33 }
 0xfd9   : > { %v2183_v51 = vmul.f32 %v2390_v48, %v2175_v49 }
 0xfda   : > { %v2699_v12 = vpop.eup %2698 }
 0xfdb   : > { %v2191_v18 = vadd.f32 %v2391_v50, %v2183_v51  ;;  %v2176_v52 = vmul.f32 %v2699_v12, %v2160_v41 }
 0xfdd   : > { %2193 = vst.msk [vmem:[%s3249_s20] sm:$0xff] %vm818_vm2, %v2191_v18  ;;  %v2184_v53 = vmul.f32 %v2390_v48, %v2176_v52 }
 0xfdf   : > { %v2192_v54 = vadd.f32 %v2391_v50, %v2184_v53 }
 0xfe1   : > { %2194 = vst.msk [vmem:[%s3249_s20 + $0x8] sm:$0xff] %vm818_vm2, %v2192_v54 }
 0xfe2 PF: > { %s3250_s22 = sld [smem:[#allocation3_spill]] }
 0xfe8   : > { %s28_s27 = sadd.s32 1, %s3250_s22  }
 0xfe9   : > { %p25_p6 = scmp.ge.s32.totalorder %s28_s27, 4  }
 0xfeb   :  { %27 = sbr.rel (!%p25_p6) target bundleno = 9 (0x9), region = 159 }

// kernel: transformer_forward.3
= control target key start
LH: loop header
LB: loop body
LE: loop exit
PB: predicated region body
PF: predicated region fallthrough
CT: control target
= control target key end

     0   :  { %s5429_s0 = inlined_call_operand.vmem [shape: s32[16,1], index: 0, kind: input, shape index: {}]   ;;  %s5430_s1 = inlined_call_operand.vmem [shape: bf16[16,32], index: 1, kind: input, shape index: {}]   ;;  %s5431_s2 = inlined_call_operand.vmem [shape: f32[8,32], index: 2, kind: input, shape index: {}]   ;;  %s5432_s3 = inlined_call_operand.vmem [shape: f32[2,8,32], index: 3, kind: input, shape index: {}]   ;;  %s5433_s4 = inlined_call_operand.vmem [shape: f32[2,1,32], index: 4, kind: input, shape index: {}]   ;;  %s5434_s5 = inlined_call_operand.vmem [shape: f32[2,1,32], index: 5, kind: input, shape index: {}]   ;;  %s5435_s6 = inlined_call_operand.vmem [shape: bf16[2,32,96], index: 6, kind: input, shape index: {}]   ;;  %s5436_s7 = inlined_call_operand.vmem [shape: f32[2,1,96], index: 7, kind: input, shape index: {}]   ;;  %s5437_s8 = inlined_call_operand.vmem [shape: bf16[2,32,32], index: 8, kind: input, shape index: {}]   ;;  %s5438_s9 = inlined_call_operand.vmem [shape: f32[2,1,32], index: 9, kind: input, shape index: {}]   ;;  %s5439_s10 = inlined_call_operand.vmem [shape: f32[2,1,32], index: 10, kind: input, shape index: {}]   ;;  %s5440_s11 = inlined_call_operand.vmem [shape: f32[2,1,32], index: 11, kind: input, shape index: {}]   ;;  %s5441_s12 = inlined_call_operand.vmem [shape: bf16[2,32,96], index: 12, kind: input, shape index: {}]   ;;  %s5442_s13 = inlined_call_operand.vmem [shape: f32[2,1,96], index: 13, kind: input, shape index: {}]   ;;  %s5443_s14 = inlined_call_operand.vmem [shape: bf16[2,32,32], index: 14, kind: input, shape index: {}]   ;;  %s5444_s15 = inlined_call_operand.vmem [shape: f32[2,1,32], index: 15, kind: input, shape index: {}]   ;;  %s5445_s16 = inlined_call_operand.vmem [shape: f32[2,1,32], index: 16, kind: input, shape index: {}]   ;;  %s5446_s17 = inlined_call_operand.vmem [shape: f32[2,1,32], index: 17, kind: input, shape index: {}]   ;;  %s5447_s18 = inlined_call_operand.vmem [shape: bf16[2,32,128], index: 18, kind: input, shape index: {}]   ;;  %s5448_s19 = inlined_call_operand.vmem [shape: f32[2,1,128], index: 19, kind: input, shape index: {}]   ;;  %s5449_s20 = inlined_call_operand.vmem [shape: bf16[2,128,32], index: 20, kind: input, shape index: {}]   ;;  %s5450_s21 = inlined_call_operand.vmem [shape: f32[2,1,32], index: 21, kind: input, shape index: {}]   ;;  %s5451_s22 = inlined_call_operand.vmem [shape: f32[1,32], index: 22, kind: input, shape index: {}]   ;;  %s5452_s23 = inlined_call_operand.hbm [shape: f32[1,32], index: 23, kind: input, shape index: {}]   ;;  %s5453_s24 = inlined_call_operand.hbm [shape: f32[2,8,32], index: 24, kind: output, shape index: {}]  }
   0x1   :  { %5465 = sst [smem:[#allocation12_spill]] %s5429_s0 }
   0x2   :  { %5466 = sst [smem:[#allocation13_spill]] %s5430_s1 }
   0x3   :  { %5467 = sst [smem:[#allocation14_spill]] %s5431_s2 }
   0x4   :  { %5468 = sst [smem:[#allocation15_spill]] %s5432_s3 }
   0x5   :  { %5469 = sst [smem:[#allocation16_spill]] %s5433_s4 }
   0x6   :  { %5470 = sst [smem:[#allocation17_spill]] %s5434_s5 }
   0x7   :  { %5471 = sst [smem:[#allocation18_spill]] %s5435_s6 }
   0x8   :  { %5472 = sst [smem:[#allocation19_spill]] %s5436_s7 }
   0x9   :  { %5473 = sst [smem:[#allocation20_spill]] %s5437_s8 }
   0xa   :  { %5474 = sst [smem:[#allocation21_spill]] %s5441_s12 }
   0xb   :  { %5475 = sst [smem:[#allocation22_spill]] %s5443_s14 }
   0xc   :  { %5476 = sst [smem:[#allocation23_spill]] %s5450_s21 }
   0xd   :  { %5477 = sst [smem:[#allocation24_spill]] %s5451_s22 }
   0xe   :  { %5478 = sst [smem:[#allocation25_spill]] %s5452_s23 }
   0xf   :  { %5479 = sst [smem:[#allocation26_spill]] %s5453_s24 }
  0x10   :  { %29 = vsyncpa [#allocation4], 0 }
  0x11   :  { %30 = vsyncpa [#allocation5], 0  ;;  %s4697_s5 = smov 0  }
  0x12 LB: > { %5480 = sst [smem:[#allocation9_spill]] %s4548_s5  ;;  %s4703_s26 = sadd.s32 4294967295, %s4548_s5   ;;  %s4548_s5 = sphi %s4697_s5, %s36_s5  }
  0x13   : > { %5481 = sst [smem:[#allocation10_spill]] %s4703_s26  ;;  %p3844_p0 = scmp.ge.s32.totalorder %s4548_s5, 1 }
  0x14   : > { %p656_p1 = scmp.lt.s32.totalorder %s4548_s5, 3  ;;  %p5456_p4 = scmp.eq.s32.totalorder %s4703_s26, 0 }
  0x15   : > { %s4550_s28 = smov [#allocation3]   ;;  %s5484_s23 = sld [smem:[#allocation25_spill]] }
  0x16   : > { %p4708_p3 = pnand %p3844_p0, %p656_p1  ;;  %s684_s6 = sshll.u32 %s4550_s28, 4  ;;  %s685_s6 = int_to_ptr.vmem [resolvable:$true] %s684_s6 }
  0x18   : > { %s5482_s27 = scalar_select %p4708_p3, 1, 0 }
  0x19   : > { %p4312_p5 = pneg %p4708_p3 }
  0x1b   : > { %p4717_p6 = pnand %p5456_p4, %p4312_p5  ;;  %s4480_s7 = scalar_lea.hbm %s5484_s23, 16 }
  0x1c   : > { %p4481_p7 = scmp.ne.s32.totalorder %s5484_s23, %s4480_s7  ;;  %p4487_p11 = scmp.lt.u32.totalorder %s4480_s7, %s5484_s23 }
  0x1d   : > { %p4482_p8 = pneg %p4717_p6 }
  0x1f   : > { %p4483_p9 = pnand %p4482_p8, %p4481_p7 }
  0x21   : > { %p4484_p10 = pneg %p4483_p9 }
  0x23   : > { %p4489_p12 = pnand %p4487_p11, %p4484_p10 }
  0x25   : > { %4492 = shalt.err (!%p4489_p12)
}
  0x26   : > { %s4493_s4 = scalar_lea.vmem %s685_s6, 16  ;;  %s4500_s1 = scalar_lea.vmem %s685_s6, 32 }
  0x27   : > { %p4494_p13 = scmp.ne.s32.totalorder %s685_s6, %s4493_s4  ;;  %p4501_p5 = scmp.lt.s32.totalorder %s685_s6, %s685_s6 }
  0x28   : > { %p4502_p2 = scmp.lt.s32.totalorder %s4500_s1, %s4493_s4 }
  0x29   : > { %p4496_p0 = pnand %p4494_p13, %p4482_p8 }
  0x2a   : > { %p4503_p4 = por %p4502_p2, %p4501_p5 }
  0x2b   : > { %p4497_p1 = pneg %p4496_p0 }
  0x2d   : > { %p4504_p3 = pnand %p4503_p4, %p4497_p1 }
  0x2f   : > { %4507 = shalt.err (!%p4504_p3)
}
  0x30   : > { %4315 = dma.hbm_to_vmem [thread:$0]  (!%p4717_p6), %s5484_s23, 16, %s685_s6, [#allocation4]  }
  0x31   : > { %p5485_p7 = scmp.ne.s32.totalorder %s5482_s27, 0 }
  0x33   : > { %817 = sbr.rel (%p5485_p7) target bundleno = 6880 (0x1ae0), region = 116 }
  0x3a   : > { %p5486_p9 = scmp.eq.s32.totalorder %s4703_s26, 0 }
  0x3c   : > { %4539 = dma.done.wait (%p5486_p9), [#allocation4], 16   ;;  %p5487_p8 = pmov %p5486_p9 }
  0x3d   : > { %p939_p2 = scmp.lt.s32.totalorder %s4703_s26, 1  ;;  %s5491_s5 = sld [smem:[#allocation18_spill]] }
  0x3e   : > { %4541 = vsyncadd (%p5487_p8), [#allocation4], 4294967280  ;;  %s5492_s30 = sld [smem:[#allocation20_spill]]  ;;  %s5494_s12 = sld [smem:[#allocation21_spill]] }
  0x3f   : > { %s4745_s0 = scalar_select %p939_p2, %s4703_s26, 1 }
  0x40   : > { %s5495_s14 = sld [smem:[#allocation22_spill]] }
  0x41   : > { %s3939_s4 = sshll.u32 %s4745_s0, 4 }
  0x42   : > { %s4811_s26 = scalar_lea.vmem %s5447_s18, %s3939_s4 }
  0x43   : > { %s4763_s24 = scalar_lea.vmem %s5491_s5, %s3939_s4  ;;  %s5497_s5 = sld [smem:[#allocation10_spill]] }
  0x44   : > { %s4768_s27 = scalar_lea.vmem %s5492_s30, %s3939_s4  ;;  %s4785_s2 = scalar_lea.vmem %s5494_s12, %s3939_s4 }
  0x45   : > { %5493 = sst [smem:[#allocation11_spill]] %s4768_s27 }
  0x46   : > { %s4794_s3 = scalar_lea.vmem %s5495_s14, %s3939_s4  ;;  %s3944_s14 = sshll.u32 %s4745_s0, 6 }
  0x47   : > { %s4821_s1 = scalar_lea.vmem %s5449_s20, %s3944_s14 }
  0x49   : > { %p5498_p3 = scmp.ne.s32.totalorder %s5497_s5, 0 }
  0x4a   : > { %s5499_s22 = sld [smem:[#allocation12_spill]] (!%p5498_p3)  ;;  %v4551_v1 = vmov (!%p5498_p3), 0   ;;  %v4552_v2 = vmov (!%p5498_p3), 0.0   ;;  %s5500_s8 = sld [smem:[#allocation13_spill]] (!%p5498_p3)  ;;  %vm4553_vm0 = vmmov (!%p5498_p3), 0   ;;  %v1012_v5 = vlaneseq (!%p5498_p3) }
  0x4b   : > { %1009 = sbr.rel (%p5498_p3) target bundleno = 436 (0x1b4), region = 124  ;;  %4350 = vset.pattern.permute.xlu0 (!%p5498_p3), %v4551_v1  ;;  %4038 = vmatprep.subr.bf16.mxu0 (!%p5498_p3), %v4552_v2  ;;  %vm1033_vm3 = vcmask (!%p5498_p3), 130048   ;;  %s5501_s29 = sld [smem:[#allocation14_spill]] (!%p5498_p3)  ;;  %vm1083_vm4 = vcmask (!%p5498_p3), 261120  }
  0x4c   : > { %4040 = vmatprep.mubr.msk.bf16.mxu0 (!%p5498_p3), %vm4553_vm0, %v4552_v2  ;;  %v1013_v6 = vand.u32 (!%p5498_p3), 127, %v1012_v5 }
  0x50   : > { %v1010_v0 = vld [vmem:[%s5499_s22] sm:$0xff] (!%p5498_p3)  ;;  %v1011_v3 = vld [vmem:[%s5499_s22 + $0x8] sm:$0xff] (!%p5498_p3) }
  0x51   : > { %1015 = vperm.xlu0 (!%p5498_p3), %4350, %v1010_v0   ;;  %v4351_v4 = vld [vmem:[%s5500_s8] sm:$0xff] (!%p5498_p3)  }
  0x52   : > { %4039 = vmatpush3.bf16.msra.mxu0 %v4351_v4  ;;  %v1080_v13 = vld [vmem:[%s5501_s29] sm:$0xff] }
  0x55   : > { %1018 = vperm.xlu0 %4350, %v1011_v3  }
  0xd0   : > { %v1016_v7 = vpop.permute.xlu0 %1015 }
  0xd1   : > { %vm1020_vm1 = vcmp.eq.s32.totalorder %v1013_v6, %v1016_v7 }
  0xd2   : > { %v1022_v9 = vsel %vm1020_vm1, 1.0, %v4552_v2 }
  0xd4   : > { %v1019_v8 = vpop.permute.xlu0 %1018 }
  0xd5   : > { %vm1021_vm2 = vcmp.eq.s32.totalorder %v1013_v6, %v1019_v8 }
  0xd6   : > { %v1023_v10 = vsel %vm1021_vm2, 1.0, %v4552_v2 }
  0xd7   : > { %v1024_v11 = vpack.c.bf16 %v1023_v10, %v1022_v9 }
  0xd9   : > { %4041 = vmatmul.mubr.msk.bf16.vlgmr.msra.gmra.mrb[0].mxu0 %vm1033_vm3, %v1024_v11 }
 0x1ac   : > { %v1071_v12 = vpop.f32.mrb[0].mxu0 }
 0x1ad   : > { %v1078_v14 = vmul.f32 5.656854, %v1071_v12  ;;  %v4042_v15 = vpop.f32.mrb[1].mxu0 }
 0x1ae   : > { %v1074_v16 = vpop.f32.mrb[2].mxu0 }
 0x1af   : > { %v1081_v17 = vadd.f32 %v1080_v13, %v1078_v14  ;;  %v1079_v18 = vmul.f32 5.656854, %v1074_v16  ;;  %v4043_v19 = vpop.f32.mrb[3].mxu0 }
 0x1b1   : > { %1084 = vst.msk [vmem:[#allocation2] sm:$0xff] %vm1083_vm4, %v1081_v17  ;;  %v1082_v20 = vadd.f32 %v1080_v13, %v1079_v18 }
 0x1b3   : > { %1085 = vst.msk [vmem:[#allocation2 + $0x8] sm:$0xff] %vm1083_vm4, %v1082_v20 }
 0x1b4 PF: > { %vm1092_vm5 = vcmask 261120   ;;  %v4382_v35 = vld [vmem:[%s4763_s24] sm:$0xff]   ;;  %v4554_v36 = vmov 0.0   ;;  %v4383_v37 = vld [vmem:[%s4763_s24 + $0x8] sm:$0xff]   ;;  %vm4555_vm6 = vmmov 0   ;;  %s5502_s12 = sld [smem:[#allocation16_spill]]  ;;  %s5509_s7 = scalar_lea.vmem %s5438_s9, %s4745_s0 }
 0x1b5   : > { %4044 = vmatprep.subr.bf16.mxu1 %v4554_v36  ;;  %4070 = vmatprep.subr.bf16.mxu0 %v4554_v36  ;;  %s5504_s14 = sld [smem:[#allocation17_spill]]  ;;  %s5506_s28 = sld [smem:[#allocation19_spill]]  ;;  %vm1214_vm7 = vcmask 64512   ;;  %vm1335_vm8 = vcmask 1043456   ;;  %vm2117_vm9 = vcmask 130048   ;;  %vm2120_vm10 = vcmask 195584  }
 0x1b6   : > { %4045 = vmatpush3.bf16.msra.mxu1 %v4382_v35  ;;  %4048 = vmatprep.mubr.msk.bf16.mxu1 %vm4555_vm6, %v4554_v36  ;;  %s4556_s24 = smov 96   ;;  %s4557_s5 = smov 64  }
 0x1b7   : > { %4046 = vmatprep.subr.bf16.mxu1 %v4554_v36  ;;  %4072 = vmatprep.mubr.msk.bf16.mxu0 %vm4555_vm6, %v4554_v36  ;;  %s4560_s27 = smov 56   ;;  %s4561_s6 = smov 80  }
 0x1b8   : > { %v4841_v21 = vld [vmem:[#allocation2] sm:$0xff]  ;;  %s4564_s8 = smov 72   ;;  %s4565_s23 = smov 104  }
 0x1b9   : > { %v1093_v23 = vsel %vm1092_vm5, %v4841_v21, 0.0  ;;  %s5511_s25 = sld [smem:[#allocation15_spill]]  ;;  %s5518_s30 = scalar_lea.vmem %s5446_s17, %s4745_s0 }
 0x1ba   : > { %v4843_v22 = vld [vmem:[#allocation2 + $0x8] sm:$0xff]  ;;  %1094 = vadd.xlane.f32.xlu0 %v1093_v23  ;;  %4047 = vmatpush3.bf16.msra.mxu1 %v4383_v37  ;;  %s5503_s4 = scalar_lea.vmem %s5502_s12, %s4745_s0  ;;  %s4558_s12 = smov 88  }
 0x1bb   : > { %v1096_v24 = vsel %vm1092_vm5, %v4843_v22, 0.0  ;;  %4052 = vmatprep.subr.bf16.mxu1 %v4554_v36  ;;  %v3864_v46 = vld [vmem:[%s5503_s4] ss:$0 sm:$0xff]  ;;  %s5505_s21 = scalar_lea.vmem %s5504_s14, %s4745_s0  ;;  %s5507_s29 = scalar_lea.vmem %s5506_s28, %s4745_s0 }
 0x1bc   : > { %v3865_v50 = vld [vmem:[%s5505_s21] ss:$0 sm:$0xff]  ;;  %s4559_s4 = smov 120   ;;  %s4562_s14 = smov 112  }
 0x1bd   : > { %v3866_v55 = vld [vmem:[%s5507_s29] ss:$0 sm:$0xff]  ;;  %s4563_s21 = smov 48   ;;  %s4566_s28 = smov 40  }
 0x1be   : > { %1097 = vadd.xlane.f32.xlu0 %v1096_v24  ;;  %s5508_s29 = sld [smem:[#allocation11_spill]] }
 0x247   : > { %v1095_v25 = vpop.xlane.xlu0 %1094 }
 0x248   : > { %v1100_v26 = vmul.f32 0.03125, %v1095_v25 }
 0x24a   : > { %v1102_v27 = vsub.f32 %v4841_v21, %v1100_v26 }
 0x24b   : > { %v1098_v28 = vpop.xlane.xlu0 %1097 }
 0x24c   : > { %v1101_v29 = vmul.f32 0.03125, %v1098_v28  ;;  %v1104_v30 = vmul.f32 %v1102_v27, %v1102_v27 }
 0x24e   : > { %v1103_v31 = vsub.f32 %v4843_v22, %v1101_v29  ;;  %v1106_v32 = vsel %vm1092_vm5, %v1104_v30, 0.0 }
 0x24f   : > { %1107 = vadd.xlane.f32.xlu1 %v1106_v32 }
 0x250   : > { %v1105_v33 = vmul.f32 %v1103_v31, %v1103_v31 }
 0x252   : > { %v1109_v34 = vsel %vm1092_vm5, %v1105_v33, 0.0 }
 0x253   : > { %1110 = vadd.xlane.f32.xlu1 %v1109_v34 }
 0x2dc   : > { %v1108_v38 = vpop.xlane.xlu1 %1107 }
 0x2dd   : > { %v1112_v39 = vmul.f32 0.03125, %v1108_v38 }
 0x2df   : > { %v1114_v40 = vadd.f32 1e-05, %v1112_v39 }
 0x2e0   : > { %v1111_v41 = vpop.xlane.xlu1 %1110 }
 0x2e1   : > { %4400 = vrsqrt.f32 %v1114_v40  ;;  %v1113_v42 = vmul.f32 0.03125, %v1111_v41 }
 0x2e3   : > { %v1115_v43 = vadd.f32 1e-05, %v1113_v42 }
 0x2e5   : > { %4402 = vrsqrt.f32 %v1115_v43 }
 0x2eb   : > { %v4401_v44 = vpop.eup %4400 }
 0x2ec   : > { %v1118_v45 = vmul.f32 %v4401_v44, %v1102_v27 }
 0x2ee   : > { %v1126_v49 = vmul.f32 %v3864_v46, %v1118_v45 }
 0x2ef   : > { %v4403_v47 = vpop.eup %4402 }
 0x2f0   : > { %v1119_v48 = vmul.f32 %v4403_v47, %v1103_v31  ;;  %v1134_v52 = vadd.f32 %v3865_v50, %v1126_v49 }
 0x2f2   : > { %v1127_v51 = vmul.f32 %v3864_v46, %v1119_v48 }
 0x2f4   : > { %v1135_v53 = vadd.f32 %v3865_v50, %v1127_v51 }
 0x2f6   : > { %v1146_v54 = vpack.c.bf16 %v1135_v53, %v1134_v52 }
 0x2f8   : > { %4049 = vmatmul.mubr.msk.bf16.vlgmr.msra.gmra.mrb[0].mxu1 %vm1092_vm5, %v1146_v54 }
 0x2f9   : > { %4054 = vmatprep.mubr.msk.bf16.mxu1 %vm4555_vm6, %v4554_v36 }
 0x3cb   : > { %v1202_v56 = vpop.f32.mrb[0].mxu1 }
 0x3cc   : > { %v1203_v57 = vadd.f32 %v3866_v55, %v1202_v56  ;;  %v4050_v58 = vpop.f32.mrb[1].mxu1 }
 0x3cd   : > { %v1205_v59 = vpop.f32.mrb[2].mxu1 }
 0x3ce   : > { %v4881_v60 = vpack.c.bf16 %v1203_v57, %v1203_v57  ;;  %v1206_v61 = vadd.f32 %v3866_v55, %v1205_v59  ;;  %v4051_v62 = vpop.f32.mrb[3].mxu1 }
 0x3d0   : > { %v4883_v63 = vpack.c.bf16 %v1206_v61, %v1206_v61  ;;  %1212 = vrot.lane.b32.xlu0 %v4881_v60, %s4556_s24 }
 0x3d2   : > { %1262 = vrot.lane.b32.xlu1 %v4883_v63, %s4556_s24 }
 0x442   : > { %v1213_v0 = vpop.permute.xlu0 %1212 }
 0x443   : > { %v1219_v1 = vsel %vm1214_vm7, %v1213_v0, 0 }
 0x444   : > { %4053 = vmatpush3.bf16.xpose.msra.mxu1 %v1219_v1  ;;  %v1263_v2 = vpop.permute.xlu1 %1262 }
 0x445   : > { %4058 = vmatprep.subr.bf16.mxu1 %v4554_v36  ;;  %v1268_v3 = vsel %vm1214_vm7, %v1263_v2, 0 }
 0x44b   : > { %4055 = vmatmul.mubr.msk.bf16.vlgmr.msra.gmra.mrb[4].mxu1 %vm1214_vm7, %v4881_v60 }
 0x44c   : > { %4059 = vmatpush3.bf16.xpose.msra.mxu1 %v1268_v3  ;;  %4060 = vmatprep.mubr.msk.bf16.mxu1 %vm4555_vm6, %v4554_v36 }
 0x44d   : > { %4064 = vmatprep.subr.bf16.mxu1 %v4554_v36 }
 0x453   : > { %4061 = vmatmul.mubr.msk.bf16.vlgmr.msra.gmra.mrb[8].mxu1 %vm1214_vm7, %v4883_v63 }
 0x454   : > { %4066 = vmatprep.mubr.msk.bf16.mxu1 %vm4555_vm6, %v4554_v36 }
 0x51e   : > { %v1255_v4 = vpop.f32.mrb[4].mxu1 }
 0x51f   : > { %v4056_v5 = vpop.f32.mrb[5].mxu1  ;;  %v1310_v6 = vsel %vm1214_vm7, %v1255_v4, -inf }
 0x520   : > { %1311 = vmax.xlane.f32.xlu1 %v1310_v6  ;;  %v1258_v7 = vpop.f32.mrb[6].mxu1 }
 0x521   : > { %v4057_v8 = vpop.f32.mrb[7].mxu1 }
 0x526   : > { %v1304_v9 = vpop.f32.mrb[8].mxu1 }
 0x527   : > { %v4062_v10 = vpop.f32.mrb[9].mxu1  ;;  %v1313_v11 = vsel %vm1214_vm7, %v1304_v9, -inf }
 0x528   : > { %1314 = vmax.xlane.f32.xlu0 %v1313_v11  ;;  %v1307_v12 = vpop.f32.mrb[10].mxu1 }
 0x529   : > { %v4063_v13 = vpop.f32.mrb[11].mxu1 }
 0x531   : > { %1379 = vrot.lane.b32.xlu1 %v4883_v63, %s4557_s5 }
 0x535   : > { %1433 = vrot.lane.b32.xlu1 %v4881_v60, %s4558_s12 }
 0x539   : > { %1483 = vrot.lane.b32.xlu1 %v4883_v63, %s4558_s12 }
 0x53d   : > { %1481 = vrot.lane.b32.xlu1 %v4883_v63, %s4559_s4 }
 0x53e   : > { %1330 = vrot.lane.b32.xlu0 %v4881_v60, %s4557_s5  ;;  %s4567_s5 = smov 8  }
 0x541   : > { %1599 = vrot.lane.b32.xlu1 %v4883_v63, %s4560_s27 }
 0x542   : > { %1431 = vrot.lane.b32.xlu0 %v4881_v60, %s4559_s4 }
 0x546   : > { %1551 = vrot.lane.b32.xlu0 %v4881_v60, %s4560_s27  ;;  %s5464_s27 = smov 16  }
 0x5ad   : > { %v1312_v14 = vpop.xlane.xlu1 %1311 }
 0x5ae   : > { %v1316_v15 = vsub.f32 %v1255_v4, %v1312_v14 }
 0x5b0   : > { %v1318_v16 = vmul.f32 1.442695, %v1316_v15 }
 0x5b1   : > { %v1380_v17 = vpop.permute.xlu1 %1379 }
 0x5b2   : > { %4404 = vpow2.f32 %v1318_v16  ;;  %v1385_v18 = vsel %vm1335_vm8, %v1380_v17, 0 }
 0x5b3   : > { %4071 = vmatpush3.bf16.msra.mxu0 %v1385_v18 }
 0x5b4   : > { %4082 = vmatprep.subr.bf16.mxu0 %v4554_v36 }
 0x5b5   : > { %v1315_v19 = vpop.xlane.xlu0 %1314  ;;  %v1434_v25 = vpop.permute.xlu1 %1433 }
 0x5b6   : > { %v1317_v20 = vsub.f32 %v1304_v9, %v1315_v19  ;;  %v1439_v31 = vsel %vm1214_vm7, %v1434_v25, 0 }
 0x5b8   : > { %v1320_v23 = vmul.f32 1.442695, %v1317_v20 }
 0x5b9   : > { %v1331_v24 = vpop.permute.xlu0 %1330  ;;  %v1484_v29 = vpop.permute.xlu1 %1483 }
 0x5ba   : > { %4406 = vpow2.f32 %v1320_v23  ;;  %v1337_v26 = vsel %vm1335_vm8, %v1331_v24, 0  ;;  %v1489_v35 = vsel %vm1214_vm7, %v1484_v29, 0 }
 0x5bb   : > { %4065 = vmatpush3.bf16.msra.mxu1 %v1337_v26 }
 0x5bc   : > { %v4918_v27 = vpop.eup %4404  ;;  %4076 = vmatprep.subr.bf16.mxu1 %v4554_v36 }
 0x5bd   : > { %v1328_v28 = vpack.c.bf16 %v4918_v27, %v4918_v27  ;;  %v1432_v30 = vpop.permute.xlu0 %1431  ;;  %v1482_v34 = vpop.permute.xlu1 %1481 }
 0x5bf   : > { %4067 = vmatmul.mubr.msk.bf16.vlgmr.msra.gmra.mrb[12].mxu1 %vm1214_vm7, %v1328_v28 }
 0x5c0   : > { %4078 = vmatprep.mubr.msk.bf16.mxu1 %vm4555_vm6, %v4554_v36 }
 0x5c1   : > { %v1552_v37 = vpop.permute.xlu0 %1551  ;;  %v1600_v39 = vpop.permute.xlu1 %1599 }
 0x5c2   : > { %v1557_v38 = vsel %vm1335_vm8, %v1552_v37, 0  ;;  %v1605_v40 = vsel %vm1335_vm8, %v1600_v39, 0 }
 0x5c4   : > { %v4927_v32 = vpop.eup %4406  ;;  %4077 = vmatpush3.bf16.xpose.msra.mxu1 %v1439_v31 }
 0x5c5   : > { %v1329_v33 = vpack.c.bf16 %v4927_v32, %v4927_v32  ;;  %4088 = vmatprep.subr.bf16.mxu1 %v4554_v36 }
 0x5c7   : > { %4073 = vmatmul.mubr.msk.bf16.vlgmr.msra.gmra.mrb[0].mxu0 %vm1214_vm7, %v1329_v33 }
 0x5c8   : > { %4083 = vmatpush3.bf16.xpose.msra.mxu0 %v1489_v35  ;;  %4084 = vmatprep.mubr.msk.bf16.mxu0 %vm4555_vm6, %v4554_v36 }
 0x5c9   : > { %4094 = vmatprep.subr.bf16.mxu0 %v4554_v36 }
 0x5cb   : > { %4079 = vmatmul.mubr.msk.bf16.vlgmr.msra.gmra.mrb[16].mxu1 %vm1214_vm7, %v1432_v30 }
 0x5cc   : > { %4089 = vmatpush3.bf16.msra.mxu1 %v1557_v38  ;;  %4090 = vmatprep.mubr.msk.bf16.mxu1 %vm4555_vm6, %v4554_v36 }
 0x5cd   : > { %4100 = vmatprep.subr.bf16.mxu1 %v4554_v36 }
 0x5cf   : > { %4085 = vmatmul.mubr.msk.bf16.vlgmr.msra.gmra.mrb[4].mxu0 %vm1214_vm7, %v1482_v34 }
 0x5d0   : > { %4095 = vmatpush3.bf16.msra.mxu0 %v1605_v40  ;;  %4096 = vmatprep.mubr.msk.bf16.mxu0 %vm4555_vm6, %v4554_v36 }
 0x5d1   : > { %4106 = vmatprep.subr.bf16.mxu0 %v4554_v36 }
 0x692   : > { %v4947_v41 = vpop.f32.mrb[12].mxu1 }
 0x693   : > { %v4068_v42 = vpop.f32.mrb[13].mxu1 }
 0x694   : > { %v1376_v43 = vpop.f32.mrb[14].mxu1 }
 0x695   : > { %v4069_v44 = vpop.f32.mrb[15].mxu1 }
 0x69a   : > { %v4949_v45 = vpop.f32.mrb[0].mxu0 }
 0x69b   : > { %v4074_v46 = vpop.f32.mrb[1].mxu0 }
 0x69c   : > { %v1424_v47 = vpop.f32.mrb[2].mxu0 }
 0x69d   : > { %v4075_v48 = vpop.f32.mrb[3].mxu0 }
 0x69e   : > { %v1475_v49 = vpop.f32.mrb[16].mxu1 }
 0x69f   : > { %v4080_v50 = vpop.f32.mrb[17].mxu1  ;;  %v1531_v51 = vsel %vm1214_vm7, %v1475_v49, -inf }
 0x6a0   : > { %1532 = vmax.xlane.f32.xlu0 %v1531_v51  ;;  %v1478_v52 = vpop.f32.mrb[18].mxu1 }
 0x6a1   : > { %v4081_v53 = vpop.f32.mrb[19].mxu1 }
 0x6a2   : > { %v1525_v54 = vpop.f32.mrb[4].mxu0 }
 0x6a3   : > { %v4086_v55 = vpop.f32.mrb[5].mxu0  ;;  %v1534_v56 = vsel %vm1214_vm7, %v1525_v54, -inf }
 0x6a4   : > { %1535 = vmax.xlane.f32.xlu1 %v1534_v56  ;;  %v1528_v57 = vpop.f32.mrb[6].mxu0 }
 0x6a5   : > { %v4087_v58 = vpop.f32.mrb[7].mxu0 }
 0x6b5   : > { %1703 = vrot.lane.b32.xlu1 %v4883_v63, %s4561_s6 }
 0x6b6   : > { %1653 = vrot.lane.b32.xlu0 %v4881_v60, %s4561_s6 }
 0x6b9   : > { %1701 = vrot.lane.b32.xlu1 %v4883_v63, %s4562_s14 }
 0x6ba   : > { %1651 = vrot.lane.b32.xlu0 %v4881_v60, %s4562_s14 }
 0x6bd   : > { %1819 = vrot.lane.b32.xlu1 %v4883_v63, %s4563_s21 }
 0x6be   : > { %1771 = vrot.lane.b32.xlu0 %v4881_v60, %s4563_s21  ;;  %s5463_s21 = smov 24  }
 0x72d   : > { %v1533_v59 = vpop.xlane.xlu0 %1532 }
 0x72e   : > { %v1537_v61 = vsub.f32 %v1475_v49, %v1533_v59 }
 0x730   : > { %v1539_v62 = vmul.f32 1.442695, %v1537_v61 }
 0x731   : > { %v1536_v0 = vpop.xlane.xlu1 %1535  ;;  %v1654_v3 = vpop.permute.xlu0 %1653 }
 0x732   : > { %4408 = vpow2.f32 %v1539_v62  ;;  %v1538_v1 = vsub.f32 %v1525_v54, %v1536_v0  ;;  %v1659_v8 = vsel %vm1214_vm7, %v1654_v3, 0 }
 0x734   : > { %v1541_v2 = vmul.f32 1.442695, %v1538_v1 }
 0x735   : > { %v1704_v5 = vpop.permute.xlu1 %1703  ;;  %v1652_v7 = vpop.permute.xlu0 %1651 }
 0x736   : > { %4410 = vpow2.f32 %v1541_v2  ;;  %v1709_v12 = vsel %vm1214_vm7, %v1704_v5, 0 }
 0x739   : > { %v1702_v11 = vpop.permute.xlu1 %1701  ;;  %v1772_v13 = vpop.permute.xlu0 %1771 }
 0x73a   : > { %v1777_v14 = vsel %vm1335_vm8, %v1772_v13, 0 }
 0x73c   : > { %v4963_v4 = vpop.eup %4408 }
 0x73d   : > { %v1549_v6 = vpack.c.bf16 %v4963_v4, %v4963_v4  ;;  %v1820_v15 = vpop.permute.xlu1 %1819 }
 0x73e   : > { %v1825_v16 = vsel %vm1335_vm8, %v1820_v15, 0 }
 0x73f   : > { %4091 = vmatmul.mubr.msk.bf16.vlgmr.msra.gmra.mrb[20].mxu1 %vm1214_vm7, %v1549_v6 }
 0x740   : > { %v4969_v9 = vpop.eup %4410  ;;  %4101 = vmatpush3.bf16.xpose.msra.mxu1 %v1659_v8  ;;  %4102 = vmatprep.mubr.msk.bf16.mxu1 %vm4555_vm6, %v4554_v36 }
 0x741   : > { %v1550_v10 = vpack.c.bf16 %v4969_v9, %v4969_v9  ;;  %4112 = vmatprep.subr.bf16.mxu1 %v4554_v36 }
 0x743   : > { %4097 = vmatmul.mubr.msk.bf16.vlgmr.msra.gmra.mrb[8].mxu0 %vm1214_vm7, %v1550_v10 }
 0x744   : > { %4107 = vmatpush3.bf16.xpose.msra.mxu0 %v1709_v12  ;;  %4108 = vmatprep.mubr.msk.bf16.mxu0 %vm4555_vm6, %v4554_v36 }
 0x745   : > { %4118 = vmatprep.subr.bf16.mxu0 %v4554_v36 }
 0x747   : > { %4103 = vmatmul.mubr.msk.bf16.vlgmr.msra.gmra.mrb[24].mxu1 %vm1214_vm7, %v1652_v7 }
 0x748   : > { %4113 = vmatpush3.bf16.msra.mxu1 %v1777_v14  ;;  %4114 = vmatprep.mubr.msk.bf16.mxu1 %vm4555_vm6, %v4554_v36 }
 0x749   : > { %4124 = vmatprep.subr.bf16.mxu1 %v4554_v36 }
 0x74b   : > { %4109 = vmatmul.mubr.msk.bf16.vlgmr.msra.gmra.mrb[12].mxu0 %vm1214_vm7, %v1702_v11 }
 0x74c   : > { %4119 = vmatpush3.bf16.msra.mxu0 %v1825_v16  ;;  %4120 = vmatprep.mubr.msk.bf16.mxu0 %vm4555_vm6, %v4554_v36  ;;  %v1543_v16 = vsel %vm1214_vm7, %v4963_v4, 0.0 }
 0x74d   : > { %4130 = vmatprep.subr.bf16.mxu0 %v4554_v36 }
 0x812   : > { %v4991_v17 = vpop.f32.mrb[20].mxu1 }
 0x813   : > { %v4092_v18 = vpop.f32.mrb[21].mxu1 }
 0x814   : > { %v1596_v19 = vpop.f32.mrb[22].mxu1  ;;  %v1546_v18 = vsel %vm1214_vm7, %v4969_v9, 0.0 }
 0x815   : > { %v4093_v20 = vpop.f32.mrb[23].mxu1 }
 0x816   : > { %v4993_v23 = vpop.f32.mrb[8].mxu0 }
 0x817   : > { %v4098_v24 = vpop.f32.mrb[9].mxu0 }
 0x818   : > { %v1644_v25 = vpop.f32.mrb[10].mxu0 }
 0x819   : > { %v4099_v26 = vpop.f32.mrb[11].mxu0 }
 0x81a   : > { %v1695_v28 = vpop.f32.mrb[24].mxu1 }
 0x81b   : > { %v4104_v29 = vpop.f32.mrb[25].mxu1  ;;  %v1751_v30 = vsel %vm1214_vm7, %v1695_v28, -inf }
 0x81c   : > { %1752 = vmax.xlane.f32.xlu0 %v1751_v30  ;;  %v1698_v31 = vpop.f32.mrb[26].mxu1 }
 0x81d   : > { %v4105_v33 = vpop.f32.mrb[27].mxu1 }
 0x81e   : > { %v1745_v34 = vpop.f32.mrb[12].mxu0 }
 0x81f   : > { %v4110_v35 = vpop.f32.mrb[13].mxu0  ;;  %v1754_v37 = vsel %vm1214_vm7, %v1745_v34, -inf }
 0x820   : > { %1755 = vmax.xlane.f32.xlu1 %v1754_v37  ;;  %v1748_v38 = vpop.f32.mrb[14].mxu0 }
 0x821   : > { %v4111_v39 = vpop.f32.mrb[15].mxu0  ;;  %v1322_v38 = vsel %vm1214_vm7, %v4918_v27, 0.0 }
 0x831   : > { %1923 = vrot.lane.b32.xlu1 %v4883_v63, %s4564_s8 }
 0x832   : > { %1873 = vrot.lane.b32.xlu0 %v4881_v60, %s4564_s8 }
 0x835   : > { %1921 = vrot.lane.b32.xlu1 %v4883_v63, %s4565_s23 }
 0x836   : > { %1871 = vrot.lane.b32.xlu0 %v4881_v60, %s4565_s23 }
 0x8a9   : > { %v1753_v40 = vpop.xlane.xlu0 %1752 }
 0x8aa   : > { %v1757_v42 = vsub.f32 %v1695_v28, %v1753_v40  ;;  %v1325_v40 = vsel %vm1214_vm7, %v4927_v32, 0.0 }
 0x8ac   : > { %v1759_v43 = vmul.f32 1.442695, %v1757_v42 }
 0x8ad   : > { %v1756_v44 = vpop.xlane.xlu1 %1755  ;;  %v1874_v49 = vpop.permute.xlu0 %1873 }
 0x8ae   : > { %4412 = vpow2.f32 %v1759_v43  ;;  %v1758_v46 = vsub.f32 %v1745_v34, %v1756_v44  ;;  %v1879_v51 = vsel %vm1214_vm7, %v1874_v49, 0 }
 0x8b0   : > { %v1761_v47 = vmul.f32 1.442695, %v1758_v46 }
 0x8b1   : > { %v1924_v53 = vpop.permute.xlu1 %1923  ;;  %v1872_v56 = vpop.permute.xlu0 %1871 }
 0x8b2   : > { %4414 = vpow2.f32 %v1761_v47  ;;  %v1929_v55 = vsel %vm1214_vm7, %v1924_v53, 0 }
 0x8b5   : > { %v1922_v57 = vpop.permute.xlu1 %1921 }
 0x8b8   : > { %v4413_v48 = vpop.eup %4412 }
 0x8b9   : > { %v1769_v50 = vpack.c.bf16 %v4413_v48, %v4413_v48  ;;  %v1763_v19 = vsel %vm1214_vm7, %v4413_v48, 0.0 }
 0x8bb   : > { %4115 = vmatmul.mubr.msk.bf16.vlgmr.msra.gmra.mrb[28].mxu1 %vm1214_vm7, %v1769_v50 }
 0x8bc   : > { %v4415_v52 = vpop.eup %4414  ;;  %4125 = vmatpush3.bf16.xpose.msra.mxu1 %v1879_v51  ;;  %4126 = vmatprep.mubr.msk.bf16.mxu1 %vm4555_vm6, %v4554_v36 }
 0x8bd   : > { %v1770_v54 = vpack.c.bf16 %v4415_v52, %v4415_v52  ;;  %4136 = vmatprep.subr.bf16.mxu1 %v4554_v36  ;;  %v1766_v20 = vsel %vm1214_vm7, %v4415_v52, 0.0 }
 0x8bf   : > { %4121 = vmatmul.mubr.msk.bf16.vlgmr.msra.gmra.mrb[16].mxu0 %vm1214_vm7, %v1770_v54 }
 0x8c0   : > { %4131 = vmatpush3.bf16.xpose.msra.mxu0 %v1929_v55  ;;  %4132 = vmatprep.mubr.msk.bf16.mxu0 %vm4555_vm6, %v4554_v36  ;;  %v4384_v55 = vld [vmem:[%s5508_s29] sm:$0xff]  }
 0x8c1   : > { %4142 = vmatprep.subr.bf16.mxu0 %v4554_v36 }
 0x8c3   : > { %4127 = vmatmul.mubr.msk.bf16.vlgmr.msra.gmra.mrb[32].mxu1 %vm1214_vm7, %v1872_v56  ;;  %v4385_v56 = vld [vmem:[%s5508_s29 + $0x8] sm:$0xff]  }
 0x8c4   : > { %4138 = vmatprep.mubr.msk.bf16.mxu1 %vm4555_vm6, %v4554_v36 }
 0x8c7   : > { %4133 = vmatmul.mubr.msk.bf16.vlgmr.msra.gmra.mrb[20].mxu0 %vm1214_vm7, %v1922_v57 }
 0x8c8   : > { %4144 = vmatprep.mubr.msk.bf16.mxu0 %vm4555_vm6, %v4554_v36 }
 0x98e   : > { %v5021_v58 = vpop.f32.mrb[28].mxu1 }
 0x98f   : > { %v4116_v59 = vpop.f32.mrb[29].mxu1 }
 0x990   : > { %v1816_v61 = vpop.f32.mrb[30].mxu1 }
 0x991   : > { %v4117_v62 = vpop.f32.mrb[31].mxu1 }
 0x992   : > { %v5023_v0 = vpop.f32.mrb[16].mxu0 }
 0x993   : > { %v4122_v1 = vpop.f32.mrb[17].mxu0 }
 0x994   : > { %v1864_v2 = vpop.f32.mrb[18].mxu0 }
 0x995   : > { %v4123_v3 = vpop.f32.mrb[19].mxu0 }
 0x996   : > { %v1915_v5 = vpop.f32.mrb[32].mxu1 }
 0x997   : > { %v4128_v6 = vpop.f32.mrb[33].mxu1  ;;  %v1971_v7 = vsel %vm1214_vm7, %v1915_v5, -inf }
 0x998   : > { %1972 = vmax.xlane.f32.xlu0 %v1971_v7  ;;  %v1918_v8 = vpop.f32.mrb[34].mxu1 }
 0x999   : > { %v4129_v10 = vpop.f32.mrb[35].mxu1 }
 0x99a   : > { %v1965_v11 = vpop.f32.mrb[20].mxu0 }
 0x99b   : > { %v4134_v12 = vpop.f32.mrb[21].mxu0  ;;  %v1974_v13 = vsel %vm1214_vm7, %v1965_v11, -inf }
 0x99c   : > { %1975 = vmax.xlane.f32.xlu1 %v1974_v13  ;;  %v1968_v14 = vpop.f32.mrb[22].mxu0 }
 0x99d   : > { %v4135_v15 = vpop.f32.mrb[23].mxu0 }
 0x9ad   : > { %2039 = vrot.lane.b32.xlu1 %v4883_v63, %s4566_s28 }
 0x9ae   : > { %1991 = vrot.lane.b32.xlu0 %v4881_v60, %s4566_s28  ;;  %s5510_s28 = scalar_lea.vmem %s5442_s13, %s4745_s0 }
 0x9cd   : > { %1544 = vadd.xlane.f32.xlu0 %v1543_v16 }
 0x9d1   : > { %1547 = vadd.xlane.f32.xlu1 %v1546_v18  ;;  %1764 = vadd.xlane.f32.xlu0 %v1763_v19 }
 0x9d5   : > { %1767 = vadd.xlane.f32.xlu0 %v1766_v20 }
 0xa25   : > { %v1973_v24 = vpop.xlane.xlu0 %1972 }
 0xa26   : > { %v1977_v25 = vsub.f32 %v1915_v5, %v1973_v24 }
 0xa28   : > { %v1979_v26 = vmul.f32 1.442695, %v1977_v25 }
 0xa29   : > { %v1976_v63 = vpop.xlane.xlu1 %1975  ;;  %v1992_v28 = vpop.permute.xlu0 %1991 }
 0xa2a   : > { %4416 = vpow2.f32 %v1979_v26  ;;  %v1978_v60 = vsub.f32 %v1965_v11, %v1976_v63  ;;  %v1997_v4 = vsel %vm1335_vm8, %v1992_v28, 0 }
 0xa2b   : > { %4137 = vmatpush3.bf16.msra.mxu1 %v1997_v4 }
 0xa2c   : > { %v1981_v29 = vmul.f32 1.442695, %v1978_v60  ;;  %4148 = vmatprep.subr.bf16.mxu1 %v4554_v36 }
 0xa2d   : > { %v2040_v9 = vpop.permute.xlu1 %2039 }
 0xa2e   : > { %4418 = vpow2.f32 %v1981_v29  ;;  %v2045_v30 = vsel %vm1335_vm8, %v2040_v9, 0 }
 0xa2f   : > { %4143 = vmatpush3.bf16.msra.mxu0 %v2045_v30 }
 0xa30   : > { %4156 = vmatprep.subr.bf16.mxu0 %v4554_v36 }
 0xa34   : > { %v4417_v31 = vpop.eup %4416 }
 0xa35   : > { %v1983_v33 = vsel %vm1214_vm7, %v4417_v31, 0.0  ;;  %v1989_v34 = vpack.c.bf16 %v4417_v31, %v4417_v31 }
 0xa36   : > { %1984 = vadd.xlane.f32.xlu0 %v1983_v33 }
 0xa37   : > { %4139 = vmatmul.mubr.msk.bf16.vlgmr.msra.gmra.mrb[36].mxu1 %vm1214_vm7, %v1989_v34 }
 0xa38   : > { %v4419_v35 = vpop.eup %4418  ;;  %4152 = vmatprep.mubr.msk.bf16.mxu1 %vm4555_vm6, %v4554_v36  ;;  %4149 = vmatpush3.bf16.msra.mxu1 %v4384_v55  ;;  %v3892_v55 = vld [vmem:[%s5510_s28] ss:$0 sm:$0xff]  ;;  %s5513_s28 = scalar_lea.vmem %s5440_s11, %s4745_s0 }
 0xa39   : > { %v1986_v37 = vsel %vm1214_vm7, %v4419_v35, 0.0  ;;  %v1990_v39 = vpack.c.bf16 %v4419_v35, %v4419_v35  ;;  %4150 = vmatprep.subr.bf16.mxu1 %v4554_v36 }
 0xa3a   : > { %1987 = vadd.xlane.f32.xlu1 %v1986_v37  ;;  %1323 = vadd.xlane.f32.xlu0 %v1322_v38 }
 0xa3b   : > { %4145 = vmatmul.mubr.msk.bf16.vlgmr.msra.gmra.mrb[24].mxu0 %vm1214_vm7, %v1990_v39 }
 0xa3c   : > { %4160 = vmatprep.mubr.msk.bf16.mxu0 %vm4555_vm6, %v4554_v36  ;;  %4151 = vmatpush3.bf16.msra.mxu1 %v4385_v56 }
 0xa3d   : > { %4164 = vmatprep.subr.bf16.mxu1 %v4554_v36 }
 0xa3e   : > { %1326 = vadd.xlane.f32.xlu1 %v1325_v40 }
 0xa5a   : > { %v1545_v42 = vpop.xlane.xlu0 %1544 }
 0xa5b   : > { %4420 = vrcp.f32 %v1545_v42 }
 0xa5e   : > { %v1548_v43 = vpop.xlane.xlu1 %1547  ;;  %v1765_v44 = vpop.xlane.xlu0 %1764 }
 0xa5f   : > { %4422 = vrcp.f32 %v1548_v43 }
 0xa60   : > { %4424 = vrcp.f32 %v1765_v44 }
 0xa62   : > { %v1768_v46 = vpop.xlane.xlu0 %1767 }
 0xa63   : > { %4426 = vrcp.f32 %v1768_v46  ;;  %v4386_v46 = vld [vmem:[%s4785_s2] sm:$0xff]  }
 0xa64   : > { %4157 = vmatpush3.bf16.msra.mxu0 %v4386_v46 }
 0xa65   : > { %v4421_v27 = vpop.eup %4420  ;;  %4158 = vmatprep.subr.bf16.mxu0 %v4554_v36 }
 0xa66   : > { %v1649_v48 = vmul.f32 %v4421_v27, %v4991_v17 }
 0xa69   : > { %v4423_v47 = vpop.eup %4422 }
 0xa6a   : > { %v1650_v49 = vmul.f32 %v4423_v47, %v4993_v23  ;;  %v4425_v50 = vpop.eup %4424 }
 0xa6b   : > { %v1869_v52 = vmul.f32 %v4425_v50, %v5021_v58 }
 0xa6c   : > { %v4352_v51 = vpack.i.bf16 %v1650_v49, %v1649_v48 }
 0xa6d   : > { %v4427_v32 = vpop.eup %4426 }
 0xa6e   : > { %4353 = vrot.lane.b32.xlu0 %v4352_v51, %s4567_s5  ;;  %v1870_v53 = vmul.f32 %v4427_v32, %v5023_v0 }
 0xa70   : > { %v4357_v54 = vpack.i.bf16 %v1870_v53, %v1869_v52 }
 0xa72   : > { %4358 = vrot.lane.b32.xlu1 %v4357_v54, %s5464_s27  ;;  %s5512_s27 = scalar_lea.vmem %s5439_s10, %s4745_s0 }
 0xac3   : > { %v1985_v17 = vpop.xlane.xlu0 %1984 }
 0xac4   : > { %4428 = vrcp.f32 %v1985_v17 }
 0xac7   : > { %v1988_v23 = vpop.xlane.xlu1 %1987  ;;  %v1324_v10 = vpop.xlane.xlu0 %1323 }
 0xac8   : > { %4430 = vrcp.f32 %v1988_v23 }
 0xac9   : > { %4432 = vrcp.f32 %v1324_v10  ;;  %v3891_v10 = vld [vmem:[%s5513_s28] ss:$0 sm:$0xff] }
 0xacb   : > { %v1327_v11 = vpop.xlane.xlu1 %1326 }
 0xacc   : > { %4434 = vrcp.f32 %v1327_v11 }
 0xace   : > { %v4429_v61 = vpop.eup %4428 }
 0xad2   : > { %v4431_v0 = vpop.eup %4430 }
 0xad3   : > { %v4433_v13 = vpop.eup %4432 }
 0xad4   : > { %v1429_v24 = vmul.f32 %v4433_v13, %v4947_v41 }
 0xad6   : > { %v4435_v15 = vpop.eup %4434 }
 0xad7   : > { %v1430_v25 = vmul.f32 %v4435_v15, %v4949_v45  ;;  %v3886_v45 = vld [vmem:[%s5509_s7] ss:$0 sm:$0xff] }
 0xae0   : > { %v4354_v12 = vpop.permute.xlu0 %4353 }
 0xae1   : > { %v4356_v16 = vunpack.i.h.bf16 %v4354_v12  ;;  %v4355_v18 = vunpack.i.l.bf16 %v4354_v12 }
 0xae3   : > { %v2116_v63 = vsel %vm1214_vm7, %v1430_v25, %v4356_v16  ;;  %v2115_v28 = vsel %vm1214_vm7, %v1429_v24, %v4355_v18 }
 0xae4   : > { %v4359_v14 = vpop.permute.xlu1 %4358 }
 0xae5   : > { %v4361_v19 = vunpack.i.h.bf16 %v4359_v14  ;;  %v4360_v20 = vunpack.i.l.bf16 %v4359_v14 }
 0xae7   : > { %v2118_v29 = vsel %vm2117_vm9, %v2115_v28, %v4360_v20  ;;  %v2119_v9 = vsel %vm2117_vm9, %v2116_v63, %v4361_v19 }
 0xb0a   : > { %v2033_v57 = vpop.f32.mrb[36].mxu1 }
 0xb0b   : > { %v4140_v58 = vpop.f32.mrb[37].mxu1  ;;  %v2089_v2 = vmul.f32 %v4429_v61, %v2033_v57  ;;  %v1087_v61 = vld [vmem:[%s5511_s25 + $0x8] sm:$0xff] }
 0xb0c   : > { %v2036_v59 = vpop.f32.mrb[38].mxu1 }
 0xb0d   : > { %v4141_v62 = vpop.f32.mrb[39].mxu1  ;;  %v1086_v59 = vld [vmem:[%s5511_s25] sm:$0xff] }
 0xb0e   : > { %v2081_v1 = vpop.f32.mrb[24].mxu0 }
 0xb0f   : > { %v2090_v3 = vmul.f32 %v4431_v0, %v2081_v1  ;;  %v4146_v5 = vpop.f32.mrb[25].mxu0  ;;  %v2243_v1 = vpack.c.bf16 %v1087_v61, %v1086_v59 }
 0xb10   : > { %v2084_v6 = vpop.f32.mrb[26].mxu0  ;;  %v3890_v5 = vld [vmem:[%s5512_s27] ss:$0 sm:$0xff] }
 0xb11   : > { %v4362_v7 = vpack.i.bf16 %v2090_v3, %v2089_v2  ;;  %v4147_v8 = vpop.f32.mrb[27].mxu0 }
 0xb13   : > { %4363 = vrot.lane.b32.xlu1 %v4362_v7, %s5463_s21  ;;  %s5519_s21 = scalar_lea.vmem %s5448_s19, %s4745_s0 }
 0xb85   : > { %v4364_v26 = vpop.permute.xlu1 %4363 }
 0xb86   : > { %v4366_v60 = vunpack.i.h.bf16 %v4364_v26  ;;  %v4365_v4 = vunpack.i.l.bf16 %v4364_v26 }
 0xb88   : > { %v2122_v30 = vsel %vm2120_vm10, %v2119_v9, %v4366_v60  ;;  %v2121_v41 = vsel %vm2120_vm10, %v2118_v29, %v4365_v4 }
 0xb89   : > { %v2123_v31 = vpack.c.bf16 %v2122_v30, %v2121_v41 }
 0xb8b   : > { %4153 = vmatmul.mubr.msk.bf16.vlgmr.msra.gmra.mrb[40].mxu1 %vm1092_vm5, %v2123_v31 }
 0xb8c   : > { %4168 = vmatprep.mubr.msk.bf16.mxu1 %vm4555_vm6, %v4554_v36 }
 0xc5e   : > { %v2179_v33 = vpop.f32.mrb[40].mxu1 }
 0xc5f   : > { %v2180_v34 = vadd.f32 %v3886_v45, %v2179_v33  ;;  %v4154_v35 = vpop.f32.mrb[41].mxu1 }
 0xc60   : > { %v2182_v37 = vpop.f32.mrb[42].mxu1 }
 0xc61   : > { %v5079_v38 = vadd.f32 %v2180_v34, %v4841_v21  ;;  %v2183_v39 = vadd.f32 %v3886_v45, %v2182_v37  ;;  %v4155_v40 = vpop.f32.mrb[43].mxu1  ;;  %v4387_v21 = vld [vmem:[%s4785_s2 + $0x8] sm:$0xff]  }
 0xc62   : > { %4159 = vmatpush3.bf16.msra.mxu0 %v4387_v21 }
 0xc63   : > { %v5082_v42 = vadd.f32 %v2183_v39, %v4843_v22  ;;  %v2190_v43 = vsel %vm1092_vm5, %v5079_v38, 0.0  ;;  %4172 = vmatprep.subr.bf16.mxu0 %v4554_v36 }
 0xc64   : > { %2191 = vadd.xlane.f32.xlu1 %v2190_v43 }
 0xc65   : > { %v2193_v44 = vsel %vm1092_vm5, %v5082_v42, 0.0 }
 0xc66   : > { %2194 = vadd.xlane.f32.xlu0 %v2193_v44 }
 0xc75   : > { %2306 = vrot.lane.b32.xlu1 %v4386_v46, %s4556_s24 }
 0xc79   : > { %2312 = vrot.lane.b32.xlu1 %v3892_v55, %s4556_s24 }
 0xcf1   : > { %v2192_v22 = vpop.xlane.xlu1 %2191 }
 0xcf2   : > { %v2196_v27 = vmul.f32 0.03125, %v2192_v22 }
 0xcf3   : > { %v2195_v47 = vpop.xlane.xlu0 %2194 }
 0xcf4   : > { %v2198_v48 = vsub.f32 %v5079_v38, %v2196_v27  ;;  %v2197_v49 = vmul.f32 0.03125, %v2195_v47 }
 0xcf5   : > { %v2307_v54 = vpop.permute.xlu1 %2306 }
 0xcf6   : > { %v2199_v50 = vsub.f32 %v5082_v42, %v2197_v49  ;;  %v2200_v51 = vmul.f32 %v2198_v48, %v2198_v48  ;;  %4165 = vmatpush3.bf16.msra.mxu1 %v2307_v54 }
 0xcf7   : > { %4166 = vmatprep.subr.bf16.mxu1 %v4554_v36 }
 0xcf8   : > { %v2202_v32 = vsel %vm1092_vm5, %v2200_v51, 0.0  ;;  %v2201_v52 = vmul.f32 %v2199_v50, %v2199_v50 }
 0xcf9   : > { %2203 = vadd.xlane.f32.xlu0 %v2202_v32  ;;  %v2313_v15 = vpop.permute.xlu1 %2312 }
 0xcfa   : > { %v2205_v53 = vsel %vm1092_vm5, %v2201_v52, 0.0 }
 0xcfd   : > { %2206 = vadd.xlane.f32.xlu0 %v2205_v53 }
 0xd13   : > { %2308 = vrot.lane.b32.xlu0 %v4387_v21, %s4556_s24 }
 0xd86   : > { %v2204_v17 = vpop.xlane.xlu0 %2203 }
 0xd87   : > { %v2208_v23 = vmul.f32 0.03125, %v2204_v17 }
 0xd89   : > { %v2210_v56 = vadd.f32 1e-05, %v2208_v23 }
 0xd8a   : > { %v2207_v57 = vpop.xlane.xlu0 %2206 }
 0xd8b   : > { %4436 = vrsqrt.f32 %v2210_v56  ;;  %v2209_v58 = vmul.f32 0.03125, %v2207_v57 }
 0xd8d   : > { %v2211_v62 = vadd.f32 1e-05, %v2209_v58 }
 0xd8e   : > { %v2309_v0 = vpop.permute.xlu0 %2308 }
 0xd8f   : > { %4438 = vrsqrt.f32 %v2211_v62  ;;  %4167 = vmatpush3.bf16.msra.mxu1 %v2309_v0 }
 0xd90   : > { %4178 = vmatprep.subr.bf16.mxu1 %v4554_v36 }
 0xd92   : > { %4169 = vmatmul.mubr.msk.bf16.vlgmr.msra.gmra.mrb[44].mxu1 %vm1092_vm5, %v2243_v1 }
 0xd93   : > { %4180 = vmatprep.mubr.msk.bf16.mxu1 %vm4555_vm6, %v4554_v36 }
 0xd95   : > { %v4437_v2 = vpop.eup %4436 }
 0xd96   : > { %v2214_v3 = vmul.f32 %v4437_v2, %v2198_v48 }
 0xd98   : > { %v2222_v7 = vmul.f32 %v3890_v5, %v2214_v3 }
 0xd99   : > { %v4439_v6 = vpop.eup %4438 }
 0xd9a   : > { %v2215_v8 = vmul.f32 %v4439_v6, %v2199_v50  ;;  %v2230_v12 = vadd.f32 %v3891_v10, %v2222_v7 }
 0xd9c   : > { %v2223_v11 = vmul.f32 %v3890_v5, %v2215_v8 }
 0xd9e   : > { %v2231_v13 = vadd.f32 %v3891_v10, %v2223_v11 }
 0xda0   : > { %v2242_v14 = vpack.c.bf16 %v2231_v13, %v2230_v12 }
 0xda2   : > { %4161 = vmatmul.mubr.msk.bf16.vlgmr.msra.gmra.mrb[28].mxu0 %vm1092_vm5, %v2242_v14 }
 0xda3   : > { %4174 = vmatprep.mubr.msk.bf16.mxu0 %vm4555_vm6, %v4554_v36 }
 0xe65   : > { %v2352_v16 = vpop.f32.mrb[44].mxu1 }
 0xe66   : > { %v4170_v18 = vpop.f32.mrb[45].mxu1  ;;  %v2353_v19 = vadd.f32 %v2352_v16, %v2313_v15 }
 0xe67   : > { %v2355_v20 = vpop.f32.mrb[46].mxu1 }
 0xe68   : > { %v2356_v24 = vadd.f32 %v2355_v20, %v2313_v15  ;;  %v5128_v25 = vpack.c.bf16 %v2353_v19, %v2353_v19  ;;  %v4171_v26 = vpop.f32.mrb[47].mxu1 }
 0xe6a   : > { %v5130_v63 = vpack.c.bf16 %v2356_v24, %v2356_v24  ;;  %v2367_v28 = vsel %vm1214_vm7, %v5128_v25, 0 }
 0xe6b   : > { %4173 = vmatpush3.bf16.xpose.msra.mxu0 %v2367_v28 }
 0xe6c   : > { %v2413_v60 = vsel %vm1214_vm7, %v5130_v63, 0  ;;  %4184 = vmatprep.subr.bf16.mxu0 %v4554_v36 }
 0xe6d   : > { %4179 = vmatpush3.bf16.xpose.msra.mxu1 %v2413_v60 }
 0xe6e   : > { %4190 = vmatprep.subr.bf16.mxu1 %v4554_v36 }
 0xe75   : > { %v2299_v4 = vpop.f32.mrb[28].mxu0 }
 0xe76   : > { %v2300_v29 = vadd.f32 %v3892_v55, %v2299_v4  ;;  %v4162_v9 = vpop.f32.mrb[29].mxu0 }
 0xe77   : > { %v2302_v30 = vpop.f32.mrb[30].mxu0 }
 0xe78   : > { %v5138_v41 = vpack.c.bf16 %v2300_v29, %v2300_v29  ;;  %v2303_v31 = vadd.f32 %v3892_v55, %v2302_v30  ;;  %v4163_v45 = vpop.f32.mrb[31].mxu0 }
 0xe7a   : > { %v5140_v33 = vpack.c.bf16 %v2303_v31, %v2303_v31  ;;  %4175 = vmatmul.mubr.msk.bf16.vlgmr.msra.gmra.mrb[32].mxu0 %vm1214_vm7, %v5138_v41 }
 0xe7b   : > { %4186 = vmatprep.mubr.msk.bf16.mxu0 %vm4555_vm6, %v4554_v36 }
 0xe7c   : > { %4181 = vmatmul.mubr.msk.bf16.vlgmr.msra.gmra.mrb[48].mxu1 %vm1214_vm7, %v5140_v33 }
 0xe7d   : > { %4192 = vmatprep.mubr.msk.bf16.mxu1 %vm4555_vm6, %v4554_v36 }
 0xf4d   : > { %v2403_v34 = vpop.f32.mrb[32].mxu0 }
 0xf4e   : > { %v4176_v35 = vpop.f32.mrb[33].mxu0  ;;  %v2455_v37 = vsel %vm1214_vm7, %v2403_v34, -inf }
 0xf4f   : > { %2456 = vmax.xlane.f32.xlu1 %v2455_v37  ;;  %v2406_v39 = vpop.f32.mrb[34].mxu0  ;;  %v2449_v40 = vpop.f32.mrb[48].mxu1 }
 0xf50   : > { %v4177_v43 = vpop.f32.mrb[35].mxu0  ;;  %v4182_v44 = vpop.f32.mrb[49].mxu1  ;;  %v2458_v46 = vsel %vm1214_vm7, %v2449_v40, -inf }
 0xf51   : > { %2459 = vmax.xlane.f32.xlu0 %v2458_v46  ;;  %v2452_v21 = vpop.f32.mrb[50].mxu1 }
 0xf52   : > { %v4183_v22 = vpop.f32.mrb[51].mxu1 }
 0xf60   : > { %2525 = vrot.lane.b32.xlu1 %v5130_v63, %s4556_s24 }
 0xf64   : > { %2580 = vrot.lane.b32.xlu1 %v5128_v25, %s4559_s4 }
 0xf67   : > { %2476 = vrot.lane.b32.xlu0 %v5128_v25, %s4556_s24  ;;  %s5514_s24 = smov 16  }
 0xf68   : > { %2631 = vrot.lane.b32.xlu1 %v5130_v63, %s4559_s4 }
 0xf6b   : > { %2578 = vrot.lane.b32.xlu0 %v5138_v41, %s4559_s4 }
 0xf6c   : > { %2629 = vrot.lane.b32.xlu1 %v5140_v33, %s4559_s4 }
 0xf6f   : > { %2699 = vrot.lane.b32.xlu0 %v5128_v25, %s4558_s12 }
 0xf70   : > { %2747 = vrot.lane.b32.xlu1 %v5130_v63, %s4558_s12  ;;  %s5515_s12 = smov 24  }
 0xfdc   : > { %v2457_v27 = vpop.xlane.xlu1 %2456 }
 0xfdd   : > { %v2461_v47 = vsub.f32 %v2403_v34, %v2457_v27 }
 0xfde   : > { %v2460_v48 = vpop.xlane.xlu0 %2459 }
 0xfdf   : > { %v2463_v49 = vmul.f32 1.442695, %v2461_v47  ;;  %v2462_v50 = vsub.f32 %v2449_v40, %v2460_v48 }
 0xfe0   : > { %v2526_v51 = vpop.permute.xlu1 %2525 }
 0xfe1   : > { %4440 = vpow2.f32 %v2463_v49  ;;  %v2465_v32 = vmul.f32 1.442695, %v2462_v50  ;;  %v2531_v52 = vsel %vm1335_vm8, %v2526_v51, 0 }
 0xfe2   : > { %4191 = vmatpush3.bf16.msra.mxu1 %v2531_v52  ;;  %v2477_v53 = vpop.permute.xlu0 %2476 }
 0xfe3   : > { %4442 = vpow2.f32 %v2465_v32  ;;  %v2482_v54 = vsel %vm1335_vm8, %v2477_v53, 0  ;;  %4202 = vmatprep.subr.bf16.mxu1 %v4554_v36 }
 0xfe4   : > { %v2581_v55 = vpop.permute.xlu1 %2580  ;;  %4185 = vmatpush3.bf16.msra.mxu0 %v2482_v54 }
 0xfe5   : > { %4196 = vmatprep.subr.bf16.mxu0 %v4554_v36  ;;  %v2586_v59 = vsel %vm1214_vm7, %v2581_v55, 0 }
 0xfe6   : > { %v2579_v58 = vpop.permute.xlu0 %2578 }
 0xfe8   : > { %v2632_v17 = vpop.permute.xlu1 %2631 }
 0xfe9   : > { %v2637_v0 = vsel %vm1214_vm7, %v2632_v17, 0 }
 0xfea   : > { %v2700_v1 = vpop.permute.xlu0 %2699 }
 0xfeb   : > { %v5172_v23 = vpop.eup %4440  ;;  %v2705_v3 = vsel %vm1335_vm8, %v2700_v1, 0 }
 0xfec   : > { %v2473_v56 = vpack.c.bf16 %v5172_v23, %v5172_v23  ;;  %v2630_v62 = vpop.permute.xlu1 %2629 }
 0xfed   : > { %v5176_v57 = vpop.eup %4442 }
 0xfee   : > { %4187 = vmatmul.mubr.msk.bf16.vlgmr.msra.gmra.mrb[36].mxu0 %vm1214_vm7, %v2473_v56  ;;  %v2474_v61 = vpack.c.bf16 %v5176_v57, %v5176_v57 }
 0xfef   : > { %4197 = vmatpush3.bf16.xpose.msra.mxu0 %v2586_v59  ;;  %4198 = vmatprep.mubr.msk.bf16.mxu0 %vm4555_vm6, %v4554_v36 }
 0xff0   : > { %4193 = vmatmul.mubr.msk.bf16.vlgmr.msra.gmra.mrb[52].mxu1 %vm1214_vm7, %v2474_v61  ;;  %4208 = vmatprep.subr.bf16.mxu0 %v4554_v36  ;;  %v2748_v2 = vpop.permute.xlu1 %2747 }
 0xff1   : > { %4203 = vmatpush3.bf16.xpose.msra.mxu1 %v2637_v0  ;;  %4204 = vmatprep.mubr.msk.bf16.mxu1 %vm4555_vm6, %v4554_v36  ;;  %v2753_v5 = vsel %vm1335_vm8, %v2748_v2, 0 }
 0xff2   : > { %4214 = vmatprep.subr.bf16.mxu1 %v4554_v36 }
 0xff6   : > { %4199 = vmatmul.mubr.msk.bf16.vlgmr.msra.gmra.mrb[40].mxu0 %vm1214_vm7, %v2579_v58 }
 0xff7   : > { %4209 = vmatpush3.bf16.msra.mxu0 %v2705_v3  ;;  %4210 = vmatprep.mubr.msk.bf16.mxu0 %vm4555_vm6, %v4554_v36 }
 0xff8   : > { %4205 = vmatmul.mubr.msk.bf16.vlgmr.msra.gmra.mrb[56].mxu1 %vm1214_vm7, %v2630_v62  ;;  %4220 = vmatprep.subr.bf16.mxu0 %v4554_v36 }
 0xff9   : > { %4215 = vmatpush3.bf16.msra.mxu1 %v2753_v5  ;;  %4216 = vmatprep.mubr.msk.bf16.mxu1 %vm4555_vm6, %v4554_v36 }
 0xffa   : > { %4226 = vmatprep.subr.bf16.mxu1 %v4554_v36 }
0x10c1   : > { %v5200_v6 = vpop.f32.mrb[36].mxu0 }
0x10c2   : > { %v4188_v7 = vpop.f32.mrb[37].mxu0 }
0x10c3   : > { %v2521_v8 = vpop.f32.mrb[38].mxu0  ;;  %v5202_v10 = vpop.f32.mrb[52].mxu1 }
0x10c4   : > { %v4189_v11 = vpop.f32.mrb[39].mxu0  ;;  %v4194_v12 = vpop.f32.mrb[53].mxu1 }
0x10c5   : > { %v2570_v13 = vpop.f32.mrb[54].mxu1 }
0x10c6   : > { %v4195_v14 = vpop.f32.mrb[55].mxu1 }
0x10c9   : > { %v2622_v15 = vpop.f32.mrb[40].mxu0 }
0x10ca   : > { %v4200_v16 = vpop.f32.mrb[41].mxu0  ;;  %v2679_v18 = vsel %vm1214_vm7, %v2622_v15, -inf }
0x10cb   : > { %2680 = vmax.xlane.f32.xlu0 %v2679_v18  ;;  %v2625_v19 = vpop.f32.mrb[42].mxu0  ;;  %v2673_v20 = vpop.f32.mrb[56].mxu1 }
0x10cc   : > { %v4201_v24 = vpop.f32.mrb[43].mxu0  ;;  %v4206_v26 = vpop.f32.mrb[57].mxu1  ;;  %v2682_v28 = vsel %vm1214_vm7, %v2673_v20, -inf }
0x10cd   : > { %2683 = vmax.xlane.f32.xlu1 %v2682_v28  ;;  %v2676_v60 = vpop.f32.mrb[58].mxu1 }
0x10ce   : > { %v4207_v4 = vpop.f32.mrb[59].mxu1 }
0x10de   : > { %2851 = vrot.lane.b32.xlu1 %v5130_v63, %s4562_s14 }
0x10e1   : > { %2801 = vrot.lane.b32.xlu0 %v5128_v25, %s4562_s14 }
0x10e2   : > { %2849 = vrot.lane.b32.xlu1 %v5140_v33, %s4562_s14 }
0x10e5   : > { %2799 = vrot.lane.b32.xlu0 %v5138_v41, %s4562_s14 }
0x10e6   : > { %2967 = vrot.lane.b32.xlu1 %v5130_v63, %s4561_s6 }
0x10e9   : > { %2919 = vrot.lane.b32.xlu0 %v5128_v25, %s4561_s6  ;;  %s5516_s6 = scalar_lea.vmem %s5444_s15, %s4745_s0 }
0x1158   : > { %v2681_v29 = vpop.xlane.xlu0 %2680 }
0x1159   : > { %v2685_v9 = vsub.f32 %v2622_v15, %v2681_v29 }
0x115a   : > { %v2684_v30 = vpop.xlane.xlu1 %2683 }
0x115b   : > { %v2687_v31 = vmul.f32 1.442695, %v2685_v9  ;;  %v2686_v45 = vsub.f32 %v2673_v20, %v2684_v30 }
0x115c   : > { %v2802_v35 = vpop.permute.xlu0 %2801 }
0x115d   : > { %4444 = vpow2.f32 %v2687_v31  ;;  %v2689_v34 = vmul.f32 1.442695, %v2686_v45  ;;  %v2807_v46 = vsel %vm1214_vm7, %v2802_v35, 0 }
0x115e   : > { %v2852_v37 = vpop.permute.xlu1 %2851 }
0x115f   : > { %4446 = vpow2.f32 %v2689_v34  ;;  %v2857_v27 = vsel %vm1214_vm7, %v2852_v37, 0 }
0x1160   : > { %v2800_v44 = vpop.permute.xlu0 %2799 }
0x1162   : > { %v2850_v22 = vpop.permute.xlu1 %2849 }
0x1164   : > { %v2920_v47 = vpop.permute.xlu0 %2919 }
0x1165   : > { %v2925_v49 = vsel %vm1335_vm8, %v2920_v47, 0 }
0x1166   : > { %v2968_v48 = vpop.permute.xlu1 %2967 }
0x1167   : > { %v5218_v39 = vpop.eup %4444  ;;  %v2973_v50 = vsel %vm1335_vm8, %v2968_v48, 0 }
0x1168   : > { %v2697_v40 = vpack.c.bf16 %v5218_v39, %v5218_v39 }
0x1169   : > { %v5222_v43 = vpop.eup %4446 }
0x116a   : > { %4211 = vmatmul.mubr.msk.bf16.vlgmr.msra.gmra.mrb[44].mxu0 %vm1214_vm7, %v2697_v40  ;;  %v2698_v21 = vpack.c.bf16 %v5222_v43, %v5222_v43 }
0x116b   : > { %4221 = vmatpush3.bf16.xpose.msra.mxu0 %v2807_v46  ;;  %4222 = vmatprep.mubr.msk.bf16.mxu0 %vm4555_vm6, %v4554_v36 }
0x116c   : > { %4217 = vmatmul.mubr.msk.bf16.vlgmr.msra.gmra.mrb[60].mxu1 %vm1214_vm7, %v2698_v21  ;;  %4232 = vmatprep.subr.bf16.mxu0 %v4554_v36 }
0x116d   : > { %4227 = vmatpush3.bf16.xpose.msra.mxu1 %v2857_v27  ;;  %4228 = vmatprep.mubr.msk.bf16.mxu1 %vm4555_vm6, %v4554_v36 }
0x116e   : > { %4238 = vmatprep.subr.bf16.mxu1 %v4554_v36 }
0x1172   : > { %4223 = vmatmul.mubr.msk.bf16.vlgmr.msra.gmra.mrb[48].mxu0 %vm1214_vm7, %v2800_v44 }
0x1173   : > { %4233 = vmatpush3.bf16.msra.mxu0 %v2925_v49  ;;  %4234 = vmatprep.mubr.msk.bf16.mxu0 %vm4555_vm6, %v4554_v36 }
0x1174   : > { %4229 = vmatmul.mubr.msk.bf16.vlgmr.msra.gmra.mrb[64].mxu1 %vm1214_vm7, %v2850_v22  ;;  %4244 = vmatprep.subr.bf16.mxu0 %v4554_v36 }
0x1175   : > { %4239 = vmatpush3.bf16.msra.mxu1 %v2973_v50  ;;  %4240 = vmatprep.mubr.msk.bf16.mxu1 %vm4555_vm6, %v4554_v36  ;;  %v2691_v50 = vsel %vm1214_vm7, %v5218_v39, 0.0 }
0x1176   : > { %4250 = vmatprep.subr.bf16.mxu1 %v4554_v36 }
0x123d   : > { %v5246_v51 = vpop.f32.mrb[44].mxu0 }
0x123e   : > { %v4212_v32 = vpop.f32.mrb[45].mxu0 }
0x123f   : > { %v2744_v52 = vpop.f32.mrb[46].mxu0  ;;  %v5248_v53 = vpop.f32.mrb[60].mxu1  ;;  %v2694_v32 = vsel %vm1214_vm7, %v5222_v43, 0.0 }
0x1240   : > { %v4213_v54 = vpop.f32.mrb[47].mxu0  ;;  %v4218_v55 = vpop.f32.mrb[61].mxu1 }
0x1241   : > { %v2792_v17 = vpop.f32.mrb[62].mxu1 }
0x1242   : > { %v4219_v56 = vpop.f32.mrb[63].mxu1 }
0x1245   : > { %v2843_v58 = vpop.f32.mrb[48].mxu0 }
0x1246   : > { %v4224_v59 = vpop.f32.mrb[49].mxu0  ;;  %v2899_v61 = vsel %vm1214_vm7, %v2843_v58, -inf }
0x1247   : > { %2900 = vmax.xlane.f32.xlu0 %v2899_v61  ;;  %v2846_v62 = vpop.f32.mrb[50].mxu0  ;;  %v2893_v0 = vpop.f32.mrb[64].mxu1 }
0x1248   : > { %v4225_v1 = vpop.f32.mrb[51].mxu0  ;;  %v4230_v2 = vpop.f32.mrb[65].mxu1  ;;  %v2902_v3 = vsel %vm1214_vm7, %v2893_v0, -inf }
0x1249   : > { %2903 = vmax.xlane.f32.xlu1 %v2902_v3  ;;  %v2896_v5 = vpop.f32.mrb[66].mxu1 }
0x124a   : > { %v4231_v7 = vpop.f32.mrb[67].mxu1 }
0x124b   : > { %v2467_v7 = vsel %vm1214_vm7, %v5172_v23, 0.0 }
0x125a   : > { %3071 = vrot.lane.b32.xlu1 %v5130_v63, %s4565_s23 }
0x125d   : > { %3021 = vrot.lane.b32.xlu0 %v5128_v25, %s4565_s23 }
0x125e   : > { %3069 = vrot.lane.b32.xlu1 %v5140_v33, %s4565_s23 }
0x1261   : > { %3019 = vrot.lane.b32.xlu0 %v5138_v41, %s4565_s23 }
0x12d4   : > { %v2901_v8 = vpop.xlane.xlu0 %2900 }
0x12d5   : > { %v2905_v11 = vsub.f32 %v2843_v58, %v2901_v8  ;;  %v2470_v8 = vsel %vm1214_vm7, %v5176_v57, 0.0 }
0x12d6   : > { %v2904_v12 = vpop.xlane.xlu1 %2903 }
0x12d7   : > { %v2907_v13 = vmul.f32 1.442695, %v2905_v11  ;;  %v2906_v14 = vsub.f32 %v2893_v0, %v2904_v12 }
0x12d8   : > { %v3022_v18 = vpop.permute.xlu0 %3021 }
0x12d9   : > { %4448 = vpow2.f32 %v2907_v13  ;;  %v2909_v15 = vmul.f32 1.442695, %v2906_v14  ;;  %v3027_v26 = vsel %vm1214_vm7, %v3022_v18, 0 }
0x12da   : > { %v3072_v24 = vpop.permute.xlu1 %3071 }
0x12db   : > { %4450 = vpow2.f32 %v2909_v15  ;;  %v3077_v41 = vsel %vm1214_vm7, %v3072_v24, 0 }
0x12dc   : > { %v3020_v28 = vpop.permute.xlu0 %3019 }
0x12de   : > { %v3070_v60 = vpop.permute.xlu1 %3069 }
0x12e3   : > { %v4449_v16 = vpop.eup %4448 }
0x12e4   : > { %v2917_v19 = vpack.c.bf16 %v4449_v16, %v4449_v16  ;;  %v2911_v52 = vsel %vm1214_vm7, %v4449_v16, 0.0 }
0x12e5   : > { %v4451_v20 = vpop.eup %4450 }
0x12e6   : > { %4235 = vmatmul.mubr.msk.bf16.vlgmr.msra.gmra.mrb[52].mxu0 %vm1214_vm7, %v2917_v19  ;;  %v2918_v33 = vpack.c.bf16 %v4451_v20, %v4451_v20  ;;  %v2914_v54 = vsel %vm1214_vm7, %v4451_v20, 0.0 }
0x12e7   : > { %4245 = vmatpush3.bf16.xpose.msra.mxu0 %v3027_v26  ;;  %4246 = vmatprep.mubr.msk.bf16.mxu0 %vm4555_vm6, %v4554_v36 }
0x12e8   : > { %4241 = vmatmul.mubr.msk.bf16.vlgmr.msra.gmra.mrb[68].mxu1 %vm1214_vm7, %v2918_v33  ;;  %4256 = vmatprep.subr.bf16.mxu0 %v4554_v36 }
0x12e9   : > { %4251 = vmatpush3.bf16.xpose.msra.mxu1 %v3077_v41  ;;  %4252 = vmatprep.mubr.msk.bf16.mxu1 %vm4555_vm6, %v4554_v36  ;;  %v4388_v41 = vld [vmem:[%s4794_s3] sm:$0xff]  }
0x12ea   : > { %4262 = vmatprep.subr.bf16.mxu1 %v4554_v36 }
0x12ee   : > { %4247 = vmatmul.mubr.msk.bf16.vlgmr.msra.gmra.mrb[56].mxu0 %vm1214_vm7, %v3020_v28 }
0x12ef   : > { %4258 = vmatprep.mubr.msk.bf16.mxu0 %vm4555_vm6, %v4554_v36 }
0x12f0   : > { %4253 = vmatmul.mubr.msk.bf16.vlgmr.msra.gmra.mrb[72].mxu1 %vm1214_vm7, %v3070_v60 }
0x12f1   : > { %4264 = vmatprep.mubr.msk.bf16.mxu1 %vm4555_vm6, %v4554_v36 }
0x13b9   : > { %v5276_v4 = vpop.f32.mrb[52].mxu0 }
0x13ba   : > { %v4236_v29 = vpop.f32.mrb[53].mxu0 }
0x13bb   : > { %v2964_v9 = vpop.f32.mrb[54].mxu0  ;;  %v5278_v30 = vpop.f32.mrb[68].mxu1 }
0x13bc   : > { %v4237_v31 = vpop.f32.mrb[55].mxu0  ;;  %v4242_v45 = vpop.f32.mrb[69].mxu1 }
0x13bd   : > { %v3012_v34 = vpop.f32.mrb[70].mxu1 }
0x13be   : > { %v4243_v35 = vpop.f32.mrb[71].mxu1 }
0x13c1   : > { %v3063_v37 = vpop.f32.mrb[56].mxu0 }
0x13c2   : > { %v4248_v40 = vpop.f32.mrb[57].mxu0  ;;  %v3119_v44 = vsel %vm1214_vm7, %v3063_v37, -inf }
0x13c3   : > { %3120 = vmax.xlane.f32.xlu0 %v3119_v44  ;;  %v3066_v46 = vpop.f32.mrb[58].mxu0  ;;  %v3113_v21 = vpop.f32.mrb[72].mxu1 }
0x13c4   : > { %v4249_v22 = vpop.f32.mrb[59].mxu0  ;;  %v4254_v27 = vpop.f32.mrb[73].mxu1  ;;  %v3122_v47 = vsel %vm1214_vm7, %v3113_v21, -inf }
0x13c5   : > { %3123 = vmax.xlane.f32.xlu1 %v3122_v47  ;;  %v3116_v48 = vpop.f32.mrb[74].mxu1 }
0x13c6   : > { %v4255_v49 = vpop.f32.mrb[75].mxu1 }
0x13d6   : > { %3187 = vrot.lane.b32.xlu1 %v5130_v63, %s4564_s8 }
0x13d9   : > { %3139 = vrot.lane.b32.xlu0 %v5128_v25, %s4564_s8  ;;  %s5517_s8 = scalar_lea.vmem %s5445_s16, %s4745_s0 }
0x13f8   : > { %2692 = vadd.xlane.f32.xlu0 %v2691_v50 }
0x13fa   : > { %2695 = vadd.xlane.f32.xlu1 %v2694_v32 }
0x13fc   : > { %2912 = vadd.xlane.f32.xlu0 %v2911_v52 }
0x1400   : > { %2915 = vadd.xlane.f32.xlu0 %v2914_v54 }
0x1450   : > { %v3121_v55 = vpop.xlane.xlu0 %3120 }
0x1451   : > { %v3125_v17 = vsub.f32 %v3063_v37, %v3121_v55 }
0x1452   : > { %v3124_v63 = vpop.xlane.xlu1 %3123 }
0x1453   : > { %v3127_v56 = vmul.f32 1.442695, %v3125_v17  ;;  %v3126_v58 = vsub.f32 %v3113_v21, %v3124_v63 }
0x1454   : > { %v3140_v25 = vpop.permute.xlu0 %3139 }
0x1455   : > { %4452 = vpow2.f32 %v3127_v56  ;;  %v3129_v59 = vmul.f32 1.442695, %v3126_v58  ;;  %v3145_v39 = vsel %vm1335_vm8, %v3140_v25, 0 }
0x1456   : > { %4257 = vmatpush3.bf16.msra.mxu0 %v3145_v39  ;;  %v3188_v61 = vpop.permute.xlu1 %3187 }
0x1457   : > { %4454 = vpow2.f32 %v3129_v59  ;;  %v3193_v43 = vsel %vm1335_vm8, %v3188_v61, 0  ;;  %4268 = vmatprep.subr.bf16.mxu0 %v4554_v36 }
0x1458   : > { %4263 = vmatpush3.bf16.msra.mxu1 %v3193_v43 }
0x1459   : > { %4276 = vmatprep.subr.bf16.mxu1 %v4554_v36 }
0x145f   : > { %v4453_v62 = vpop.eup %4452 }
0x1460   : > { %v3131_v0 = vsel %vm1214_vm7, %v4453_v62, 0.0  ;;  %v3137_v1 = vpack.c.bf16 %v4453_v62, %v4453_v62 }
0x1461   : > { %v4455_v2 = vpop.eup %4454  ;;  %3132 = vadd.xlane.f32.xlu0 %v3131_v0 }
0x1462   : > { %4259 = vmatmul.mubr.msk.bf16.vlgmr.msra.gmra.mrb[60].mxu0 %vm1214_vm7, %v3137_v1  ;;  %v3134_v3 = vsel %vm1214_vm7, %v4455_v2, 0.0  ;;  %v3138_v5 = vpack.c.bf16 %v4455_v2, %v4455_v2 }
0x1463   : > { %3135 = vadd.xlane.f32.xlu1 %v3134_v3  ;;  %4272 = vmatprep.mubr.msk.bf16.mxu0 %vm4555_vm6, %v4554_v36 }
0x1464   : > { %4265 = vmatmul.mubr.msk.bf16.vlgmr.msra.gmra.mrb[76].mxu1 %vm1214_vm7, %v3138_v5  ;;  %4269 = vmatpush3.bf16.msra.mxu0 %v4388_v41  ;;  %v4393_v41 = vld [vmem:[%s4821_s1 + $0x8] sm:$0xff]  }
0x1465   : > { %2468 = vadd.xlane.f32.xlu0 %v2467_v7  ;;  %4280 = vmatprep.mubr.msk.bf16.mxu1 %vm4555_vm6, %v4554_v36 }
0x1466   : > { %4270 = vmatprep.subr.bf16.mxu0 %v4554_v36 }
0x1467   : > { %2471 = vadd.xlane.f32.xlu1 %v2470_v8 }
0x1485   : > { %v2693_v11 = vpop.xlane.xlu0 %2692 }
0x1486   : > { %4456 = vrcp.f32 %v2693_v11 }
0x1487   : > { %v2696_v12 = vpop.xlane.xlu1 %2695 }
0x1488   : > { %4458 = vrcp.f32 %v2696_v12 }
0x1489   : > { %v2913_v13 = vpop.xlane.xlu0 %2912 }
0x148a   : > { %4460 = vrcp.f32 %v2913_v13 }
0x148d   : > { %v2916_v14 = vpop.xlane.xlu0 %2915 }
0x148e   : > { %4462 = vrcp.f32 %v2916_v14 }
0x1490   : > { %v4457_v15 = vpop.eup %4456 }
0x1491   : > { %v2797_v23 = vmul.f32 %v4457_v15, %v5246_v51 }
0x1492   : > { %v4459_v16 = vpop.eup %4458 }
0x1493   : > { %v2798_v18 = vmul.f32 %v4459_v16, %v5248_v53  ;;  %v4389_v53 = vld [vmem:[%s4794_s3 + $0x8] sm:$0xff]  }
0x1494   : > { %v4461_v20 = vpop.eup %4460  ;;  %4271 = vmatpush3.bf16.msra.mxu0 %v4389_v53  ;;  %v4396_v53 = vld [vmem:[%s4821_s1 + $0x20] sm:$0xff]  }
0x1495   : > { %v4367_v19 = vpack.i.bf16 %v2798_v18, %v2797_v23  ;;  %v3017_v24 = vmul.f32 %v4461_v20, %v5276_v4  ;;  %4284 = vmatprep.subr.bf16.mxu0 %v4554_v36 }
0x1497   : > { %4368 = vrot.lane.b32.xlu0 %v4367_v19, %s4567_s5 }
0x1498   : > { %v4463_v57 = vpop.eup %4462 }
0x1499   : > { %v3018_v26 = vmul.f32 %v4463_v57, %v5278_v30 }
0x149b   : > { %v4372_v33 = vpack.i.bf16 %v3018_v26, %v3017_v24  ;;  %v4390_v24 = vld [vmem:[%s4811_s26] sm:$0xff]   ;;  %v4391_v26 = vld [vmem:[%s4811_s26 + $0x8] sm:$0xff]  }
0x149c   : > { %4277 = vmatpush3.bf16.msra.mxu1 %v4390_v24 }
0x149d   : > { %4373 = vrot.lane.b32.xlu1 %v4372_v33, %s5514_s24  ;;  %4278 = vmatprep.subr.bf16.mxu1 %v4554_v36  ;;  %v4392_v33 = vld [vmem:[%s4821_s1] sm:$0xff]   ;;  %s5520_s24 = sld [smem:[#allocation23_spill]] }
0x14a0   : > { %4279 = vmatpush3.bf16.msra.mxu1 %v4391_v26 }
0x14ee   : > { %v3133_v51 = vpop.xlane.xlu0 %3132 }
0x14ef   : > { %4464 = vrcp.f32 %v3133_v51  ;;  %v4394_v51 = vld [vmem:[%s4821_s1 + $0x10] sm:$0xff]  }
0x14f0   : > { %v3136_v28 = vpop.xlane.xlu1 %3135 }
0x14f1   : > { %4466 = vrcp.f32 %v3136_v28  ;;  %v4395_v28 = vld [vmem:[%s4821_s1 + $0x18] sm:$0xff]  }
0x14f2   : > { %v2469_v21 = vpop.xlane.xlu0 %2468 }
0x14f3   : > { %4468 = vrcp.f32 %v2469_v21  ;;  %v3918_v21 = vld [vmem:[%s5518_s30] ss:$0 sm:$0xff] }
0x14f4   : > { %v2472_v22 = vpop.xlane.xlu1 %2471 }
0x14f5   : > { %4470 = vrcp.f32 %v2472_v22 }
0x14f9   : > { %v4465_v29 = vpop.eup %4464 }
0x14fb   : > { %v4467_v9 = vpop.eup %4466 }
0x14fd   : > { %v4469_v47 = vpop.eup %4468 }
0x14fe   : > { %v2575_v55 = vmul.f32 %v4469_v47, %v5200_v6  ;;  %v3913_v6 = vld [vmem:[%s5516_s6] ss:$0 sm:$0xff] }
0x14ff   : > { %v4471_v49 = vpop.eup %4470 }
0x1500   : > { %v2576_v17 = vmul.f32 %v4471_v49, %v5202_v10  ;;  %v4398_v49 = vld [vmem:[%s4821_s1 + $0x30] sm:$0xff]  }
0x1509   : > { %v4369_v27 = vpop.permute.xlu0 %4368 }
0x150a   : > { %v4371_v50 = vunpack.i.h.bf16 %v4369_v27  ;;  %v4370_v32 = vunpack.i.l.bf16 %v4369_v27 }
0x150c   : > { %v3263_v56 = vsel %vm1214_vm7, %v2575_v55, %v4370_v32  ;;  %v3264_v58 = vsel %vm1214_vm7, %v2576_v17, %v4371_v50  ;;  %v4399_v50 = vld [vmem:[%s4821_s1 + $0x38] sm:$0xff]   ;;  %v3919_v32 = vld [vmem:[%s5519_s21] ss:$0 sm:$0xff] }
0x150f   : > { %v4374_v48 = vpop.permute.xlu1 %4373 }
0x1510   : > { %v4376_v52 = vunpack.i.h.bf16 %v4374_v48  ;;  %v4375_v54 = vunpack.i.l.bf16 %v4374_v48 }
0x1512   : > { %v3266_v39 = vsel %vm2117_vm9, %v3264_v58, %v4376_v52  ;;  %v3265_v61 = vsel %vm2117_vm9, %v3263_v56, %v4375_v54 }
0x1535   : > { %v3181_v60 = vpop.f32.mrb[60].mxu0 }
0x1536   : > { %v4260_v4 = vpop.f32.mrb[61].mxu0  ;;  %v3237_v45 = vmul.f32 %v4465_v29, %v3181_v60  ;;  %v4397_v60 = vld [vmem:[%s4821_s1 + $0x28] sm:$0xff]   ;;  %s5521_s1 = scalar_lea.vmem %s5520_s24, %s4745_s0 }
0x1537   : > { %v3184_v30 = vpop.f32.mrb[62].mxu0  ;;  %v3229_v31 = vpop.f32.mrb[76].mxu1 }
0x1538   : > { %v3238_v34 = vmul.f32 %v4467_v9, %v3229_v31  ;;  %v4261_v35 = vpop.f32.mrb[63].mxu0  ;;  %v4266_v37 = vpop.f32.mrb[77].mxu1 }
0x1539   : > { %v3232_v40 = vpop.f32.mrb[78].mxu1  ;;  %v3917_v37 = vld [vmem:[%s5517_s8] ss:$0 sm:$0xff] }
0x153a   : > { %v4377_v44 = vpack.i.bf16 %v3238_v34, %v3237_v45  ;;  %v4267_v46 = vpop.f32.mrb[79].mxu1 }
0x153c   : > { %4378 = vrot.lane.b32.xlu1 %v4377_v44, %s5515_s12  ;;  %s5522_s12 = sld [smem:[#allocation10_spill]] }
0x1542   : > { %p3932_p4 = scmp.ne.s32.totalorder %s5522_s12, 1 }
0x1543   : > { %s5523_s4 = sld [smem:[#allocation24_spill]] (!%p3932_p4) }
0x1549   : > { %v3933_v26 = vld [vmem:[%s5523_s4] ss:$0 sm:$0xff] (!%p3932_p4) }
0x15ae   : > { %v4379_v63 = vpop.permute.xlu1 %4378 }
0x15af   : > { %v4381_v25 = vunpack.i.h.bf16 %v4379_v63  ;;  %v4380_v59 = vunpack.i.l.bf16 %v4379_v63 }
0x15b1   : > { %v3268_v43 = vsel %vm2120_vm10, %v3266_v39, %v4381_v25  ;;  %v3267_v62 = vsel %vm2120_vm10, %v3265_v61, %v4380_v59 }
0x15b2   : > { %v3269_v0 = vpack.c.bf16 %v3268_v43, %v3267_v62 }
0x15b4   : > { %4273 = vmatmul.mubr.msk.bf16.vlgmr.msra.gmra.mrb[64].mxu0 %vm1092_vm5, %v3269_v0 }
0x15b5   : > { %4300 = vmatprep.mubr.msk.bf16.mxu0 %vm4555_vm6, %v4554_v36  ;;  %4285 = vmatpush3.bf16.msra.mxu0 %v4392_v33 }
0x15b6   : > { %4286 = vmatprep.subr.bf16.mxu0 %v4554_v36 }
0x15b9   : > { %4287 = vmatpush3.bf16.msra.mxu0 %v4393_v41  ;;  %v3934_v41 = vld [vmem:[#allocation3] ss:$0 sm:$0xff] (!%p3932_p4) }
0x15ba   : > { %4288 = vmatprep.subr.bf16.mxu0 %v4554_v36 }
0x15bd   : > { %4289 = vmatpush3.bf16.msra.mxu0 %v4394_v51 }
0x15be   : > { %4290 = vmatprep.subr.bf16.mxu0 %v4554_v36 }
0x15c1   : > { %4291 = vmatpush3.bf16.msra.mxu0 %v4395_v28 }
0x15c2   : > { %4292 = vmatprep.subr.bf16.mxu0 %v4554_v36 }
0x15c5   : > { %4293 = vmatpush3.bf16.msra.mxu0 %v4396_v53 }
0x15c6   : > { %4294 = vmatprep.subr.bf16.mxu0 %v4554_v36 }
0x15c9   : > { %4295 = vmatpush3.bf16.msra.mxu0 %v4397_v60 }
0x15ca   : > { %4296 = vmatprep.subr.bf16.mxu0 %v4554_v36 }
0x15cd   : > { %4297 = vmatpush3.bf16.msra.mxu0 %v4398_v49 }
0x15ce   : > { %4298 = vmatprep.subr.bf16.mxu0 %v4554_v36  ;;  %v3923_v36 = vld [vmem:[%s5521_s1] ss:$0 sm:$0xff] }
0x15d1   : > { %4299 = vmatpush3.bf16.msra.mxu0 %v4399_v50 }
0x1687   : > { %v3325_v10 = vpop.f32.mrb[64].mxu0 }
0x1688   : > { %v3326_v1 = vadd.f32 %v3913_v6, %v3325_v10  ;;  %v4274_v2 = vpop.f32.mrb[65].mxu0 }
0x1689   : > { %v3328_v3 = vpop.f32.mrb[66].mxu0 }
0x168a   : > { %v5336_v5 = vadd.f32 %v3326_v1, %v5079_v38  ;;  %v3329_v7 = vadd.f32 %v3913_v6, %v3328_v3  ;;  %v4275_v8 = vpop.f32.mrb[67].mxu0 }
0x168c   : > { %v5339_v11 = vadd.f32 %v3329_v7, %v5082_v42  ;;  %v3336_v12 = vsel %vm1092_vm5, %v5336_v5, 0.0 }
0x168d   : > { %3337 = vadd.xlane.f32.xlu1 %v3336_v12 }
0x168e   : > { %v3339_v13 = vsel %vm1092_vm5, %v5339_v11, 0.0 }
0x168f   : > { %3340 = vadd.xlane.f32.xlu0 %v3339_v13 }
0x171a   : > { %v3338_v14 = vpop.xlane.xlu1 %3337 }
0x171b   : > { %v3342_v15 = vmul.f32 0.03125, %v3338_v14 }
0x171c   : > { %v3341_v38 = vpop.xlane.xlu0 %3340 }
0x171d   : > { %v3344_v16 = vsub.f32 %v5336_v5, %v3342_v15  ;;  %v3343_v23 = vmul.f32 0.03125, %v3341_v38 }
0x171f   : > { %v3345_v42 = vsub.f32 %v5339_v11, %v3343_v23  ;;  %v3346_v18 = vmul.f32 %v3344_v16, %v3344_v16 }
0x1721   : > { %v3348_v19 = vsel %vm1092_vm5, %v3346_v18, 0.0  ;;  %v3347_v20 = vmul.f32 %v3345_v42, %v3345_v42 }
0x1722   : > { %3349 = vadd.xlane.f32.xlu0 %v3348_v19 }
0x1723   : > { %v3351_v57 = vsel %vm1092_vm5, %v3347_v20, 0.0 }
0x1726   : > { %3352 = vadd.xlane.f32.xlu0 %v3351_v57 }
0x17af   : > { %v3350_v29 = vpop.xlane.xlu0 %3349 }
0x17b0   : > { %v3354_v4 = vmul.f32 0.03125, %v3350_v29 }
0x17b2   : > { %v3356_v9 = vadd.f32 1e-05, %v3354_v4 }
0x17b3   : > { %v3353_v30 = vpop.xlane.xlu0 %3352 }
0x17b4   : > { %4472 = vrsqrt.f32 %v3356_v9  ;;  %v3355_v31 = vmul.f32 0.03125, %v3353_v30 }
0x17b6   : > { %v3357_v45 = vadd.f32 1e-05, %v3355_v31 }
0x17b8   : > { %4474 = vrsqrt.f32 %v3357_v45 }
0x17be   : > { %v4473_v34 = vpop.eup %4472 }
0x17bf   : > { %v3360_v35 = vmul.f32 %v4473_v34, %v3344_v16 }
0x17c1   : > { %v3368_v44 = vmul.f32 %v3917_v37, %v3360_v35 }
0x17c2   : > { %v4475_v40 = vpop.eup %4474 }
0x17c3   : > { %v3361_v46 = vmul.f32 %v4475_v40, %v3345_v42  ;;  %v3376_v27 = vadd.f32 %v3918_v21, %v3368_v44 }
0x17c5   : > { %v3369_v22 = vmul.f32 %v3917_v37, %v3361_v46 }
0x17c7   : > { %v3377_v47 = vadd.f32 %v3918_v21, %v3369_v22 }
0x17c9   : > { %v3400_v48 = vpack.c.bf16 %v3377_v47, %v3376_v27 }
0x17cb   : > { %4281 = vmatmul.mubr.msk.bf16.vlgmr.msra.gmra.mrb[80].mxu1 %vm1092_vm5, %v3400_v48 }
0x189e   : > { %v3456_v52 = vpop.f32.mrb[80].mxu1 }
0x189f   : > { %v3457_v54 = vadd.f32 %v3919_v32, %v3456_v52  ;;  %v4282_v55 = vpop.f32.mrb[81].mxu1 }
0x18a0   : > { %v3459_v17 = vpop.f32.mrb[82].mxu1 }
0x18a1   : > { %v3460_v63 = vadd.f32 %v3919_v32, %v3459_v17  ;;  %v4283_v56 = vpop.f32.mrb[83].mxu1  ;;  %v3463_v58 = vmax.f32 %v3457_v54, 0.0 }
0x18a3   : > { %v3464_v25 = vmax.f32 %v3460_v63, 0.0 }
0x18a5   : > { %v3465_v59 = vpack.c.bf16 %v3464_v25, %v3463_v58 }
0x18a7   : > { %4301 = vmatmul.mubr.bf16.vlgmr.msra.gmra.mrb[68].mxu0 %v3465_v59 }
0x197a   : > { %v3554_v39 = vpop.f32.mrb[68].mxu0 }
0x197b   : > { %v3555_v61 = vadd.f32 %v3923_v36, %v3554_v39  ;;  %v4302_v43 = vpop.f32.mrb[69].mxu0  ;;  %3568 = sbr.rel (%p3932_p4) target bundleno = 6845 (0x1abd), region = 128 }
0x197c   : > { %v3557_v62 = vpop.f32.mrb[70].mxu0 }
0x197d   : > { %v3561_v0 = vadd.f32 %v3555_v61, %v5336_v5  ;;  %v3558_v6 = vadd.f32 %v3923_v36, %v3557_v62  ;;  %v4303_v10 = vpop.f32.mrb[71].mxu0 }
0x197f   : > { %3563 = vst.msk [vmem:[#allocation2] sm:$0xff] %vm1092_vm5, %v3561_v0  ;;  %v3562_v1 = vadd.f32 %v3558_v6, %v5339_v11  ;;  %v3571_v2 = vsel (!%p3932_p4), %vm1092_vm5, %v3561_v0, 0.0 }
0x1980   : > { %3572 = vadd.xlane.f32.xlu0 (!%p3932_p4), %v3571_v2 }
0x1981   : > { %3564 = vst.msk [vmem:[#allocation2 + $0x8] sm:$0xff] %vm1092_vm5, %v3562_v1  ;;  %v3574_v3 = vsel (!%p3932_p4), %vm1092_vm5, %v3562_v1, 0.0 }
0x1984   : > { %3575 = vadd.xlane.f32.xlu0 %v3574_v3 }
0x1a0d   : > { %v3573_v7 = vpop.xlane.xlu0 %3572 }
0x1a0e   : > { %v3577_v8 = vmul.f32 0.03125, %v3573_v7 }
0x1a10   : > { %v3579_v5 = vsub.f32 %v3561_v0, %v3577_v8 }
0x1a11   : > { %v3576_v12 = vpop.xlane.xlu0 %3575 }
0x1a12   : > { %v3578_v13 = vmul.f32 0.03125, %v3576_v12  ;;  %v3581_v14 = vmul.f32 %v3579_v5, %v3579_v5 }
0x1a14   : > { %v3580_v15 = vsub.f32 %v3562_v1, %v3578_v13  ;;  %v3583_v11 = vsel %vm1092_vm5, %v3581_v14, 0.0 }
0x1a15   : > { %3584 = vadd.xlane.f32.xlu1 %v3583_v11 }
0x1a16   : > { %v3582_v38 = vmul.f32 %v3580_v15, %v3580_v15 }
0x1a18   : > { %v3586_v16 = vsel %vm1092_vm5, %v3582_v38, 0.0 }
0x1a19   : > { %3587 = vadd.xlane.f32.xlu1 %v3586_v16 }
0x1aa2   : > { %v3585_v23 = vpop.xlane.xlu1 %3584 }
0x1aa3   : > { %v3589_v42 = vmul.f32 0.03125, %v3585_v23 }
0x1aa5   : > { %v3591_v18 = vadd.f32 1e-05, %v3589_v42 }
0x1aa6   : > { %v3588_v19 = vpop.xlane.xlu1 %3587 }
0x1aa7   : > { %4476 = vrsqrt.f32 %v3591_v18  ;;  %v3590_v20 = vmul.f32 0.03125, %v3588_v19 }
0x1aa9   : > { %v3592_v57 = vadd.f32 1e-05, %v3590_v20 }
0x1aab   : > { %4478 = vrsqrt.f32 %v3592_v57 }
0x1ab1   : > { %v4477_v24 = vpop.eup %4476 }
0x1ab2   : > { %v3595_v33 = vmul.f32 %v4477_v24, %v3579_v5 }
0x1ab4   : > { %v3603_v51 = vmul.f32 %v3933_v26, %v3595_v33 }
0x1ab5   : > { %v4479_v28 = vpop.eup %4478 }
0x1ab6   : > { %v3611_v53 = vadd.f32 %v3934_v41, %v3603_v51  ;;  %v3596_v60 = vmul.f32 %v4479_v28, %v3580_v15 }
0x1ab8   : > { %3613 = vst.msk [vmem:[#allocation6] sm:$0xff] %vm1092_vm5, %v3611_v53  ;;  %v3604_v29 = vmul.f32 %v3933_v26, %v3596_v60 }
0x1aba   : > { %v3612_v4 = vadd.f32 %v3934_v41, %v3604_v29 }
0x1abc   : > { %3614 = vst.msk [vmem:[#allocation6 + $0x8] sm:$0xff] %vm1092_vm5, %v3612_v4 }
0x1abd PF: > { %s5524_s6 = sld [smem:[#allocation10_spill]]  ;;  %s4570_s26 = smov [#allocation6]  }
0x1abe   : > { %s3621_s14 = sshll.u32 %s4570_s26, 4  ;;  %s3622_s14 = int_to_ptr.vmem [resolvable:$true] %s3621_s14 }
0x1abf   : > { %s4508_s8 = scalar_lea.vmem %s3622_s14, 256  ;;  %p4515_p13 = scmp.lt.s32.totalorder %s3622_s14, %s3622_s14 }
0x1ac0   : > { %p4509_p10 = scmp.ne.s32.totalorder %s3622_s14, %s4508_s8  ;;  %p4516_p0 = scmp.lt.s32.totalorder %s4508_s8, %s4508_s8 }
0x1ac2   : > { %p4517_p1 = por %p4516_p0, %p4515_p13 }
0x1ac3   : > { %p4318_p6 = scmp.eq.s32.totalorder %s5524_s6, 1 }
0x1ac5   : > { %p4510_p11 = pnand %p4509_p10, %p4318_p6 }
0x1ac7   : > { %p4511_p12 = pneg %p4510_p11 }
0x1ac9   : > { %p4518_p5 = pnand %p4517_p1, %p4511_p12 }
0x1acb   : > { %4521 = shalt.err (!%p4518_p5)
}
0x1acc   : > { %s5525_s30 = sld [smem:[#allocation26_spill]] }
0x1ad2   : > { %s4522_s2 = scalar_lea.hbm %s5525_s30, 256 }
0x1ad3   : > { %p4523_p7 = scmp.ne.s32.totalorder %s5525_s30, %s4522_s2  ;;  %p4528_p2 = scmp.lt.u32.totalorder %s4522_s2, %s5525_s30 }
0x1ad5   : > { %p4524_p9 = pnand %p4523_p7, %p4318_p6 }
0x1ad7   : > { %p4525_p8 = pneg %p4524_p9 }
0x1ad9   : > { %p4530_p3 = pnand %p4528_p2, %p4525_p8 }
0x1adb   : > { %4533 = shalt.err (!%p4530_p3)
}
0x1adc   : > { %s4571_s24 = smov 128  }
0x1add   : > { %4309 = dma.vmem_to_hbm [thread:$0]  (%p4318_p6), %s3622_s14, 256, %s5525_s30, [#allocation5], %s4571_s24, %s4571_s24, %s4567_s5  }
0x1ade   : > { %4543 = dma.done.wait (%p4318_p6), [#allocation5], 256  }
0x1adf   : > { %4545 = vsyncadd (%p4318_p6), [#allocation5], 4294967040 }
0x1ae0 PF: > { %s5526_s0 = sld [smem:[#allocation9_spill]] }
0x1ae6   : > { %s36_s5 = sadd.s32 1, %s5526_s0  }
0x1ae7   : > { %p33_p4 = scmp.ge.s32.totalorder %s36_s5, 4  }
0x1ae9   :  { %35 = sbr.rel (!%p33_p4) target bundleno = 18 (0x12), region = 207 }
0x1af0   :  { %3637 = vsyncpa [#allocation4], 1 }
0x1af1   :  { %3639 = vsyncpa [#allocation4 + $0x1], 1 }
0x1af2   :  { %3640 = vsyncpa [#allocation5], 1 }
0x1af3   :  { %3642 = vsyncpa [#allocation5 + $0x1], 1 }

</bundles_post_ra>
